<compile_context>
chip_gen: v7x
topology: tpu7x:2x2x1
jax: 0.10.0
libtpu: 0.0.40
codegen_flags: <defaults>
</compile_context>

<pallas_src>
import functools

import jax
import jax.numpy as jnp
from jax import lax
from jax.experimental import pallas as pl
from jax.experimental.pallas import tpu as pltpu

_BN_EPS = 1e-5
_KPAD = 128  # per-tap lane width (zero padded) -> 128-aligned im2col concat

_COMPILER_PARAMS = pltpu.CompilerParams(
    dimension_semantics=("parallel",),      # megacore: batch axis split across TCs
    vmem_limit_bytes=48 * 1024 * 1024,      # > v5e 16 MiB / v6e 32 MiB defaults,
                                            # < v7x's 64 MiB physical VMEM
)


# ----------------------------- kernel helpers -----------------------------
def _col_edge_masks(n_rows, wp):
    """(n_rows, 1) masks: True where a dw=-1 / dw=+1 tap reads a valid column."""
    col = lax.broadcasted_iota(jnp.int32, (n_rows, 1), 0) % wp
    return col != 0, col != (wp - 1)


def _stage_rows(s_scr, n_rows, padr, pieces):
    """Fill the row-padded staging scratch.

    Zeroes only the 2*padr halo rows plus the unused pad lanes, then writes the
    activation pieces (list of (lane_offset, value)) into the image rows.
    """
    kpad = s_scr.shape[1]
    halo = jnp.zeros((padr, kpad), s_scr.dtype)
    s_scr[pl.ds(0, padr), :] = halo
    s_scr[pl.ds(padr + n_rows, padr), :] = halo
    used = 0
    for lane_off, val in pieces:
        width = val.shape[1]
        s_scr[pl.ds(padr, n_rows), pl.ds(lane_off, width)] = val.astype(s_scr.dtype)
        used = lane_off + width
    if used < kpad:
        s_scr[pl.ds(padr, n_rows), pl.ds(used, kpad - used)] = jnp.zeros(
            (n_rows, kpad - used), s_scr.dtype)


def _conv3x3_wide(s_scr, w_ref, wp, padr, n_rows, left_ok, right_ok):
    """3x3 'same' conv as a single wide-K bf16 matmul (aligned 9-tap im2col)."""
    taps = []
    for dh in (-1, 0, 1):
        for dw in (-1, 0, 1):
            off = dh * wp + dw
            tap = s_scr[pl.ds(padr + off, n_rows), :]           # (n_rows, 128) bf16
            if dw == -1:
                tap = jnp.where(left_ok, tap, jnp.zeros_like(tap))
            elif dw == 1:
                tap = jnp.where(right_ok, tap, jnp.zeros_like(tap))
            taps.append(tap)
    x = jnp.concatenate(taps, axis=1)                           # (n_rows, 9*_KPAD)
    return jnp.dot(x, w_ref[...], preferred_element_type=jnp.float32)


# --------------------------------- kernels ---------------------------------
def _conv1_kernel(hp, wp, padr, cz,
                  z_ref, y_ref, w1_ref, b1_ref,
                  acc1_ref, sum_ref, ssq_ref, s_scr):
    n_rows = hp * wp
    z = z_ref[0]                                   # (n_rows, ps*ps*cz) f32
    nph = z.shape[1] // cz

    # MaxPool2d(ps, ps): max over the ps*ps lane groups (argmax recomputed later)
    pooled = z[:, 0:cz]
    for p in range(1, nph):
        pooled = jnp.maximum(pooled, z[:, p * cz:(p + 1) * cz])

    # conv_fcn1 on cat([pooled_z, y]) staged once into one bf16 scratch
    _stage_rows(s_scr, n_rows, padr, [(0, pooled), (cz, y_ref[0])])
    left_ok, right_ok = _col_edge_masks(n_rows, wp)
    acc = _conv3x3_wide(s_scr, w1_ref, wp, padr, n_rows, left_ok, right_ok)
    acc = acc + b1_ref[...]

    acc1_ref[0] = acc
    sum_ref[0] = jnp.sum(acc, axis=0, keepdims=True)        # BN1 partial stats
    ssq_ref[0] = jnp.sum(acc * acc, axis=0, keepdims=True)


def _conv2_kernel(hp, wp, padr,
                  acc1_ref, sc1_ref, sh1_ref, w2_ref, b2_ref,
                  acc2_ref, sum_ref, ssq_ref, s_scr):
    n_rows = hp * wp
    # BN1 (precomputed global affine) + ReLU
    relu1 = jnp.maximum(acc1_ref[0] * sc1_ref[...] + sh1_ref[...], 0.0)

    _stage_rows(s_scr, n_rows, padr, [(0, relu1)])
    left_ok, right_ok = _col_edge_masks(n_rows, wp)
    acc = _conv3x3_wide(s_scr, w2_ref, wp, padr, n_rows, left_ok, right_ok)
    acc = acc + b2_ref[...]

    acc2_ref[0] = acc
    sum_ref[0] = jnp.sum(acc, axis=0, keepdims=True)         # BN2 partial stats
    ssq_ref[0] = jnp.sum(acc * acc, axis=0, keepdims=True)


def _unpool_kernel(cz,
                   acc2_ref, sc2_ref, sh2_ref, wz_ref, bz_ref, z_ref,
                   yout_ref, zout_ref):
    # BN2 + ReLU -> y_out
    relu2 = jnp.maximum(acc2_ref[0] * sc2_ref[...] + sh2_ref[...], 0.0)
    yout_ref[0] = relu2

    # convz_fcn: 1x1 conv == channel matmul (bf16 operands, f32 accumulation)
    convz = jnp.dot(relu2.astype(jnp.bfloat16), wz_ref[...],
                    preferred_element_type=jnp.float32) + bz_ref[...]

    # recompute max-pool argmax (first-max tie break, matches jnp.argmax)
    z = z_ref[0]                                   # (n_rows, ps*ps*cz) f32
    nph = z.shape[1] // cz
    pooled = z[:, 0:cz]
    arg = jnp.zeros(pooled.shape, jnp.int32)
    for p in range(1, nph):
        cand = z[:, p * cz:(p + 1) * cz]
        take = cand > pooled
        pooled = jnp.where(take, cand, pooled)
        arg = jnp.where(take, p, arg)

    # MaxUnpool2d scatter + residual add into the lane-packed (dense) output
    for p in range(nph):
        zout_ref[0, :, pl.ds(p * cz, cz)] = (
            z[:, p * cz:(p + 1) * cz] + jnp.where(arg == p, convz, 0.0))


# --------------------------------- wrapper ---------------------------------
def frru_forward(z, y, params):
    """z: (B, Cz, H, W) f32 NCHW, y: (B, Cy, Hp, Wp) f32 NCHW."""
    b, cz, h, w = z.shape
    _, cy, hp, wp = y.shape
    assert h // hp == w // wp, "pooling sizes for height and width are not equal!"
    ps = h // hp
    assert h == hp * ps and w == wp * ps
    assert cz == params["wz"].shape[0], "residual dimension not consistent!"
    cout = params["w2"].shape[0]
    cin1 = cz + cy
    n_rows = hp * wp
    nph = ps * ps
    padr = wp + 1                      # row padding covering every 3x3 tap offset

    f32, bf16 = jnp.float32, jnp.bfloat16

    # ------------- layout glue: NCHW -> lane-packed kernel layout -------------
    z_packed = (jnp.transpose(z, (0, 2, 3, 1))                 # (b, h, w, cz)
                .reshape(b, hp, ps, wp, ps, cz)
                .transpose(0, 1, 3, 2, 4, 5)                   # (b, hp, wp, i, j, cz)
                .reshape(b, n_rows, nph * cz))
    y3 = jnp.transpose(y, (0, 2, 3, 1)).reshape(b, n_rows, cy)

    def pack_conv_w(wgt, cin):
        # (Cout, Cin, 3, 3) -> (9*_KPAD, Cout) bf16, per-tap K zero-padded to 128
        taps = jnp.transpose(wgt, (2, 3, 1, 0)).reshape(9, cin, cout)
        taps = jnp.pad(taps, ((0, 0), (0, _KPAD - cin), (0, 0)))
        return taps.reshape(9 * _KPAD, cout).astype(bf16)

    w1p = pack_conv_w(params["w1"], cin1)
    w2p = pack_conv_w(params["w2"], cout)
    wzp = jnp.transpose(params["wz"][:, :, 0, 0], (1, 0)).astype(bf16)  # (cout, cz)
    row = lambda v: v.reshape(1, -1).astype(f32)

    grid = (b,)
    img_spec = lambda c: pl.BlockSpec((1, n_rows, c), lambda i: (i, 0, 0))
    bcast2 = lambda s: pl.BlockSpec(s, lambda i: (0, 0))
    stat_spec = pl.BlockSpec((1, 1, cout), lambda i: (i, 0, 0))
    stat_shape = jax.ShapeDtypeStruct((b, 1, cout), f32)
    scratch = [pltpu.VMEM((n_rows + 2 * padr, _KPAD), bf16)]

    # ---------- stage 1: max-pool + conv_fcn1 + BN1 partial statistics ----------
    acc1, s1, q1 = pl.pallas_call(
        functools.partial(_conv1_kernel, hp, wp, padr, cz),
        grid=grid,
        in_specs=[img_spec(nph * cz), img_spec(cy),
                  bcast2((9 * _KPAD, cout)), bcast2((1, cout))],
        out_specs=(img_spec(cout), stat_spec, stat_spec),
        out_shape=(jax.ShapeDtypeStruct((b, n_rows, cout), f32),
                   stat_shape, stat_shape),
        scratch_shapes=scratch,
        compiler_params=_COMPILER_PARAMS,
    )(z_packed, y3, w1p, row(params["b1"]))

    n_tot = b * n_rows

    def bn_affine(s, q, gamma, beta):
        mean = jnp.sum(s, axis=(0, 1)) / n_tot
        var = jnp.maximum(jnp.sum(q, axis=(0, 1)) / n_tot - mean * mean, 0.0)
        scale = gamma * lax.rsqrt(var + _BN_EPS)
        shift = beta - mean * scale
        return row(scale), row(shift)

    sc1, sh1 = bn_affine(s1, q1, params["g1"], params["be1"])

    # ---------- stage 2: BN1 + ReLU -> conv_fcn2 + BN2 partial statistics -------
    acc2, s2, q2 = pl.pallas_call(
        functools.partial(_conv2_kernel, hp, wp, padr),
        grid=grid,
        in_specs=[img_spec(cout), bcast2((1, cout)), bcast2((1, cout)),
                  bcast2((9 * _KPAD, cout)), bcast2((1, cout))],
        out_specs=(img_spec(cout), stat_spec, stat_spec),
        out_shape=(jax.ShapeDtypeStruct((b, n_rows, cout), f32),
                   stat_shape, stat_shape),
        scratch_shapes=scratch,
        compiler_params=_COMPILER_PARAMS,
    )(acc1, sc1, sh1, w2p, row(params["b2"]))

    sc2, sh2 = bn_affine(s2, q2, params["g2"], params["be2"])

    # ---------- stage 3: BN2 + ReLU -> convz_fcn + max-unpool + residual --------
    yout, zout = pl.pallas_call(
        functools.partial(_unpool_kernel, cz),
        grid=grid,
        in_specs=[img_spec(cout), bcast2((1, cout)), bcast2((1, cout)),
                  bcast2((cout, cz)), bcast2((1, cz)), img_spec(nph * cz)],
        out_specs=(img_spec(cout), img_spec(nph * cz)),
        out_shape=(jax.ShapeDtypeStruct((b, n_rows, cout), f32),
                   jax.ShapeDtypeStruct((b, n_rows, nph * cz), f32)),
        compiler_params=_COMPILER_PARAMS,
    )(acc2, sc2, sh2, wzp, row(params["bz"]), z_packed)

    # ------------- layout glue: kernel layout -> NCHW -------------
    z_out = (zout.reshape(b, hp, wp, ps, ps, cz)
             .transpose(0, 1, 3, 2, 4, 5)                      # (b, hp, i, wp, j, cz)
             .reshape(b, h, w, cz)
             .transpose(0, 3, 1, 2))
    y_out = yout.reshape(b, hp, wp, cout).transpose(0, 3, 1, 2)
    return z_out, y_out


# ----------------------- pure-JAX reference (NCHW, f32) -----------------------
def frru_reference(z, y, params):
    b, cz_ch, h, w = z.shape
    _, cy, hp, wp = y.shape
    ps = h // hp

    zwin = (z.reshape(b, cz_ch, hp, ps, wp, ps)
            .transpose(0, 1, 2, 4, 3, 5)
            .reshape(b, cz_ch, hp, wp, ps * ps))
    pooled = jnp.max(zwin, axis=-1)
    arg = jnp.argmax(zwin, axis=-1)
    cat = jnp.concatenate([pooled, y], axis=1)

    def conv(x, wgt, bias, pad):
        out = lax.conv_general_dilated(
            x, wgt, window_strides=(1, 1), padding=pad,
            dimension_numbers=("NCHW", "OIHW", "NCHW"),
            precision=lax.Precision.HIGHEST)
        return out + bias[None, :, None, None]

    def bn_relu(x, g, be):
        mean = jnp.mean(x, axis=(0, 2, 3), keepdims=True)
        var = jnp.mean((x - mean) ** 2, axis=(0, 2, 3), keepdims=True)
        xn = (x - mean) * lax.rsqrt(var + _BN_EPS)
        return jnp.maximum(xn * g[None, :, None, None] + be[None, :, None, None], 0.0)

    r1 = bn_relu(conv(cat, params["w1"], params["b1"], "SAME"),
                 params["g1"], params["be1"])
    r2 = bn_relu(conv(r1, params["w2"], params["b2"], "SAME"),
                 params["g2"], params["be2"])
    cvz = conv(r2, params["wz"], params["bz"], "VALID")

    onehot = (arg[..., None] == jnp.arange(ps * ps)).astype(z.dtype)
    scat = ((cvz[..., None] * onehot)
            .reshape(b, cz_ch, hp, wp, ps, ps)
            .transpose(0, 1, 2, 4, 3, 5)
            .reshape(b, cz_ch, h, w))
    return scat + z, r2


if __name__ == "__main__":
    key = jax.random.PRNGKey(0)
    B, Cz, H, W = 2, 32, 16, 16          # residual stream (32 channels: convz_fcn out)
    Cy, Hp, Wp = 16, 8, 8                # pooling stream (pool_size = 2)
    in_channel, out_channel = Cz + Cy, 32

    ks = jax.random.split(key, 12)
    z = jax.random.normal(ks[0], (B, Cz, H, W), jnp.float32)
    y = jax.random.normal(ks[1], (B, Cy, Hp, Wp), jnp.float32)
    params = dict(
        w1=0.1 * jax.random.normal(ks[2], (out_channel, in_channel, 3, 3), jnp.float32),
        b1=0.1 * jax.random.normal(ks[3], (out_channel,), jnp.float32),
        g1=1.0 + 0.1 * jax.random.normal(ks[4], (out_channel,), jnp.float32),
        be1=0.1 * jax.random.normal(ks[5], (out_channel,), jnp.float32),
        w2=0.1 * jax.random.normal(ks[6], (out_channel, out_channel, 3, 3), jnp.float32),
        b2=0.1 * jax.random.normal(ks[7], (out_channel,), jnp.float32),
        g2=1.0 + 0.1 * jax.random.normal(ks[8], (out_channel,), jnp.float32),
        be2=0.1 * jax.random.normal(ks[9], (out_channel,), jnp.float32),
        wz=0.1 * jax.random.normal(ks[10], (32, out_channel, 1, 1), jnp.float32),
        bz=0.1 * jax.random.normal(ks[11], (32,), jnp.float32),
    )

    z_out, y_out = jax.jit(frru_forward)(z, y, params)
    jax.block_until_ready((z_out, y_out))

    z_ref, y_ref_out = frru_reference(z, y, params)
    assert z_out.shape == (B, Cz, H, W)
    assert y_out.shape == (B, out_channel, Hp, Wp)
    # MXU operands are bf16 (f32 accumulation) -> compare at a bf16-level tolerance
    assert bool(jnp.allclose(z_out, z_ref, atol=5e-2, rtol=5e-2)), "z_out mismatch"
    assert bool(jnp.allclose(y_out, y_ref_out, atol=5e-2, rtol=5e-2)), "y_out mismatch"
    print("KERNEL_OK")
</pallas_src>

<mosaic_0001>
module attributes {stable_mosaic.version = 11 : i64} {
  func.func @_conv1_kernel(%arg0: i32, %arg1: memref<1x64x128xf32, #tpu.memory_space<vmem>>, %arg2: memref<1x64x16xf32, #tpu.memory_space<vmem>>, %arg3: memref<1152x32xbf16, #tpu.memory_space<vmem>>, %arg4: memref<1x32xf32, #tpu.memory_space<vmem>>, %arg5: memref<1x64x32xf32, #tpu.memory_space<vmem>>, %arg6: memref<1x1x32xf32, #tpu.memory_space<vmem>>, %arg7: memref<1x1x32xf32, #tpu.memory_space<vmem>>, %arg8: memref<82x128xbf16, #tpu.memory_space<vmem>>) attributes {dimension_semantics = [#tpu.dimension_semantics<parallel>], iteration_bounds = array<i64: 2>, scalar_prefetch = 0 : i64, scratch_operands = 1 : i64, tpu.core_type = #tpu.core_type<tc>, window_params = [{transform_indices = @transform_0, window_bounds = array<i64: 1, 64, 128>}, {transform_indices = @transform_1, window_bounds = array<i64: 1, 64, 16>}, {pipeline_mode = #tpu.pipeline_mode<synchronous>, transform_indices = @transform_2, window_bounds = array<i64: 1152, 32>}, {pipeline_mode = #tpu.pipeline_mode<synchronous>, transform_indices = @transform_3, window_bounds = array<i64: 1, 32>}, {transform_indices = @transform_4, window_bounds = array<i64: 1, 64, 32>}, {transform_indices = @transform_5, window_bounds = array<i64: 1, 1, 32>}, {transform_indices = @transform_6, window_bounds = array<i64: 1, 1, 32>}]} {
    %c0 = arith.constant 0 : index
    %c0_0 = arith.constant 0 : index
    %c0_1 = arith.constant 0 : index
    %0 = vector.load %arg1[%c0, %c0_0, %c0_1] : memref<1x64x128xf32, #tpu.memory_space<vmem>>, vector<1x64x128xf32>
    %1 = vector.shape_cast %0 : vector<1x64x128xf32> to vector<64x128xf32>
    %2 = vector.extract_strided_slice %1 {offsets = [0, 0], sizes = [64, 32], strides = [1, 1]} : vector<64x128xf32> to vector<64x32xf32>
    %3 = vector.extract_strided_slice %1 {offsets = [0, 32], sizes = [64, 32], strides = [1, 1]} : vector<64x128xf32> to vector<64x32xf32>
    %4 = arith.maximumf %2, %3 : vector<64x32xf32>
    %5 = vector.extract_strided_slice %1 {offsets = [0, 64], sizes = [64, 32], strides = [1, 1]} : vector<64x128xf32> to vector<64x32xf32>
    %6 = arith.maximumf %4, %5 : vector<64x32xf32>
    %7 = vector.extract_strided_slice %1 {offsets = [0, 96], sizes = [64, 32], strides = [1, 1]} : vector<64x128xf32> to vector<64x32xf32>
    %8 = arith.maximumf %6, %7 : vector<64x32xf32>
    %c0_2 = arith.constant 0 : index
    %c0_3 = arith.constant 0 : index
    %c0_4 = arith.constant 0 : index
    %9 = vector.load %arg2[%c0_2, %c0_3, %c0_4] : memref<1x64x16xf32, #tpu.memory_space<vmem>>, vector<1x64x16xf32>
    %10 = vector.shape_cast %9 : vector<1x64x16xf32> to vector<64x16xf32>
    %cst = arith.constant 0.000000e+00 : bf16
    %11 = vector.broadcast %cst : bf16 to vector<9x128xbf16>
    %c0_5 = arith.constant 0 : index
    %c0_6 = arith.constant 0 : index
    %12 = vector.load %arg8[%c0_5, %c0_6] : memref<82x128xbf16, #tpu.memory_space<vmem>>, vector<9x128xbf16>
    tpu.vector_store %arg8[%c0_5, %c0_6], %11 {strides = array<i32>} : memref<82x128xbf16, #tpu.memory_space<vmem>>, vector<9x128xbf16>,
    %c73 = arith.constant 73 : index
    %c0_7 = arith.constant 0 : index
    %13 = vector.load %arg8[%c73, %c0_7] : memref<82x128xbf16, #tpu.memory_space<vmem>>, vector<9x128xbf16>
    tpu.vector_store %arg8[%c73, %c0_7], %11 {strides = array<i32>} : memref<82x128xbf16, #tpu.memory_space<vmem>>, vector<9x128xbf16>,
    %14 = arith.truncf %8 : vector<64x32xf32> to vector<64x32xbf16>
    %c9 = arith.constant 9 : index
    %c0_8 = arith.constant 0 : index
    %15 = vector.load %arg8[%c9, %c0_8] : memref<82x128xbf16, #tpu.memory_space<vmem>>, vector<64x32xbf16>
    tpu.vector_store %arg8[%c9, %c0_8], %14 {strides = array<i32>} : memref<82x128xbf16, #tpu.memory_space<vmem>>, vector<64x32xbf16>,
    %16 = arith.truncf %10 : vector<64x16xf32> to vector<64x16xbf16>
    %c9_9 = arith.constant 9 : index
    %c32 = arith.constant 32 : index
    %17 = vector.load %arg8[%c9_9, %c32] : memref<82x128xbf16, #tpu.memory_space<vmem>>, vector<64x16xbf16>
    tpu.vector_store %arg8[%c9_9, %c32], %16 {strides = array<i32>} : memref<82x128xbf16, #tpu.memory_space<vmem>>, vector<64x16xbf16>,
    %cst_10 = arith.constant 0.000000e+00 : bf16
    %18 = vector.broadcast %cst_10 : bf16 to vector<64x80xbf16>
    %c9_11 = arith.constant 9 : index
    %c48 = arith.constant 48 : index
    %19 = vector.load %arg8[%c9_11, %c48] : memref<82x128xbf16, #tpu.memory_space<vmem>>, vector<64x80xbf16>
    tpu.vector_store %arg8[%c9_11, %c48], %18 {strides = array<i32>} : memref<82x128xbf16, #tpu.memory_space<vmem>>, vector<64x80xbf16>,
    %20 = tpu.iota {dimensions = array<i32: 0>} : vector<64x1xi32>
    %c8_i32 = arith.constant 8 : i32
    %c0_i32 = arith.constant 0 : i32
    %21 = arith.cmpi eq, %c8_i32, %c0_i32 : i32
    %c1_i32 = arith.constant 1 : i32
    %22 = arith.select %21, %c1_i32, %c8_i32 : i32
    %23 = vector.broadcast %22 : i32 to vector<64x1xi32>
    %24 = arith.remsi %20, %23 : vector<64x1xi32>
    %c0_i32_12 = arith.constant 0 : i32
    %25 = vector.broadcast %c0_i32_12 : i32 to vector<64x1xi32>
    %26 = arith.cmpi ne, %24, %25 : vector<64x1xi32>
    %c0_i32_13 = arith.constant 0 : i32
    %27 = vector.broadcast %c0_i32_13 : i32 to vector<64x1xi32>
    %28 = arith.cmpi slt, %24, %27 : vector<64x1xi32>
    %c0_i32_14 = arith.constant 0 : i32
    %29 = arith.cmpi slt, %22, %c0_i32_14 : i32
    %30 = vector.broadcast %29 : i1 to vector<64x1xi1>
    %31 = vector.broadcast %30 : vector<64x1xi1> to vector<64x1xi1>
    %32 = arith.xori %28, %31 : vector<64x1xi1>
    %33 = arith.andi %32, %26 : vector<64x1xi1>
    %34 = vector.broadcast %22 : i32 to vector<64x1xi32>
    %35 = arith.addi %24, %34 : vector<64x1xi32>
    %36 = arith.select %33, %35, %24 : vector<64x1xi1>, vector<64x1xi32>
    %c0_i32_15 = arith.constant 0 : i32
    %37 = vector.broadcast %c0_i32_15 : i32 to vector<64x1xi32>
    %38 = arith.cmpi ne, %36, %37 : vector<64x1xi32>
    %c7_i32 = arith.constant 7 : i32
    %39 = vector.broadcast %c7_i32 : i32 to vector<64x1xi32>
    %40 = arith.cmpi ne, %36, %39 : vector<64x1xi32>
    %c0_16 = arith.constant 0 : index
    %c0_17 = arith.constant 0 : index
    %41 = vector.load %arg8[%c0_16, %c0_17] : memref<82x128xbf16, #tpu.memory_space<vmem>>, vector<64x128xbf16>
    %cst_18 = arith.constant 0.000000e+00 : bf16
    %42 = vector.broadcast %cst_18 : bf16 to vector<64x128xbf16>
    %43 = vector.shape_cast %38 : vector<64x1xi1> to vector<64x1xi1>
    %44 = vector.broadcast %43 : vector<64x1xi1> to vector<64x128xi1>
    %45 = arith.select %44, %41, %42 : vector<64x128xi1>, vector<64x128xbf16>
    %c1 = arith.constant 1 : index
    %c0_19 = arith.constant 0 : index
    %46 = vector.load %arg8[%c1, %c0_19] : memref<82x128xbf16, #tpu.memory_space<vmem>>, vector<64x128xbf16>
    %c2 = arith.constant 2 : index
    %c0_20 = arith.constant 0 : index
    %47 = vector.load %arg8[%c2, %c0_20] : memref<82x128xbf16, #tpu.memory_space<vmem>>, vector<64x128xbf16>
    %cst_21 = arith.constant 0.000000e+00 : bf16
    %48 = vector.broadcast %cst_21 : bf16 to vector<64x128xbf16>
    %49 = vector.shape_cast %40 : vector<64x1xi1> to vector<64x1xi1>
    %50 = vector.broadcast %49 : vector<64x1xi1> to vector<64x128xi1>
    %51 = arith.select %50, %47, %48 : vector<64x128xi1>, vector<64x128xbf16>
    %c8 = arith.constant 8 : index
    %c0_22 = arith.constant 0 : index
    %52 = vector.load %arg8[%c8, %c0_22] : memref<82x128xbf16, #tpu.memory_space<vmem>>, vector<64x128xbf16>
    %cst_23 = arith.constant 0.000000e+00 : bf16
    %53 = vector.broadcast %cst_23 : bf16 to vector<64x128xbf16>
    %54 = vector.shape_cast %38 : vector<64x1xi1> to vector<64x1xi1>
    %55 = vector.broadcast %54 : vector<64x1xi1> to vector<64x128xi1>
    %56 = arith.select %55, %52, %53 : vector<64x128xi1>, vector<64x128xbf16>
    %c9_24 = arith.constant 9 : index
    %c0_25 = arith.constant 0 : index
    %57 = vector.load %arg8[%c9_24, %c0_25] : memref<82x128xbf16, #tpu.memory_space<vmem>>, vector<64x128xbf16>
    %c10 = arith.constant 10 : index
    %c0_26 = arith.constant 0 : index
    %58 = vector.load %arg8[%c10, %c0_26] : memref<82x128xbf16, #tpu.memory_space<vmem>>, vector<64x128xbf16>
    %cst_27 = arith.constant 0.000000e+00 : bf16
    %59 = vector.broadcast %cst_27 : bf16 to vector<64x128xbf16>
    %60 = vector.shape_cast %40 : vector<64x1xi1> to vector<64x1xi1>
    %61 = vector.broadcast %60 : vector<64x1xi1> to vector<64x128xi1>
    %62 = arith.select %61, %58, %59 : vector<64x128xi1>, vector<64x128xbf16>
    %c16 = arith.constant 16 : index
    %c0_28 = arith.constant 0 : index
    %63 = vector.load %arg8[%c16, %c0_28] : memref<82x128xbf16, #tpu.memory_space<vmem>>, vector<64x128xbf16>
    %cst_29 = arith.constant 0.000000e+00 : bf16
    %64 = vector.broadcast %cst_29 : bf16 to vector<64x128xbf16>
    %65 = vector.shape_cast %38 : vector<64x1xi1> to vector<64x1xi1>
    %66 = vector.broadcast %65 : vector<64x1xi1> to vector<64x128xi1>
    %67 = arith.select %66, %63, %64 : vector<64x128xi1>, vector<64x128xbf16>
    %c17 = arith.constant 17 : index
    %c0_30 = arith.constant 0 : index
    %68 = vector.load %arg8[%c17, %c0_30] : memref<82x128xbf16, #tpu.memory_space<vmem>>, vector<64x128xbf16>
    %c18 = arith.constant 18 : index
    %c0_31 = arith.constant 0 : index
    %69 = vector.load %arg8[%c18, %c0_31] : memref<82x128xbf16, #tpu.memory_space<vmem>>, vector<64x128xbf16>
    %cst_32 = arith.constant 0.000000e+00 : bf16
    %70 = vector.broadcast %cst_32 : bf16 to vector<64x128xbf16>
    %71 = vector.shape_cast %40 : vector<64x1xi1> to vector<64x1xi1>
    %72 = vector.broadcast %71 : vector<64x1xi1> to vector<64x128xi1>
    %73 = arith.select %72, %69, %70 : vector<64x128xi1>, vector<64x128xbf16>
    %74 = tpu.concatenate %45, %46, %51, %56, %57, %62, %67, %68, %73 in 1 : vector<64x128xbf16>, vector<64x128xbf16>, vector<64x128xbf16>, vector<64x128xbf16>, vector<64x128xbf16>, vector<64x128xbf16>, vector<64x128xbf16>, vector<64x128xbf16>, vector<64x128xbf16> -> vector<64x1152xbf16>
    %c0_33 = arith.constant 0 : index
    %c0_34 = arith.constant 0 : index
    %75 = vector.load %arg3[%c0_33, %c0_34] : memref<1152x32xbf16, #tpu.memory_space<vmem>>, vector<1152x32xbf16>
    %cst_35 = arith.constant dense<0.000000e+00> : vector<64x32xf32>
    %76 = tpu.matmul %74, %75, %cst_35 {dimension_numbers = #tpu.dot_dimension_numbers<[1], [0], [0], [1], [0, 0, 1, 1], [], []>} : vector<64x1152xbf16>, vector<1152x32xbf16>, vector<64x32xf32> -> vector<64x32xf32>
    %c0_36 = arith.constant 0 : index
    %c0_37 = arith.constant 0 : index
    %77 = vector.load %arg4[%c0_36, %c0_37] : memref<1x32xf32, #tpu.memory_space<vmem>>, vector<1x32xf32>
    %78 = vector.broadcast %77 : vector<1x32xf32> to vector<64x32xf32>
    %79 = arith.addf %76, %78 : vector<64x32xf32>
    %c0_38 = arith.constant 0 : index
    %c0_39 = arith.constant 0 : index
    %c0_40 = arith.constant 0 : index
    %80 = vector.load %arg5[%c0_38, %c0_39, %c0_40] : memref<1x64x32xf32, #tpu.memory_space<vmem>>, vector<1x64x32xf32>
    %81 = vector.shape_cast %80 : vector<1x64x32xf32> to vector<64x32xf32>
    %82 = vector.shape_cast %79 : vector<64x32xf32> to vector<1x64x32xf32>
    tpu.vector_store %arg5[%c0_38, %c0_39, %c0_40], %82 {strides = array<i32>} : memref<1x64x32xf32, #tpu.memory_space<vmem>>, vector<1x64x32xf32>,
    %cst_41 = arith.constant dense<0.000000e+00> : vector<32xf32>
    %83 = vector.multi_reduction <add>, %79, %cst_41 [0] : vector<64x32xf32> to vector<32xf32>
    %84 = vector.shape_cast %83 : vector<32xf32> to vector<1x32xf32>
    %c0_42 = arith.constant 0 : index
    %c0_43 = arith.constant 0 : index
    %c0_44 = arith.constant 0 : index
    %85 = vector.load %arg6[%c0_42, %c0_43, %c0_44] : memref<1x1x32xf32, #tpu.memory_space<vmem>>, vector<1x1x32xf32>
    %86 = vector.shape_cast %85 : vector<1x1x32xf32> to vector<1x32xf32>
    %87 = vector.shape_cast %84 : vector<1x32xf32> to vector<1x1x32xf32>
    tpu.vector_store %arg6[%c0_42, %c0_43, %c0_44], %87 {strides = array<i32>} : memref<1x1x32xf32, #tpu.memory_space<vmem>>, vector<1x1x32xf32>,
    %88 = arith.mulf %79, %79 : vector<64x32xf32>
    %cst_45 = arith.constant dense<0.000000e+00> : vector<32xf32>
    %89 = vector.multi_reduction <add>, %88, %cst_45 [0] : vector<64x32xf32> to vector<32xf32>
    %90 = vector.shape_cast %89 : vector<32xf32> to vector<1x32xf32>
    %c0_46 = arith.constant 0 : index
    %c0_47 = arith.constant 0 : index
    %c0_48 = arith.constant 0 : index
    %91 = vector.load %arg7[%c0_46, %c0_47, %c0_48] : memref<1x1x32xf32, #tpu.memory_space<vmem>>, vector<1x1x32xf32>
    %92 = vector.shape_cast %91 : vector<1x1x32xf32> to vector<1x32xf32>
    %93 = vector.shape_cast %90 : vector<1x32xf32> to vector<1x1x32xf32>
    tpu.vector_store %arg7[%c0_46, %c0_47, %c0_48], %93 {strides = array<i32>} : memref<1x1x32xf32, #tpu.memory_space<vmem>>, vector<1x1x32xf32>,
    return
  }
  func.func @transform_0(%arg0: i32) -> (i32, i32, i32) {
    %c0_i32 = arith.constant 0 : i32
    %c0_i32_0 = arith.constant 0 : i32
    %c0_i32_1 = arith.constant 0 : i32
    return %arg0, %c0_i32, %c0_i32_0 : i32, i32, i32
  }
  func.func @transform_1(%arg0: i32) -> (i32, i32, i32) {
    %c0_i32 = arith.constant 0 : i32
    %c0_i32_0 = arith.constant 0 : i32
    %c0_i32_1 = arith.constant 0 : i32
    return %arg0, %c0_i32, %c0_i32_0 : i32, i32, i32
  }
  func.func @transform_2(%arg0: i32) -> (i32, i32) {
    %c0_i32 = arith.constant 0 : i32
    %c0_i32_0 = arith.constant 0 : i32
    %c0_i32_1 = arith.constant 0 : i32
    return %c0_i32, %c0_i32_0 : i32, i32
  }
  func.func @transform_3(%arg0: i32) -> (i32, i32) {
    %c0_i32 = arith.constant 0 : i32
    %c0_i32_0 = arith.constant 0 : i32
    %c0_i32_1 = arith.constant 0 : i32
    return %c0_i32, %c0_i32_0 : i32, i32
  }
  func.func @transform_4(%arg0: i32) -> (i32, i32, i32) {
    %c0_i32 = arith.constant 0 : i32
    %c0_i32_0 = arith.constant 0 : i32
    %c0_i32_1 = arith.constant 0 : i32
    return %arg0, %c0_i32, %c0_i32_0 : i32, i32, i32
  }
  func.func @transform_5(%arg0: i32) -> (i32, i32, i32) {
    %c0_i32 = arith.constant 0 : i32
    %c0_i32_0 = arith.constant 0 : i32
    %c0_i32_1 = arith.constant 0 : i32
    return %arg0, %c0_i32, %c0_i32_0 : i32, i32, i32
  }
  func.func @transform_6(%arg0: i32) -> (i32, i32, i32) {
    %c0_i32 = arith.constant 0 : i32
    %c0_i32_0 = arith.constant 0 : i32
    %c0_i32_1 = arith.constant 0 : i32
    return %arg0, %c0_i32, %c0_i32_0 : i32, i32, i32
  }
}

module attributes {stable_mosaic.version = 11 : i64} {
  func.func @_conv2_kernel(%arg0: i32, %arg1: memref<1x64x32xf32, #tpu.memory_space<vmem>>, %arg2: memref<1x32xf32, #tpu.memory_space<vmem>>, %arg3: memref<1x32xf32, #tpu.memory_space<vmem>>, %arg4: memref<1152x32xbf16, #tpu.memory_space<vmem>>, %arg5: memref<1x32xf32, #tpu.memory_space<vmem>>, %arg6: memref<1x64x32xf32, #tpu.memory_space<vmem>>, %arg7: memref<1x1x32xf32, #tpu.memory_space<vmem>>, %arg8: memref<1x1x32xf32, #tpu.memory_space<vmem>>, %arg9: memref<82x128xbf16, #tpu.memory_space<vmem>>) attributes {dimension_semantics = [#tpu.dimension_semantics<parallel>], iteration_bounds = array<i64: 2>, scalar_prefetch = 0 : i64, scratch_operands = 1 : i64, tpu.core_type = #tpu.core_type<tc>, window_params = [{transform_indices = @transform_0, window_bounds = array<i64: 1, 64, 32>}, {pipeline_mode = #tpu.pipeline_mode<synchronous>, transform_indices = @transform_1, window_bounds = array<i64: 1, 32>}, {pipeline_mode = #tpu.pipeline_mode<synchronous>, transform_indices = @transform_2, window_bounds = array<i64: 1, 32>}, {pipeline_mode = #tpu.pipeline_mode<synchronous>, transform_indices = @transform_3, window_bounds = array<i64: 1152, 32>}, {pipeline_mode = #tpu.pipeline_mode<synchronous>, transform_indices = @transform_4, window_bounds = array<i64: 1, 32>}, {transform_indices = @transform_5, window_bounds = array<i64: 1, 64, 32>}, {transform_indices = @transform_6, window_bounds = array<i64: 1, 1, 32>}, {transform_indices = @transform_7, window_bounds = array<i64: 1, 1, 32>}]} {
    %c0 = arith.constant 0 : index
    %c0_0 = arith.constant 0 : index
    %c0_1 = arith.constant 0 : index
    %0 = vector.load %arg1[%c0, %c0_0, %c0_1] : memref<1x64x32xf32, #tpu.memory_space<vmem>>, vector<1x64x32xf32>
    %1 = vector.shape_cast %0 : vector<1x64x32xf32> to vector<64x32xf32>
    %c0_2 = arith.constant 0 : index
    %c0_3 = arith.constant 0 : index
    %2 = vector.load %arg2[%c0_2, %c0_3] : memref<1x32xf32, #tpu.memory_space<vmem>>, vector<1x32xf32>
    %3 = vector.broadcast %2 : vector<1x32xf32> to vector<64x32xf32>
    %4 = arith.mulf %1, %3 : vector<64x32xf32>
    %c0_4 = arith.constant 0 : index
    %c0_5 = arith.constant 0 : index
    %5 = vector.load %arg3[%c0_4, %c0_5] : memref<1x32xf32, #tpu.memory_space<vmem>>, vector<1x32xf32>
    %6 = vector.broadcast %5 : vector<1x32xf32> to vector<64x32xf32>
    %7 = arith.addf %4, %6 : vector<64x32xf32>
    %cst = arith.constant 0.000000e+00 : f32
    %8 = vector.broadcast %cst : f32 to vector<64x32xf32>
    %9 = arith.maximumf %7, %8 : vector<64x32xf32>
    %cst_6 = arith.constant 0.000000e+00 : bf16
    %10 = vector.broadcast %cst_6 : bf16 to vector<9x128xbf16>
    %c0_7 = arith.constant 0 : index
    %c0_8 = arith.constant 0 : index
    %11 = vector.load %arg9[%c0_7, %c0_8] : memref<82x128xbf16, #tpu.memory_space<vmem>>, vector<9x128xbf16>
    tpu.vector_store %arg9[%c0_7, %c0_8], %10 {strides = array<i32>} : memref<82x128xbf16, #tpu.memory_space<vmem>>, vector<9x128xbf16>,
    %c73 = arith.constant 73 : index
    %c0_9 = arith.constant 0 : index
    %12 = vector.load %arg9[%c73, %c0_9] : memref<82x128xbf16, #tpu.memory_space<vmem>>, vector<9x128xbf16>
    tpu.vector_store %arg9[%c73, %c0_9], %10 {strides = array<i32>} : memref<82x128xbf16, #tpu.memory_space<vmem>>, vector<9x128xbf16>,
    %13 = arith.truncf %9 : vector<64x32xf32> to vector<64x32xbf16>
    %c9 = arith.constant 9 : index
    %c0_10 = arith.constant 0 : index
    %14 = vector.load %arg9[%c9, %c0_10] : memref<82x128xbf16, #tpu.memory_space<vmem>>, vector<64x32xbf16>
    tpu.vector_store %arg9[%c9, %c0_10], %13 {strides = array<i32>} : memref<82x128xbf16, #tpu.memory_space<vmem>>, vector<64x32xbf16>,
    %cst_11 = arith.constant 0.000000e+00 : bf16
    %15 = vector.broadcast %cst_11 : bf16 to vector<64x96xbf16>
    %c9_12 = arith.constant 9 : index
    %c32 = arith.constant 32 : index
    %16 = vector.load %arg9[%c9_12, %c32] : memref<82x128xbf16, #tpu.memory_space<vmem>>, vector<64x96xbf16>
    tpu.vector_store %arg9[%c9_12, %c32], %15 {strides = array<i32>} : memref<82x128xbf16, #tpu.memory_space<vmem>>, vector<64x96xbf16>,
    %17 = tpu.iota {dimensions = array<i32: 0>} : vector<64x1xi32>
    %c8_i32 = arith.constant 8 : i32
    %c0_i32 = arith.constant 0 : i32
    %18 = arith.cmpi eq, %c8_i32, %c0_i32 : i32
    %c1_i32 = arith.constant 1 : i32
    %19 = arith.select %18, %c1_i32, %c8_i32 : i32
    %20 = vector.broadcast %19 : i32 to vector<64x1xi32>
    %21 = arith.remsi %17, %20 : vector<64x1xi32>
    %c0_i32_13 = arith.constant 0 : i32
    %22 = vector.broadcast %c0_i32_13 : i32 to vector<64x1xi32>
    %23 = arith.cmpi ne, %21, %22 : vector<64x1xi32>
    %c0_i32_14 = arith.constant 0 : i32
    %24 = vector.broadcast %c0_i32_14 : i32 to vector<64x1xi32>
    %25 = arith.cmpi slt, %21, %24 : vector<64x1xi32>
    %c0_i32_15 = arith.constant 0 : i32
    %26 = arith.cmpi slt, %19, %c0_i32_15 : i32
    %27 = vector.broadcast %26 : i1 to vector<64x1xi1>
    %28 = vector.broadcast %27 : vector<64x1xi1> to vector<64x1xi1>
    %29 = arith.xori %25, %28 : vector<64x1xi1>
    %30 = arith.andi %29, %23 : vector<64x1xi1>
    %31 = vector.broadcast %19 : i32 to vector<64x1xi32>
    %32 = arith.addi %21, %31 : vector<64x1xi32>
    %33 = arith.select %30, %32, %21 : vector<64x1xi1>, vector<64x1xi32>
    %c0_i32_16 = arith.constant 0 : i32
    %34 = vector.broadcast %c0_i32_16 : i32 to vector<64x1xi32>
    %35 = arith.cmpi ne, %33, %34 : vector<64x1xi32>
    %c7_i32 = arith.constant 7 : i32
    %36 = vector.broadcast %c7_i32 : i32 to vector<64x1xi32>
    %37 = arith.cmpi ne, %33, %36 : vector<64x1xi32>
    %c0_17 = arith.constant 0 : index
    %c0_18 = arith.constant 0 : index
    %38 = vector.load %arg9[%c0_17, %c0_18] : memref<82x128xbf16, #tpu.memory_space<vmem>>, vector<64x128xbf16>
    %cst_19 = arith.constant 0.000000e+00 : bf16
    %39 = vector.broadcast %cst_19 : bf16 to vector<64x128xbf16>
    %40 = vector.shape_cast %35 : vector<64x1xi1> to vector<64x1xi1>
    %41 = vector.broadcast %40 : vector<64x1xi1> to vector<64x128xi1>
    %42 = arith.select %41, %38, %39 : vector<64x128xi1>, vector<64x128xbf16>
    %c1 = arith.constant 1 : index
    %c0_20 = arith.constant 0 : index
    %43 = vector.load %arg9[%c1, %c0_20] : memref<82x128xbf16, #tpu.memory_space<vmem>>, vector<64x128xbf16>
    %c2 = arith.constant 2 : index
    %c0_21 = arith.constant 0 : index
    %44 = vector.load %arg9[%c2, %c0_21] : memref<82x128xbf16, #tpu.memory_space<vmem>>, vector<64x128xbf16>
    %cst_22 = arith.constant 0.000000e+00 : bf16
    %45 = vector.broadcast %cst_22 : bf16 to vector<64x128xbf16>
    %46 = vector.shape_cast %37 : vector<64x1xi1> to vector<64x1xi1>
    %47 = vector.broadcast %46 : vector<64x1xi1> to vector<64x128xi1>
    %48 = arith.select %47, %44, %45 : vector<64x128xi1>, vector<64x128xbf16>
    %c8 = arith.constant 8 : index
    %c0_23 = arith.constant 0 : index
    %49 = vector.load %arg9[%c8, %c0_23] : memref<82x128xbf16, #tpu.memory_space<vmem>>, vector<64x128xbf16>
    %cst_24 = arith.constant 0.000000e+00 : bf16
    %50 = vector.broadcast %cst_24 : bf16 to vector<64x128xbf16>
    %51 = vector.shape_cast %35 : vector<64x1xi1> to vector<64x1xi1>
    %52 = vector.broadcast %51 : vector<64x1xi1> to vector<64x128xi1>
    %53 = arith.select %52, %49, %50 : vector<64x128xi1>, vector<64x128xbf16>
    %c9_25 = arith.constant 9 : index
    %c0_26 = arith.constant 0 : index
    %54 = vector.load %arg9[%c9_25, %c0_26] : memref<82x128xbf16, #tpu.memory_space<vmem>>, vector<64x128xbf16>
    %c10 = arith.constant 10 : index
    %c0_27 = arith.constant 0 : index
    %55 = vector.load %arg9[%c10, %c0_27] : memref<82x128xbf16, #tpu.memory_space<vmem>>, vector<64x128xbf16>
    %cst_28 = arith.constant 0.000000e+00 : bf16
    %56 = vector.broadcast %cst_28 : bf16 to vector<64x128xbf16>
    %57 = vector.shape_cast %37 : vector<64x1xi1> to vector<64x1xi1>
    %58 = vector.broadcast %57 : vector<64x1xi1> to vector<64x128xi1>
    %59 = arith.select %58, %55, %56 : vector<64x128xi1>, vector<64x128xbf16>
    %c16 = arith.constant 16 : index
    %c0_29 = arith.constant 0 : index
    %60 = vector.load %arg9[%c16, %c0_29] : memref<82x128xbf16, #tpu.memory_space<vmem>>, vector<64x128xbf16>
    %cst_30 = arith.constant 0.000000e+00 : bf16
    %61 = vector.broadcast %cst_30 : bf16 to vector<64x128xbf16>
    %62 = vector.shape_cast %35 : vector<64x1xi1> to vector<64x1xi1>
    %63 = vector.broadcast %62 : vector<64x1xi1> to vector<64x128xi1>
    %64 = arith.select %63, %60, %61 : vector<64x128xi1>, vector<64x128xbf16>
    %c17 = arith.constant 17 : index
    %c0_31 = arith.constant 0 : index
    %65 = vector.load %arg9[%c17, %c0_31] : memref<82x128xbf16, #tpu.memory_space<vmem>>, vector<64x128xbf16>
    %c18 = arith.constant 18 : index
    %c0_32 = arith.constant 0 : index
    %66 = vector.load %arg9[%c18, %c0_32] : memref<82x128xbf16, #tpu.memory_space<vmem>>, vector<64x128xbf16>
    %cst_33 = arith.constant 0.000000e+00 : bf16
    %67 = vector.broadcast %cst_33 : bf16 to vector<64x128xbf16>
    %68 = vector.shape_cast %37 : vector<64x1xi1> to vector<64x1xi1>
    %69 = vector.broadcast %68 : vector<64x1xi1> to vector<64x128xi1>
    %70 = arith.select %69, %66, %67 : vector<64x128xi1>, vector<64x128xbf16>
    %71 = tpu.concatenate %42, %43, %48, %53, %54, %59, %64, %65, %70 in 1 : vector<64x128xbf16>, vector<64x128xbf16>, vector<64x128xbf16>, vector<64x128xbf16>, vector<64x128xbf16>, vector<64x128xbf16>, vector<64x128xbf16>, vector<64x128xbf16>, vector<64x128xbf16> -> vector<64x1152xbf16>
    %c0_34 = arith.constant 0 : index
    %c0_35 = arith.constant 0 : index
    %72 = vector.load %arg4[%c0_34, %c0_35] : memref<1152x32xbf16, #tpu.memory_space<vmem>>, vector<1152x32xbf16>
    %cst_36 = arith.constant dense<0.000000e+00> : vector<64x32xf32>
    %73 = tpu.matmul %71, %72, %cst_36 {dimension_numbers = #tpu.dot_dimension_numbers<[1], [0], [0], [1], [0, 0, 1, 1], [], []>} : vector<64x1152xbf16>, vector<1152x32xbf16>, vector<64x32xf32> -> vector<64x32xf32>
    %c0_37 = arith.constant 0 : index
    %c0_38 = arith.constant 0 : index
    %74 = vector.load %arg5[%c0_37, %c0_38] : memref<1x32xf32, #tpu.memory_space<vmem>>, vector<1x32xf32>
    %75 = vector.broadcast %74 : vector<1x32xf32> to vector<64x32xf32>
    %76 = arith.addf %73, %75 : vector<64x32xf32>
    %c0_39 = arith.constant 0 : index
    %c0_40 = arith.constant 0 : index
    %c0_41 = arith.constant 0 : index
    %77 = vector.load %arg6[%c0_39, %c0_40, %c0_41] : memref<1x64x32xf32, #tpu.memory_space<vmem>>, vector<1x64x32xf32>
    %78 = vector.shape_cast %77 : vector<1x64x32xf32> to vector<64x32xf32>
    %79 = vector.shape_cast %76 : vector<64x32xf32> to vector<1x64x32xf32>
    tpu.vector_store %arg6[%c0_39, %c0_40, %c0_41], %79 {strides = array<i32>} : memref<1x64x32xf32, #tpu.memory_space<vmem>>, vector<1x64x32xf32>,
    %cst_42 = arith.constant dense<0.000000e+00> : vector<32xf32>
    %80 = vector.multi_reduction <add>, %76, %cst_42 [0] : vector<64x32xf32> to vector<32xf32>
    %81 = vector.shape_cast %80 : vector<32xf32> to vector<1x32xf32>
    %c0_43 = arith.constant 0 : index
    %c0_44 = arith.constant 0 : index
    %c0_45 = arith.constant 0 : index
    %82 = vector.load %arg7[%c0_43, %c0_44, %c0_45] : memref<1x1x32xf32, #tpu.memory_space<vmem>>, vector<1x1x32xf32>
    %83 = vector.shape_cast %82 : vector<1x1x32xf32> to vector<1x32xf32>
    %84 = vector.shape_cast %81 : vector<1x32xf32> to vector<1x1x32xf32>
    tpu.vector_store %arg7[%c0_43, %c0_44, %c0_45], %84 {strides = array<i32>} : memref<1x1x32xf32, #tpu.memory_space<vmem>>, vector<1x1x32xf32>,
    %85 = arith.mulf %76, %76 : vector<64x32xf32>
    %cst_46 = arith.constant dense<0.000000e+00> : vector<32xf32>
    %86 = vector.multi_reduction <add>, %85, %cst_46 [0] : vector<64x32xf32> to vector<32xf32>
    %87 = vector.shape_cast %86 : vector<32xf32> to vector<1x32xf32>
    %c0_47 = arith.constant 0 : index
    %c0_48 = arith.constant 0 : index
    %c0_49 = arith.constant 0 : index
    %88 = vector.load %arg8[%c0_47, %c0_48, %c0_49] : memref<1x1x32xf32, #tpu.memory_space<vmem>>, vector<1x1x32xf32>
    %89 = vector.shape_cast %88 : vector<1x1x32xf32> to vector<1x32xf32>
    %90 = vector.shape_cast %87 : vector<1x32xf32> to vector<1x1x32xf32>
    tpu.vector_store %arg8[%c0_47, %c0_48, %c0_49], %90 {strides = array<i32>} : memref<1x1x32xf32, #tpu.memory_space<vmem>>, vector<1x1x32xf32>,
    return
  }
  func.func @transform_0(%arg0: i32) -> (i32, i32, i32) {
    %c0_i32 = arith.constant 0 : i32
    %c0_i32_0 = arith.constant 0 : i32
    %c0_i32_1 = arith.constant 0 : i32
    return %arg0, %c0_i32, %c0_i32_0 : i32, i32, i32
  }
  func.func @transform_1(%arg0: i32) -> (i32, i32) {
    %c0_i32 = arith.constant 0 : i32
    %c0_i32_0 = arith.constant 0 : i32
    %c0_i32_1 = arith.constant 0 : i32
    return %c0_i32, %c0_i32_0 : i32, i32
  }
  func.func @transform_2(%arg0: i32) -> (i32, i32) {
    %c0_i32 = arith.constant 0 : i32
    %c0_i32_0 = arith.constant 0 : i32
    %c0_i32_1 = arith.constant 0 : i32
    return %c0_i32, %c0_i32_0 : i32, i32
  }
  func.func @transform_3(%arg0: i32) -> (i32, i32) {
    %c0_i32 = arith.constant 0 : i32
    %c0_i32_0 = arith.constant 0 : i32
    %c0_i32_1 = arith.constant 0 : i32
    return %c0_i32, %c0_i32_0 : i32, i32
  }
  func.func @transform_4(%arg0: i32) -> (i32, i32) {
    %c0_i32 = arith.constant 0 : i32
    %c0_i32_0 = arith.constant 0 : i32
    %c0_i32_1 = arith.constant 0 : i32
    return %c0_i32, %c0_i32_0 : i32, i32
  }
  func.func @transform_5(%arg0: i32) -> (i32, i32, i32) {
    %c0_i32 = arith.constant 0 : i32
    %c0_i32_0 = arith.constant 0 : i32
    %c0_i32_1 = arith.constant 0 : i32
    return %arg0, %c0_i32, %c0_i32_0 : i32, i32, i32
  }
  func.func @transform_6(%arg0: i32) -> (i32, i32, i32) {
    %c0_i32 = arith.constant 0 : i32
    %c0_i32_0 = arith.constant 0 : i32
    %c0_i32_1 = arith.constant 0 : i32
    return %arg0, %c0_i32, %c0_i32_0 : i32, i32, i32
  }
  func.func @transform_7(%arg0: i32) -> (i32, i32, i32) {
    %c0_i32 = arith.constant 0 : i32
    %c0_i32_0 = arith.constant 0 : i32
    %c0_i32_1 = arith.constant 0 : i32
    return %arg0, %c0_i32, %c0_i32_0 : i32, i32, i32
  }
}

module attributes {stable_mosaic.version = 11 : i64} {
  func.func @_unpool_kernel(%arg0: i32, %arg1: memref<1x64x32xf32, #tpu.memory_space<vmem>>, %arg2: memref<1x32xf32, #tpu.memory_space<vmem>>, %arg3: memref<1x32xf32, #tpu.memory_space<vmem>>, %arg4: memref<32x32xbf16, #tpu.memory_space<vmem>>, %arg5: memref<1x32xf32, #tpu.memory_space<vmem>>, %arg6: memref<1x64x128xf32, #tpu.memory_space<vmem>>, %arg7: memref<1x64x32xf32, #tpu.memory_space<vmem>>, %arg8: memref<1x64x128xf32, #tpu.memory_space<vmem>>) attributes {dimension_semantics = [#tpu.dimension_semantics<parallel>], iteration_bounds = array<i64: 2>, scalar_prefetch = 0 : i64, scratch_operands = 0 : i64, tpu.core_type = #tpu.core_type<tc>, window_params = [{transform_indices = @transform_0, window_bounds = array<i64: 1, 64, 32>}, {pipeline_mode = #tpu.pipeline_mode<synchronous>, transform_indices = @transform_1, window_bounds = array<i64: 1, 32>}, {pipeline_mode = #tpu.pipeline_mode<synchronous>, transform_indices = @transform_2, window_bounds = array<i64: 1, 32>}, {pipeline_mode = #tpu.pipeline_mode<synchronous>, transform_indices = @transform_3, window_bounds = array<i64: 32, 32>}, {pipeline_mode = #tpu.pipeline_mode<synchronous>, transform_indices = @transform_4, window_bounds = array<i64: 1, 32>}, {transform_indices = @transform_5, window_bounds = array<i64: 1, 64, 128>}, {transform_indices = @transform_6, window_bounds = array<i64: 1, 64, 32>}, {transform_indices = @transform_7, window_bounds = array<i64: 1, 64, 128>}]} {
    %c0 = arith.constant 0 : index
    %c0_0 = arith.constant 0 : index
    %c0_1 = arith.constant 0 : index
    %0 = vector.load %arg1[%c0, %c0_0, %c0_1] : memref<1x64x32xf32, #tpu.memory_space<vmem>>, vector<1x64x32xf32>
    %1 = vector.shape_cast %0 : vector<1x64x32xf32> to vector<64x32xf32>
    %c0_2 = arith.constant 0 : index
    %c0_3 = arith.constant 0 : index
    %2 = vector.load %arg2[%c0_2, %c0_3] : memref<1x32xf32, #tpu.memory_space<vmem>>, vector<1x32xf32>
    %3 = vector.broadcast %2 : vector<1x32xf32> to vector<64x32xf32>
    %4 = arith.mulf %1, %3 : vector<64x32xf32>
    %c0_4 = arith.constant 0 : index
    %c0_5 = arith.constant 0 : index
    %5 = vector.load %arg3[%c0_4, %c0_5] : memref<1x32xf32, #tpu.memory_space<vmem>>, vector<1x32xf32>
    %6 = vector.broadcast %5 : vector<1x32xf32> to vector<64x32xf32>
    %7 = arith.addf %4, %6 : vector<64x32xf32>
    %cst = arith.constant 0.000000e+00 : f32
    %8 = vector.broadcast %cst : f32 to vector<64x32xf32>
    %9 = arith.maximumf %7, %8 : vector<64x32xf32>
    %c0_6 = arith.constant 0 : index
    %c0_7 = arith.constant 0 : index
    %c0_8 = arith.constant 0 : index
    %10 = vector.load %arg7[%c0_6, %c0_7, %c0_8] : memref<1x64x32xf32, #tpu.memory_space<vmem>>, vector<1x64x32xf32>
    %11 = vector.shape_cast %10 : vector<1x64x32xf32> to vector<64x32xf32>
    %12 = vector.shape_cast %9 : vector<64x32xf32> to vector<1x64x32xf32>
    tpu.vector_store %arg7[%c0_6, %c0_7, %c0_8], %12 {strides = array<i32>} : memref<1x64x32xf32, #tpu.memory_space<vmem>>, vector<1x64x32xf32>,
    %13 = arith.truncf %9 : vector<64x32xf32> to vector<64x32xbf16>
    %c0_9 = arith.constant 0 : index
    %c0_10 = arith.constant 0 : index
    %14 = vector.load %arg4[%c0_9, %c0_10] : memref<32x32xbf16, #tpu.memory_space<vmem>>, vector<32x32xbf16>
    %cst_11 = arith.constant dense<0.000000e+00> : vector<64x32xf32>
    %15 = tpu.matmul %13, %14, %cst_11 {dimension_numbers = #tpu.dot_dimension_numbers<[1], [0], [0], [1], [0, 0, 1, 1], [], []>} : vector<64x32xbf16>, vector<32x32xbf16>, vector<64x32xf32> -> vector<64x32xf32>
    %c0_12 = arith.constant 0 : index
    %c0_13 = arith.constant 0 : index
    %16 = vector.load %arg5[%c0_12, %c0_13] : memref<1x32xf32, #tpu.memory_space<vmem>>, vector<1x32xf32>
    %17 = vector.broadcast %16 : vector<1x32xf32> to vector<64x32xf32>
    %18 = arith.addf %15, %17 : vector<64x32xf32>
    %c0_14 = arith.constant 0 : index
    %c0_15 = arith.constant 0 : index
    %c0_16 = arith.constant 0 : index
    %19 = vector.load %arg6[%c0_14, %c0_15, %c0_16] : memref<1x64x128xf32, #tpu.memory_space<vmem>>, vector<1x64x128xf32>
    %20 = vector.shape_cast %19 : vector<1x64x128xf32> to vector<64x128xf32>
    %21 = vector.extract_strided_slice %20 {offsets = [0, 0], sizes = [64, 32], strides = [1, 1]} : vector<64x128xf32> to vector<64x32xf32>
    %c0_i32 = arith.constant 0 : i32
    %22 = vector.broadcast %c0_i32 : i32 to vector<64x32xi32>
    %23 = vector.extract_strided_slice %20 {offsets = [0, 32], sizes = [64, 32], strides = [1, 1]} : vector<64x128xf32> to vector<64x32xf32>
    %24 = arith.cmpf ogt, %23, %21 : vector<64x32xf32>
    %25 = arith.select %24, %23, %21 : vector<64x32xi1>, vector<64x32xf32>
    %c1_i32 = arith.constant 1 : i32
    %26 = vector.broadcast %c1_i32 : i32 to vector<64x32xi32>
    %27 = arith.select %24, %26, %22 : vector<64x32xi1>, vector<64x32xi32>
    %28 = vector.extract_strided_slice %20 {offsets = [0, 64], sizes = [64, 32], strides = [1, 1]} : vector<64x128xf32> to vector<64x32xf32>
    %29 = arith.cmpf ogt, %28, %25 : vector<64x32xf32>
    %30 = arith.select %29, %28, %25 : vector<64x32xi1>, vector<64x32xf32>
    %c2_i32 = arith.constant 2 : i32
    %31 = vector.broadcast %c2_i32 : i32 to vector<64x32xi32>
    %32 = arith.select %29, %31, %27 : vector<64x32xi1>, vector<64x32xi32>
    %33 = vector.extract_strided_slice %20 {offsets = [0, 96], sizes = [64, 32], strides = [1, 1]} : vector<64x128xf32> to vector<64x32xf32>
    %34 = arith.cmpf ogt, %33, %30 : vector<64x32xf32>
    %c3_i32 = arith.constant 3 : i32
    %35 = vector.broadcast %c3_i32 : i32 to vector<64x32xi32>
    %36 = arith.select %34, %35, %32 : vector<64x32xi1>, vector<64x32xi32>
    %37 = vector.extract_strided_slice %20 {offsets = [0, 0], sizes = [64, 32], strides = [1, 1]} : vector<64x128xf32> to vector<64x32xf32>
    %c0_i32_17 = arith.constant 0 : i32
    %38 = vector.broadcast %c0_i32_17 : i32 to vector<64x32xi32>
    %39 = arith.cmpi eq, %36, %38 : vector<64x32xi32>
    %cst_18 = arith.constant 0.000000e+00 : f32
    %40 = vector.broadcast %cst_18 : f32 to vector<64x32xf32>
    %41 = arith.select %39, %18, %40 : vector<64x32xi1>, vector<64x32xf32>
    %42 = arith.addf %37, %41 : vector<64x32xf32>
    %c0_19 = arith.constant 0 : index
    %c0_20 = arith.constant 0 : index
    %c0_21 = arith.constant 0 : index
    %43 = vector.load %arg8[%c0_19, %c0_20, %c0_21] : memref<1x64x128xf32, #tpu.memory_space<vmem>>, vector<1x64x32xf32>
    %44 = vector.shape_cast %43 : vector<1x64x32xf32> to vector<64x32xf32>
    %45 = vector.shape_cast %42 : vector<64x32xf32> to vector<1x64x32xf32>
    tpu.vector_store %arg8[%c0_19, %c0_20, %c0_21], %45 {strides = array<i32>} : memref<1x64x128xf32, #tpu.memory_space<vmem>>, vector<1x64x32xf32>,
    %46 = vector.extract_strided_slice %20 {offsets = [0, 32], sizes = [64, 32], strides = [1, 1]} : vector<64x128xf32> to vector<64x32xf32>
    %c1_i32_22 = arith.constant 1 : i32
    %47 = vector.broadcast %c1_i32_22 : i32 to vector<64x32xi32>
    %48 = arith.cmpi eq, %36, %47 : vector<64x32xi32>
    %cst_23 = arith.constant 0.000000e+00 : f32
    %49 = vector.broadcast %cst_23 : f32 to vector<64x32xf32>
    %50 = arith.select %48, %18, %49 : vector<64x32xi1>, vector<64x32xf32>
    %51 = arith.addf %46, %50 : vector<64x32xf32>
    %c0_24 = arith.constant 0 : index
    %c0_25 = arith.constant 0 : index
    %c32 = arith.constant 32 : index
    %52 = vector.load %arg8[%c0_24, %c0_25, %c32] : memref<1x64x128xf32, #tpu.memory_space<vmem>>, vector<1x64x32xf32>
    %53 = vector.shape_cast %52 : vector<1x64x32xf32> to vector<64x32xf32>
    %54 = vector.shape_cast %51 : vector<64x32xf32> to vector<1x64x32xf32>
    tpu.vector_store %arg8[%c0_24, %c0_25, %c32], %54 {strides = array<i32>} : memref<1x64x128xf32, #tpu.memory_space<vmem>>, vector<1x64x32xf32>,
    %55 = vector.extract_strided_slice %20 {offsets = [0, 64], sizes = [64, 32], strides = [1, 1]} : vector<64x128xf32> to vector<64x32xf32>
    %c2_i32_26 = arith.constant 2 : i32
    %56 = vector.broadcast %c2_i32_26 : i32 to vector<64x32xi32>
    %57 = arith.cmpi eq, %36, %56 : vector<64x32xi32>
    %cst_27 = arith.constant 0.000000e+00 : f32
    %58 = vector.broadcast %cst_27 : f32 to vector<64x32xf32>
    %59 = arith.select %57, %18, %58 : vector<64x32xi1>, vector<64x32xf32>
    %60 = arith.addf %55, %59 : vector<64x32xf32>
    %c0_28 = arith.constant 0 : index
    %c0_29 = arith.constant 0 : index
    %c64 = arith.constant 64 : index
    %61 = vector.load %arg8[%c0_28, %c0_29, %c64] : memref<1x64x128xf32, #tpu.memory_space<vmem>>, vector<1x64x32xf32>
    %62 = vector.shape_cast %61 : vector<1x64x32xf32> to vector<64x32xf32>
    %63 = vector.shape_cast %60 : vector<64x32xf32> to vector<1x64x32xf32>
    tpu.vector_store %arg8[%c0_28, %c0_29, %c64], %63 {strides = array<i32>} : memref<1x64x128xf32, #tpu.memory_space<vmem>>, vector<1x64x32xf32>,
    %64 = vector.extract_strided_slice %20 {offsets = [0, 96], sizes = [64, 32], strides = [1, 1]} : vector<64x128xf32> to vector<64x32xf32>
    %c3_i32_30 = arith.constant 3 : i32
    %65 = vector.broadcast %c3_i32_30 : i32 to vector<64x32xi32>
    %66 = arith.cmpi eq, %36, %65 : vector<64x32xi32>
    %cst_31 = arith.constant 0.000000e+00 : f32
    %67 = vector.broadcast %cst_31 : f32 to vector<64x32xf32>
    %68 = arith.select %66, %18, %67 : vector<64x32xi1>, vector<64x32xf32>
    %69 = arith.addf %64, %68 : vector<64x32xf32>
    %c0_32 = arith.constant 0 : index
    %c0_33 = arith.constant 0 : index
    %c96 = arith.constant 96 : index
    %70 = vector.load %arg8[%c0_32, %c0_33, %c96] : memref<1x64x128xf32, #tpu.memory_space<vmem>>, vector<1x64x32xf32>
    %71 = vector.shape_cast %70 : vector<1x64x32xf32> to vector<64x32xf32>
    %72 = vector.shape_cast %69 : vector<64x32xf32> to vector<1x64x32xf32>
    tpu.vector_store %arg8[%c0_32, %c0_33, %c96], %72 {strides = array<i32>} : memref<1x64x128xf32, #tpu.memory_space<vmem>>, vector<1x64x32xf32>,
    return
  }
  func.func @transform_0(%arg0: i32) -> (i32, i32, i32) {
    %c0_i32 = arith.constant 0 : i32
    %c0_i32_0 = arith.constant 0 : i32
    %c0_i32_1 = arith.constant 0 : i32
    return %arg0, %c0_i32, %c0_i32_0 : i32, i32, i32
  }
  func.func @transform_1(%arg0: i32) -> (i32, i32) {
    %c0_i32 = arith.constant 0 : i32
    %c0_i32_0 = arith.constant 0 : i32
    %c0_i32_1 = arith.constant 0 : i32
    return %c0_i32, %c0_i32_0 : i32, i32
  }
  func.func @transform_2(%arg0: i32) -> (i32, i32) {
    %c0_i32 = arith.constant 0 : i32
    %c0_i32_0 = arith.constant 0 : i32
    %c0_i32_1 = arith.constant 0 : i32
    return %c0_i32, %c0_i32_0 : i32, i32
  }
  func.func @transform_3(%arg0: i32) -> (i32, i32) {
    %c0_i32 = arith.constant 0 : i32
    %c0_i32_0 = arith.constant 0 : i32
    %c0_i32_1 = arith.constant 0 : i32
    return %c0_i32, %c0_i32_0 : i32, i32
  }
  func.func @transform_4(%arg0: i32) -> (i32, i32) {
    %c0_i32 = arith.constant 0 : i32
    %c0_i32_0 = arith.constant 0 : i32
    %c0_i32_1 = arith.constant 0 : i32
    return %c0_i32, %c0_i32_0 : i32, i32
  }
  func.func @transform_5(%arg0: i32) -> (i32, i32, i32) {
    %c0_i32 = arith.constant 0 : i32
    %c0_i32_0 = arith.constant 0 : i32
    %c0_i32_1 = arith.constant 0 : i32
    return %arg0, %c0_i32, %c0_i32_0 : i32, i32, i32
  }
  func.func @transform_6(%arg0: i32) -> (i32, i32, i32) {
    %c0_i32 = arith.constant 0 : i32
    %c0_i32_0 = arith.constant 0 : i32
    %c0_i32_1 = arith.constant 0 : i32
    return %arg0, %c0_i32, %c0_i32_0 : i32, i32, i32
  }
  func.func @transform_7(%arg0: i32) -> (i32, i32, i32) {
    %c0_i32 = arith.constant 0 : i32
    %c0_i32_0 = arith.constant 0 : i32
    %c0_i32_1 = arith.constant 0 : i32
    return %arg0, %c0_i32, %c0_i32_0 : i32, i32, i32
  }
}

</mosaic_0001>

<bundles_post_ra>
// kernel: frru_forward.5
= control target key start
LH: loop header
LB: loop body
LE: loop exit
PB: predicated region body
PF: predicated region fallthrough
CT: control target
= control target key end

     0   :  { %13 = vsyncpa [#allocation3], 0  ;;  %s1850_s0 = inlined_call_operand.vmem [shape: f32[2,64,32], index: 0, kind: input, shape index: {}]   ;;  %s1851_s1 = inlined_call_operand.vmem [shape: f32[1,32], index: 1, kind: input, shape index: {}]   ;;  %s1852_s2 = inlined_call_operand.vmem [shape: f32[1,32], index: 2, kind: input, shape index: {}]   ;;  %s1853_s3 = inlined_call_operand.vmem [shape: bf16[32,32], index: 3, kind: input, shape index: {}]   ;;  %s1854_s4 = inlined_call_operand.vmem [shape: f32[1,32], index: 4, kind: input, shape index: {}]   ;;  %s1855_s5 = inlined_call_operand.vmem [shape: f32[2,64,128], index: 5, kind: input, shape index: {}]   ;;  %s1856_s6 = inlined_call_operand.hbm [shape: f32[2,64,32], index: 6, kind: output, shape index: {0}]   ;;  %s1857_s7 = inlined_call_operand.vmem [shape: f32[2,64,128], index: 7, kind: output, shape index: {1}]  }
   0x1   :  { %15 = vsyncpa [#allocation3 + $0x1], 0  ;;  %s1259_s24 = smov 0   ;;  %s1261_s25 = smov 0  }
   0x2   :  { %s1263_s26 = smov 0   ;;  %s1265_s27 = smov 0  }
   0x3 LB: > { %s1280_s28 = sadd.s32 4294967295, %s1210_s27   ;;  %s1050_s29 = sadd.s32 4294967294, %s1210_s27   ;;  %s1210_s27 = sphi %s1265_s27, %s1863_s27   ;;  %s1206_s26 = sphi %s1263_s26, %s1862_s26   ;;  %s1202_s25 = sphi %s1261_s25, %s1861_s25   ;;  %s1198_s24 = sphi %s1259_s24, %s1860_s24  }
   0x4   : > { %s1284_s30 = sadd.s32 1, %s1210_s27   ;;  %s164_s8 = sadd.s32 1, %s1206_s26 }
   0x5   : > { %s161_s9 = ssub.s32 %s1210_s27, %s1284_s30  ;;  %p174_p0 = scmp.ne.s32.totalorder %s1206_s26, %s1202_s25 }
   0x6   : > { %p162_p1 = scmp.eq.s32.totalorder %s161_s9, 0  ;;  %p175_p2 = scmp.eq.s32.totalorder %s1280_s28, 1 }
   0x7   : > { %p180_p3 = scmp.ne.s32.totalorder %s1202_s25, %s1198_s24  ;;  %p181_p4 = scmp.eq.s32.totalorder %s1050_s29, 1 }
   0x8   : > { %s1295_s10 = scalar_select %p162_p1, %s1206_s26, %s164_s8  }
   0x9   : > { %p1297_p5 = por %p175_p2, %p174_p0  ;;  %p1301_p6 = por %p181_p4, %p180_p3 }
   0xa   : > { %p1053_p7 = scmp.ge.s32.totalorder %s1210_s27, 1  ;;  %p253_p8 = scmp.lt.s32.totalorder %s1210_s27, 3 }
   0xc   : > { %p254_p9 = pnand %p1053_p7, %p253_p8 }
   0xd   : > { %p295_p10 = scmp.lt.s32.totalorder (!%p254_p9), %s1280_s28, 1  ;;  %v1146_v0 = vld [vmem:[%s1853_s3] sm:$0xff] (!%p254_p9)   ;;  %v1147_v1 = vld [vmem:[%s1853_s3 + $0x8] sm:$0xff] (!%p254_p9)   ;;  %s285_s29 = sand.u32 (!%p254_p9), 1, %s1202_s25   ;;  %vm357_vm0 = vcmask (!%p254_p9), 261120  }
   0xe   : > { %257 = sbr.rel (%p254_p9) target bundleno = 575 (0x23f), region = 44  ;;  %1085 = vmatprep.subr.bf16.mxu0 (!%p254_p9), %v1146_v0  ;;  %1097 = vmatprep.subr.bf16.mxu1 (!%p254_p9), %v1146_v0  ;;  %v1061_v2 = vld [vmem:[%s1851_s1] ss:$0 sm:$0xff] (!%p254_p9)  ;;  %s1212_s16 = smov (!%p254_p9), 32  }
   0xf   : > { %1086 = vmatpush3.bf16.msra.mxu0 (!%p254_p9), %v1146_v0  ;;  %1099 = vmatpush3.bf16.msra.mxu1 (!%p254_p9), %v1146_v0  ;;  %v1062_v5 = vld [vmem:[%s1852_s2] ss:$0 sm:$0xff] (!%p254_p9)  ;;  %s1352_s17 = sshll.u32 (!%p254_p9), %s285_s29, 6  ;;  %v1213_v0 = vmov (!%p254_p9), 0   ;;  %s1214_s22 = smov (!%p254_p9), 96  }
  0x10   : > { %1087 = vmatprep.subr.bf16.mxu0 (!%p254_p9), %v1147_v1  ;;  %1098 = vmatprep.subr.bf16.mxu1 (!%p254_p9), %v1147_v1  ;;  %s1367_s19 = scalar_lea.vmem (!%p254_p9), [#allocation2], %s1352_s17  ;;  %s1215_s23 = smov (!%p254_p9), 64  }
  0x11   : > { %s1078_s8 = sshll.u32 (!%p254_p9), %s1280_s28, 10  ;;  %s948_s9 = sshll.u32 (!%p254_p9), %s1367_s19, 4  ;;  %s1679_s9 = int_to_ptr.vmem [resolvable:$true] %s948_s9 }
  0x12   : > { %s1216_s17 = smov (!%p254_p9), [#allocation2]  }
  0x13   : > { %1088 = vmatpush3.bf16.msra.mxu0 (!%p254_p9), %v1147_v1  ;;  %1100 = vmatpush3.bf16.msra.mxu1 (!%p254_p9), %v1147_v1 }
  0x15   : > { %s296_s15 = scalar_select %p295_p10, %s1280_s28, 1 }
  0x16   : > { %s1686_s28 = scalar_lea.sflag [#allocation3], %s285_s29 }
  0x17   : > { %s1315_s18 = sshll.u32 %s296_s15, 6  ;;  %s1677_s15 = scalar_lea.hbm %s1856_s6, %s1078_s8 }
  0x18   : > { %s1321_s21 = scalar_lea.vmem %s1855_s5, %s1315_s18  ;;  %s299_s13 = scalar_lea.vmem %s1850_s0, %s1315_s18 }
  0x19   : > { %v1327_v3 = vld [vmem:[%s1321_s21] sm:$0xff]  ;;  %v1330_v4 = vld [vmem:[%s1321_s21 + $0x10] sm:$0xff]  ;;  %v1345_v6 = vld [vmem:[%s1321_s21 + $0x8] sm:$0xff] }
  0x1a   : > { %486 = vrot.lane.b32.xlu0 %v1327_v3, %s1212_s16  ;;  %490 = vrot.lane.b32.xlu1 %v1330_v4, %s1212_s16  ;;  %v1348_v7 = vld [vmem:[%s1321_s21 + $0x18] sm:$0xff]  ;;  %v311_v8 = vld [vmem:[%s299_s13] sm:$0xff] }
  0x1b   : > { %v312_v9 = vld [vmem:[%s299_s13 + $0x8] sm:$0xff]  ;;  %v313_v10 = vld [vmem:[%s299_s13 + $0x10] sm:$0xff]  ;;  %v326_v11 = vmul.f32 %v1061_v2, %v311_v8  ;;  %v314_v13 = vld [vmem:[%s299_s13 + $0x18] sm:$0xff] }
  0x1c   : > { %v327_v12 = vmul.f32 %v1061_v2, %v312_v9  ;;  %v328_v14 = vmul.f32 %v1061_v2, %v313_v10  ;;  %v329_v15 = vmul.f32 %v1061_v2, %v314_v13  ;;  %v315_v16 = vld [vmem:[%s299_s13 + $0x20] sm:$0xff]  ;;  %v316_v17 = vld [vmem:[%s299_s13 + $0x28] sm:$0xff]  ;;  %v317_v18 = vld [vmem:[%s299_s13 + $0x30] sm:$0xff] }
  0x1d   : > { %v341_v19 = vadd.f32 %v1062_v5, %v326_v11  ;;  %v318_v22 = vld [vmem:[%s299_s13 + $0x38] sm:$0xff]  ;;  %v1359_v23 = vld [vmem:[%s1321_s21 + $0x20] sm:$0xff]  ;;  %v1362_v25 = vld [vmem:[%s1321_s21 + $0x28] sm:$0xff]  ;;  %v330_v26 = vmul.f32 %v1061_v2, %v315_v16  ;;  %v331_v27 = vmul.f32 %v1061_v2, %v316_v17  ;;  %v332_v28 = vmul.f32 %v1061_v2, %v317_v18 }
  0x1e   : > { %488 = vrot.lane.b32.xlu0 %v1345_v6, %s1212_s16  ;;  %492 = vrot.lane.b32.xlu1 %v1348_v7, %s1212_s16  ;;  %v342_v20 = vadd.f32 %v1062_v5, %v327_v12  ;;  %v343_v21 = vadd.f32 %v1062_v5, %v328_v14  ;;  %v344_v24 = vadd.f32 %v1062_v5, %v329_v15  ;;  %v1380_v40 = vld [vmem:[%s1321_s21 + $0x30] sm:$0xff]  ;;  %v1383_v44 = vld [vmem:[%s1321_s21 + $0x38] sm:$0xff] }
  0x1f   : > { %v349_v29 = vmax.f32 %v341_v19, 0.0  ;;  %v333_v32 = vmul.f32 %v1061_v2, %v318_v22  ;;  %v345_v34 = vadd.f32 %v1062_v5, %v330_v26  ;;  %v346_v35 = vadd.f32 %v1062_v5, %v331_v27  ;;  %v1468_v13 = vld [vmem:[%s1854_s4] ss:$0 sm:$0xff] }
  0x20   : > { %v350_v30 = vmax.f32 %v342_v20, 0.0  ;;  %v351_v31 = vmax.f32 %v343_v21, 0.0  ;;  %v352_v33 = vmax.f32 %v344_v24, 0.0  ;;  %v347_v36 = vadd.f32 %v1062_v5, %v332_v28 }
  0x21   : > { %358 = vst.msk [vmem:[%s1367_s19] sm:$0xff] %vm357_vm0, %v349_v29  ;;  %v348_v38 = vadd.f32 %v1062_v5, %v333_v32  ;;  %v353_v41 = vmax.f32 %v345_v34, 0.0  ;;  %v354_v42 = vmax.f32 %v346_v35, 0.0 }
  0x22   : > { %494 = vrot.lane.b32.xlu0 %v1359_v23, %s1212_s16  ;;  %359 = vst.msk [vmem:[%s1367_s19 + $0x8] sm:$0xff] %vm357_vm0, %v350_v30  ;;  %v366_v37 = vpack.c.bf16 %v350_v30, %v349_v29  ;;  %360 = vst.msk [vmem:[%s1367_s19 + $0x10] sm:$0xff] %vm357_vm0, %v351_v31  ;;  %496 = vrot.lane.b32.xlu1 %v1362_v25, %s1212_s16  ;;  %v367_v39 = vpack.c.bf16 %v352_v33, %v351_v31  ;;  %v355_v43 = vmax.f32 %v347_v36, 0.0 }
  0x23   : > { %361 = vst.msk [vmem:[%s1367_s19 + $0x18] sm:$0xff] %vm357_vm0, %v352_v33  ;;  %v356_v45 = vmax.f32 %v348_v38, 0.0  ;;  %362 = vst.msk [vmem:[%s1367_s19 + $0x20] sm:$0xff] %vm357_vm0, %v353_v41  ;;  %v368_v46 = vpack.c.bf16 %v354_v42, %v353_v41 }
  0x24   : > { %1089 = vmatprep.mubr.msk.bf16.mxu0 %vm357_vm0, %v366_v37  ;;  %363 = vst.msk [vmem:[%s1367_s19 + $0x28] sm:$0xff] %vm357_vm0, %v354_v42  ;;  %364 = vst.msk [vmem:[%s1367_s19 + $0x30] sm:$0xff] %vm357_vm0, %v355_v43 }
  0x25   : > { %1090 = vmatmul.mubr.msk.bf16.vlgmr.msra.gmra.mrb[0].mxu0 %vm357_vm0, %v367_v39  ;;  %365 = vst.msk [vmem:[%s1367_s19 + $0x38] sm:$0xff] %vm357_vm0, %v356_v45  ;;  %v369_v47 = vpack.c.bf16 %v356_v45, %v355_v43  ;;  %1093 = vmatprep.mubr.msk.bf16.mxu1 %vm357_vm0, %v368_v46  ;;  %s1152_s19 = sshll.u32 %s1216_s17, 4  ;;  %s1153_s19 = int_to_ptr.vmem [resolvable:$false] %s1152_s19 }
  0x26   : > { %498 = vrot.lane.b32.xlu0 %v1380_v40, %s1212_s16  ;;  %500 = vrot.lane.b32.xlu1 %v1383_v44, %s1212_s16  ;;  %s1154_s20 = scalar_lea.vmem %s1153_s19, 2048  ;;  %p1155_p0 = scmp.lt.s32.totalorder %s1679_s9, %s1153_s19 }
  0x27   : > { %1094 = vmatmul.mubr.msk.bf16.vlgmr.msra.gmra.mrb[0].mxu1 %vm357_vm0, %v369_v47 }
  0x8c   : > { %v487_v48 = vpop.permute.xlu0 %486  ;;  %v491_v49 = vpop.permute.xlu1 %490 }
  0x8d   : > { %vm510_vm1 = vcmp.gt.f32.partialorder %v1327_v3, %v487_v48  ;;  %vm512_vm2 = vcmp.gt.f32.partialorder %v1330_v4, %v491_v49 }
  0x8e   : > { %v518_v50 = vsel %vm510_vm1, %v1327_v3, %v487_v48  ;;  %v520_v53 = vsel %vm512_vm2, %v1330_v4, %v491_v49  ;;  %v526_v1 = vsel %vm510_vm1, 1, %v1213_v0  ;;  %v528_v5 = vsel %vm512_vm2, 1, %v1213_v0 }
  0x8f   : > { %542 = vrot.lane.b32.xlu0 %v518_v50, %s1212_s16 }
  0x90   : > { %v489_v51 = vpop.permute.xlu0 %488  ;;  %v493_v52 = vpop.permute.xlu1 %492 }
  0x91   : > { %vm511_vm3 = vcmp.gt.f32.partialorder %v1345_v6, %v489_v51  ;;  %vm513_vm4 = vcmp.gt.f32.partialorder %v1348_v7, %v493_v52 }
  0x92   : > { %v519_v54 = vsel %vm511_vm3, %v1345_v6, %v489_v51  ;;  %v521_v57 = vsel %vm513_vm4, %v1348_v7, %v493_v52  ;;  %v527_v2 = vsel %vm511_vm3, 1, %v1213_v0  ;;  %v529_v8 = vsel %vm513_vm4, 1, %v1213_v0 }
  0x93   : > { %546 = vrot.lane.b32.xlu0 %v520_v53, %s1212_s16  ;;  %544 = vrot.lane.b32.xlu1 %v519_v54, %s1212_s16 }
  0x94   : > { %v495_v55 = vpop.permute.xlu0 %494  ;;  %v497_v56 = vpop.permute.xlu1 %496 }
  0x95   : > { %vm514_vm5 = vcmp.gt.f32.partialorder %v1359_v23, %v495_v55  ;;  %vm515_vm6 = vcmp.gt.f32.partialorder %v1362_v25, %v497_v56 }
  0x96   : > { %v522_v58 = vsel %vm514_vm5, %v1359_v23, %v495_v55  ;;  %v523_v61 = vsel %vm515_vm6, %v1362_v25, %v497_v56  ;;  %v530_v9 = vsel %vm514_vm5, 1, %v1213_v0  ;;  %v531_v10 = vsel %vm515_vm6, 1, %v1213_v0 }
  0x97   : > { %548 = vrot.lane.b32.xlu1 %v521_v57, %s1212_s16  ;;  %550 = vrot.lane.b32.xlu0 %v522_v58, %s1212_s16 }
  0x98   : > { %v499_v59 = vpop.permute.xlu0 %498  ;;  %v501_v60 = vpop.permute.xlu1 %500 }
  0x99   : > { %vm516_vm7 = vcmp.gt.f32.partialorder %v1380_v40, %v499_v59  ;;  %vm517_vm8 = vcmp.gt.f32.partialorder %v1383_v44, %v501_v60 }
  0x9a   : > { %v524_v62 = vsel %vm516_vm7, %v1380_v40, %v499_v59  ;;  %v525_v63 = vsel %vm517_vm8, %v1383_v44, %v501_v60  ;;  %v532_v11 = vsel %vm516_vm7, 1, %v1213_v0  ;;  %v533_v12 = vsel %vm517_vm8, 1, %v1213_v0 }
  0x9b   : > { %552 = vrot.lane.b32.xlu1 %v523_v61, %s1212_s16  ;;  %554 = vrot.lane.b32.xlu0 %v524_v62, %s1212_s16 }
  0x9f   : > { %556 = vrot.lane.b32.xlu1 %v525_v63, %s1212_s16  ;;  %582 = vrot.lane.b32.xlu0 %v526_v1, %s1212_s16 }
  0xa3   : > { %584 = vrot.lane.b32.xlu1 %v527_v2, %s1212_s16  ;;  %586 = vrot.lane.b32.xlu0 %v528_v5, %s1212_s16 }
  0xa7   : > { %588 = vrot.lane.b32.xlu1 %v529_v8, %s1212_s16  ;;  %590 = vrot.lane.b32.xlu0 %v530_v9, %s1212_s16 }
  0xab   : > { %592 = vrot.lane.b32.xlu1 %v531_v10, %s1212_s16  ;;  %594 = vrot.lane.b32.xlu0 %v532_v11, %s1212_s16 }
  0xaf   : > { %596 = vrot.lane.b32.xlu1 %v533_v12, %s1212_s16 }
  0xf8   : > { %v1091_v14 = vpop.f32.mrb[0].mxu0 }
  0xf9   : > { %v448_v15 = vadd.f32 %v1091_v14, %v1468_v13  ;;  %v439_v16 = vpop.f32.mrb[1].mxu0 }
  0xfa   : > { %v1092_v17 = vpop.f32.mrb[2].mxu0  ;;  %v1473_v20 = vpop.f32.mrb[0].mxu1  ;;  %v440_v22 = vadd.f32 %v1468_v13, %v439_v16 }
  0xfb   : > { %v451_v18 = vadd.f32 %v1092_v17, %v1468_v13  ;;  %690 = vrot.lane.b32.xlu0 %v448_v15, %s1214_s22  ;;  %v442_v19 = vpop.f32.mrb[3].mxu0  ;;  %v455_v21 = vpop.f32.mrb[1].mxu1  ;;  %v464_v0 = vadd.f32 %v1473_v20, %v1468_v13 }
  0xfc   : > { %v1477_v24 = vpop.f32.mrb[2].mxu1  ;;  %v443_v27 = vadd.f32 %v1468_v13, %v442_v19  ;;  %v456_v28 = vadd.f32 %v1468_v13, %v455_v21 }
  0xfd   : > { %692 = vrot.lane.b32.xlu1 %v451_v18, %s1214_s22  ;;  %v458_v26 = vpop.f32.mrb[3].mxu1  ;;  %v467_v1 = vadd.f32 %v1477_v24, %v1468_v13 }
  0xfe   : > { %v459_v30 = vadd.f32 %v1468_v13, %v458_v26 }
  0xff   : > { %686 = vrot.lane.b32.xlu0 %v440_v22, %s1214_s22 }
 0x101   : > { %688 = vrot.lane.b32.xlu1 %v443_v27, %s1214_s22  ;;  %v543_v29 = vpop.permute.xlu0 %542 }
 0x102   : > { %vm566_vm9 = vcmp.gt.f32.partialorder %v1327_v3, %v543_v29 }
 0x103   : > { %694 = vrot.lane.b32.xlu0 %v456_v28, %s1214_s22  ;;  %v574_v31 = vsel %vm566_vm9, %v1327_v3, %v543_v29 }
 0x105   : > { %696 = vrot.lane.b32.xlu1 %v459_v30, %s1214_s22  ;;  %v545_v32 = vpop.permute.xlu1 %544  ;;  %v547_v33 = vpop.permute.xlu0 %546 }
 0x106   : > { %vm567_vm10 = vcmp.gt.f32.partialorder %v1345_v6, %v545_v32  ;;  %vm568_vm11 = vcmp.gt.f32.partialorder %v1330_v4, %v547_v33 }
 0x107   : > { %614 = vrot.lane.b32.xlu0 %v574_v31, %s1212_s16  ;;  %v575_v34 = vsel %vm567_vm10, %v1345_v6, %v545_v32  ;;  %v576_v35 = vsel %vm568_vm11, %v1330_v4, %v547_v33 }
 0x109   : > { %616 = vrot.lane.b32.xlu1 %v575_v34, %s1212_s16  ;;  %v549_v36 = vpop.permute.xlu1 %548  ;;  %v551_v37 = vpop.permute.xlu0 %550 }
 0x10a   : > { %vm569_vm12 = vcmp.gt.f32.partialorder %v1348_v7, %v549_v36  ;;  %vm570_vm13 = vcmp.gt.f32.partialorder %v1359_v23, %v551_v37 }
 0x10b   : > { %618 = vrot.lane.b32.xlu0 %v576_v35, %s1212_s16  ;;  %v577_v38 = vsel %vm569_vm12, %v1348_v7, %v549_v36  ;;  %v578_v39 = vsel %vm570_vm13, %v1359_v23, %v551_v37 }
 0x10d   : > { %620 = vrot.lane.b32.xlu1 %v577_v38, %s1212_s16  ;;  %v553_v41 = vpop.permute.xlu1 %552  ;;  %v555_v42 = vpop.permute.xlu0 %554 }
 0x10e   : > { %vm571_vm14 = vcmp.gt.f32.partialorder %v1362_v25, %v553_v41  ;;  %vm572_vm15 = vcmp.gt.f32.partialorder %v1380_v40, %v555_v42 }
 0x10f   : > { %622 = vrot.lane.b32.xlu0 %v578_v39, %s1212_s16  ;;  %v579_v43 = vsel %vm571_vm14, %v1362_v25, %v553_v41  ;;  %v580_v45 = vsel %vm572_vm15, %v1380_v40, %v555_v42 }
 0x111   : > { %624 = vrot.lane.b32.xlu1 %v579_v43, %s1212_s16  ;;  %v557_v46 = vpop.permute.xlu1 %556  ;;  %v583_v47 = vpop.permute.xlu0 %582 }
 0x112   : > { %vm573_vm1 = vcmp.gt.f32.partialorder %v1383_v44, %v557_v46  ;;  %v598_v51 = vsel %vm566_vm9, 2, %v583_v47 }
 0x113   : > { %626 = vrot.lane.b32.xlu0 %v580_v45, %s1212_s16  ;;  %v581_v48 = vsel %vm573_vm1, %v1383_v44, %v557_v46 }
 0x115   : > { %628 = vrot.lane.b32.xlu1 %v581_v48, %s1212_s16  ;;  %v585_v49 = vpop.permute.xlu1 %584  ;;  %v587_v50 = vpop.permute.xlu0 %586 }
 0x116   : > { %v599_v52 = vsel %vm567_vm10, 2, %v585_v49  ;;  %v600_v55 = vsel %vm568_vm11, 2, %v587_v50 }
 0x117   : > { %646 = vrot.lane.b32.xlu0 %v598_v51, %s1212_s16 }
 0x119   : > { %648 = vrot.lane.b32.xlu1 %v599_v52, %s1212_s16  ;;  %v589_v53 = vpop.permute.xlu1 %588  ;;  %v591_v54 = vpop.permute.xlu0 %590 }
 0x11a   : > { %v601_v56 = vsel %vm569_vm12, 2, %v589_v53  ;;  %v602_v58 = vsel %vm570_vm13, 2, %v591_v54 }
 0x11b   : > { %650 = vrot.lane.b32.xlu0 %v600_v55, %s1212_s16 }
 0x11d   : > { %652 = vrot.lane.b32.xlu1 %v601_v56, %s1212_s16  ;;  %v593_v57 = vpop.permute.xlu1 %592  ;;  %v595_v60 = vpop.permute.xlu0 %594 }
 0x11e   : > { %v603_v59 = vsel %vm571_vm14, 2, %v593_v57  ;;  %v604_v62 = vsel %vm572_vm15, 2, %v595_v60 }
 0x11f   : > { %654 = vrot.lane.b32.xlu0 %v602_v58, %s1212_s16 }
 0x121   : > { %656 = vrot.lane.b32.xlu1 %v603_v59, %s1212_s16  ;;  %v597_v61 = vpop.permute.xlu1 %596 }
 0x122   : > { %v605_v63 = vsel %vm573_vm1, 2, %v597_v61 }
 0x123   : > { %658 = vrot.lane.b32.xlu0 %v604_v62, %s1212_s16 }
 0x125   : > { %660 = vrot.lane.b32.xlu1 %v605_v63, %s1212_s16 }
 0x127   : > { %698 = vrot.lane.b32.xlu0 %v464_v0, %s1214_s22 }
 0x129   : > { %700 = vrot.lane.b32.xlu1 %v467_v1, %s1214_s22 }
 0x16d   : > { %v1556_v2 = vpop.permute.xlu0 %690 }
 0x16f   : > { %v1558_v5 = vpop.permute.xlu1 %692 }
 0x171   : > { %v1560_v8 = vpop.permute.xlu0 %686 }
 0x173   : > { %v1562_v9 = vpop.permute.xlu1 %688 }
 0x175   : > { %v1564_v10 = vpop.permute.xlu0 %694 }
 0x177   : > { %v1566_v11 = vpop.permute.xlu1 %696 }
 0x179   : > { %v615_v12 = vpop.permute.xlu0 %614 }
 0x17a   : > { %vm638_vm2 = vcmp.gt.f32.partialorder %v1327_v3, %v615_v12 }
 0x17b   : > { %v617_v14 = vpop.permute.xlu1 %616 }
 0x17c   : > { %vm639_vm3 = vcmp.gt.f32.partialorder %v1345_v6, %v617_v14 }
 0x17d   : > { %v619_v15 = vpop.permute.xlu0 %618 }
 0x17e   : > { %vm640_vm6 = vcmp.gt.f32.partialorder %v1330_v4, %v619_v15 }
 0x17f   : > { %v621_v13 = vpop.permute.xlu1 %620 }
 0x180   : > { %vm641_vm9 = vcmp.gt.f32.partialorder %v1348_v7, %v621_v13 }
 0x181   : > { %v623_v16 = vpop.permute.xlu0 %622 }
 0x182   : > { %vm642_vm12 = vcmp.gt.f32.partialorder %v1359_v23, %v623_v16 }
 0x183   : > { %v625_v17 = vpop.permute.xlu1 %624 }
 0x184   : > { %vm643_vm15 = vcmp.gt.f32.partialorder %v1362_v25, %v625_v17 }
 0x185   : > { %v627_v18 = vpop.permute.xlu0 %626 }
 0x187   : > { %v629_v19 = vpop.permute.xlu1 %628 }
 0x189   : > { %v647_v20 = vpop.permute.xlu0 %646 }
 0x18a   : > { %v1569_v21 = vsel %vm638_vm2, 3, %v647_v20 }
 0x18b   : > { %vm896_vm4 = vcmp.eq.s32.totalorder %v1569_v21, 3  ;;  %v649_v22 = vpop.permute.xlu1 %648  ;;  %vm670_vm5 = vcmp.eq.s32.totalorder %v1569_v21, 0 }
 0x18c   : > { %v1575_v24 = vsel %vm896_vm4, %v1560_v8, 0.0  ;;  %v1577_v26 = vsel %vm639_vm3, 3, %v649_v22  ;;  %v710_v27 = vsel %vm670_vm5, %v1560_v8, 0.0  ;;  %vm644_vm3 = vcmp.gt.f32.partialorder %v1380_v40, %v627_v18 }
 0x18d   : > { %vm897_vm7 = vcmp.eq.s32.totalorder %v1577_v26, 3  ;;  %726 = vrot.lane.b32.xlu0 %v710_v27, %s1212_s16  ;;  %v651_v28 = vpop.permute.xlu0 %650  ;;  %vm671_vm8 = vcmp.eq.s32.totalorder %v1577_v26, 0 }
 0x18e   : > { %v1585_v29 = vsel %vm897_vm7, %v1562_v9, 0.0  ;;  %v1587_v30 = vsel %vm640_vm6, 3, %v651_v28  ;;  %v711_v31 = vsel %vm671_vm8, %v1562_v9, 0.0  ;;  %vm645_vm6 = vcmp.gt.f32.partialorder %v1383_v44, %v629_v19 }
 0x18f   : > { %vm898_vm10 = vcmp.eq.s32.totalorder %v1587_v30, 3  ;;  %728 = vrot.lane.b32.xlu1 %v711_v31, %s1212_s16  ;;  %v653_v32 = vpop.permute.xlu1 %652  ;;  %vm672_vm11 = vcmp.eq.s32.totalorder %v1587_v30, 0 }
 0x190   : > { %v1595_v33 = vsel %vm898_vm10, %v1556_v2, 0.0  ;;  %v1597_v34 = vsel %vm641_vm9, 3, %v653_v32  ;;  %v712_v35 = vsel %vm672_vm11, %v1556_v2, 0.0  ;;  %vm766_vm9 = vcmp.eq.s32.totalorder %v1569_v21, 1 }
 0x191   : > { %vm899_vm13 = vcmp.eq.s32.totalorder %v1597_v34, 3  ;;  %730 = vrot.lane.b32.xlu0 %v712_v35, %s1212_s16  ;;  %v655_v36 = vpop.permute.xlu0 %654  ;;  %vm673_vm14 = vcmp.eq.s32.totalorder %v1597_v34, 0  ;;  %vm767_vm10 = vcmp.eq.s32.totalorder %v1577_v26, 1  ;;  %v774_v56 = vsel %vm766_vm9, %v1560_v8, 0.0 }
 0x192   : > { %v1605_v37 = vsel %vm899_vm13, %v1558_v5, 0.0  ;;  %v1607_v38 = vsel %vm642_vm12, 3, %v655_v36  ;;  %v713_v39 = vsel %vm673_vm14, %v1558_v5, 0.0  ;;  %vm768_vm11 = vcmp.eq.s32.totalorder %v1587_v30, 1 }
 0x193   : > { %vm900_vm1 = vcmp.eq.s32.totalorder %v1607_v38, 3  ;;  %732 = vrot.lane.b32.xlu1 %v713_v39, %s1212_s16  ;;  %v657_v41 = vpop.permute.xlu1 %656  ;;  %vm674_vm2 = vcmp.eq.s32.totalorder %v1607_v38, 0  ;;  %v775_v57 = vsel %vm767_vm10, %v1562_v9, 0.0  ;;  %vm769_vm12 = vcmp.eq.s32.totalorder %v1597_v34, 1 }
 0x194   : > { %v1615_v42 = vsel %vm900_vm1, %v1564_v10, 0.0  ;;  %v1617_v43 = vsel %vm643_vm15, 3, %v657_v41  ;;  %v714_v45 = vsel %vm674_vm2, %v1564_v10, 0.0  ;;  %v776_v58 = vsel %vm768_vm11, %v1556_v2, 0.0 }
 0x195   : > { %vm901_vm4 = vcmp.eq.s32.totalorder %v1617_v43, 3  ;;  %734 = vrot.lane.b32.xlu0 %v714_v45, %s1212_s16  ;;  %v659_v46 = vpop.permute.xlu0 %658  ;;  %vm675_vm5 = vcmp.eq.s32.totalorder %v1617_v43, 0  ;;  %vm770_vm13 = vcmp.eq.s32.totalorder %v1607_v38, 1  ;;  %v777_v59 = vsel %vm769_vm12, %v1558_v5, 0.0 }
 0x196   : > { %v1625_v47 = vsel %vm901_vm4, %v1566_v11, 0.0  ;;  %v1627_v48 = vsel %vm644_vm3, 3, %v659_v46  ;;  %v715_v49 = vsel %vm675_vm5, %v1566_v11, 0.0  ;;  %vm771_vm14 = vcmp.eq.s32.totalorder %v1617_v43, 1 }
 0x197   : > { %736 = vrot.lane.b32.xlu1 %v715_v49, %s1212_s16  ;;  %v661_v50 = vpop.permute.xlu1 %660  ;;  %vm676_vm7 = vcmp.eq.s32.totalorder %v1627_v48, 0  ;;  %v778_v60 = vsel %vm770_vm13, %v1564_v10, 0.0  ;;  %v779_v61 = vsel %vm771_vm14, %v1566_v11, 0.0  ;;  %vm772_vm15 = vcmp.eq.s32.totalorder %v1627_v48, 1 }
 0x198   : > { %v1632_v51 = vsel %vm645_vm6, 3, %v661_v50  ;;  %vm831_vm2 = vcmp.eq.s32.totalorder %v1569_v21, 2  ;;  %vm832_vm3 = vcmp.eq.s32.totalorder %v1577_v26, 2  ;;  %vm833_vm4 = vcmp.eq.s32.totalorder %v1587_v30, 2 }
 0x199   : > { %v1634_v52 = vpop.permute.xlu0 %698  ;;  %vm677_vm8 = vcmp.eq.s32.totalorder %v1632_v51, 0  ;;  %vm773_vm1 = vcmp.eq.s32.totalorder %v1632_v51, 1  ;;  %v839_v0 = vsel %vm831_vm2, %v1560_v8, 0.0  ;;  %v840_v1 = vsel %vm832_vm3, %v1562_v9, 0.0 }
 0x19a   : > { %v716_v53 = vsel %vm676_vm7, %v1634_v52, 0.0  ;;  %v780_v62 = vsel %vm772_vm15, %v1634_v52, 0.0  ;;  %vm834_vm5 = vcmp.eq.s32.totalorder %v1597_v34, 2  ;;  %v841_v12 = vsel %vm833_vm4, %v1556_v2, 0.0 }
 0x19b   : > { %738 = vrot.lane.b32.xlu0 %v716_v53, %s1212_s16  ;;  %v1639_v54 = vpop.permute.xlu1 %700  ;;  %vm835_vm6 = vcmp.eq.s32.totalorder %v1607_v38, 2  ;;  %v842_v8 = vsel %vm834_vm5, %v1558_v5, 0.0  ;;  %vm836_vm7 = vcmp.eq.s32.totalorder %v1617_v43, 2 }
 0x19c   : > { %v717_v55 = vsel %vm677_vm8, %v1639_v54, 0.0  ;;  %v781_v63 = vsel %vm773_vm1, %v1639_v54, 0.0  ;;  %v843_v2 = vsel %vm835_vm6, %v1564_v10, 0.0 }
 0x19d   : > { %740 = vrot.lane.b32.xlu1 %v717_v55, %s1212_s16  ;;  %s1148_s16 = scalar_lea.vmem %s1679_s9, 1024 }
 0x19e   : > { %p1149_p11 = scmp.ne.s32.totalorder %s1679_s9, %s1148_s16  ;;  %p1156_p1 = scmp.lt.s32.totalorder %s1154_s20, %s1148_s16 }
 0x19f   : > { %790 = vrot.lane.b32.xlu0 %v774_v56, %s1215_s23 }
 0x1a0   : > { %p1150_p12 = pnand %p1149_p11, %p1297_p5  ;;  %p1157_p2 = por %p1156_p1, %p1155_p0 }
 0x1a1   : > { %792 = vrot.lane.b32.xlu1 %v775_v57, %s1215_s23 }
 0x1a2   : > { %p1151_p13 = pneg %p1150_p12 }
 0x1a3   : > { %794 = vrot.lane.b32.xlu0 %v776_v58, %s1215_s23 }
 0x1a4   : > { %p1158_p3 = pnand %p1157_p2, %p1151_p13 }
 0x1a5   : > { %796 = vrot.lane.b32.xlu1 %v777_v59, %s1215_s23 }
 0x1a7   : > { %798 = vrot.lane.b32.xlu0 %v778_v60, %s1215_s23 }
 0x1a9   : > { %800 = vrot.lane.b32.xlu1 %v779_v61, %s1215_s23 }
 0x1ab   : > { %802 = vrot.lane.b32.xlu0 %v780_v62, %s1215_s23 }
 0x1ad   : > { %804 = vrot.lane.b32.xlu1 %v781_v63, %s1215_s23 }
 0x1af   : > { %855 = vrot.lane.b32.xlu0 %v839_v0, %s1214_s22 }
 0x1b1   : > { %857 = vrot.lane.b32.xlu1 %v840_v1, %s1214_s22 }
 0x1b3   : > { %859 = vrot.lane.b32.xlu0 %v841_v12, %s1214_s22 }
 0x1b5   : > { %861 = vrot.lane.b32.xlu1 %v842_v8, %s1214_s22 }
 0x1b6   : > { %1161 = shalt.err (!%p1158_p3)
}
 0x1b7   : > { %s1162_s29 = scalar_lea.hbm %s1677_s15, 1024  ;;  %s1166_s8 = scalar_lea.hbm %s1856_s6, 2048 }
 0x1b8   : > { %p1163_p4 = scmp.ne.s32.totalorder %s1677_s15, %s1162_s29  ;;  %p1167_p9 = scmp.lt.u32.totalorder %s1677_s15, %s1856_s6 }
 0x1b9   : > { %p1168_p10 = scmp.lt.u32.totalorder %s1166_s8, %s1162_s29  ;;  %p1170_p12 = scmp.lt.u32.totalorder %s1162_s29, %s1677_s15 }
 0x1ba   : > { %p1164_p7 = pnand %p1163_p4, %p1297_p5 }
 0x1bb   : > { %p1169_p11 = por %p1168_p10, %p1167_p9 }
 0x1bc   : > { %p1165_p8 = pneg %p1164_p7 }
 0x1bd   : > { %p1171_p13 = por %p1170_p12, %p1169_p11 }
 0x1bf   : > { %p1172_p0 = pnand %p1171_p13, %p1165_p8 }
 0x1c1   : > { %1175 = shalt.err (!%p1172_p0)
}
 0x1c2   : > { %s1217_s16 = smov 128   ;;  %s1218_s17 = smov 8   ;;  %863 = vrot.lane.b32.xlu0 %v843_v2, %s1214_s22  ;;  %v844_v5 = vsel %vm836_vm7, %v1566_v11, 0.0  ;;  %vm837_vm8 = vcmp.eq.s32.totalorder %v1627_v48, 2  ;;  %vm838_vm9 = vcmp.eq.s32.totalorder %v1632_v51, 2  ;;  %vm822_vm10 = vcmask 523520  }
 0x1c3   : > { %1101 = dma.vmem_to_hbm [thread:$0]  (%p1297_p5), %s1679_s9, 1024, %s1677_s15, %s1686_s28, %s1217_s16, %s1217_s16, %s1218_s17   ;;  %v845_v9 = vsel %vm837_vm8, %v1634_v52, 0.0  ;;  %v846_v10 = vsel %vm838_vm9, %v1639_v54, 0.0  ;;  %vm920_vm11 = vcmask 1048320   ;;  %v912_v60 = vadd.f32 %v1575_v24, %v1327_v3 }
 0x1c4   : > { %865 = vrot.lane.b32.xlu1 %v844_v5, %s1214_s22  ;;  %s1725_s15 = scalar_lea.vmem %s1857_s7, %s1315_s18  ;;  %v913_v63 = vadd.f32 %v1585_v29, %v1345_v6  ;;  %v915_v29 = vadd.f32 %v1605_v37, %v1348_v7  ;;  %vm902_vm12 = vcmp.eq.s32.totalorder %v1627_v48, 3  ;;  %v917_v2 = vadd.f32 %v1625_v47, %v1362_v25 }
 0x1c5   : > { %vm903_vm13 = vcmp.eq.s32.totalorder %v1632_v51, 3 }
 0x1c6   : > { %867 = vrot.lane.b32.xlu0 %v845_v9, %s1214_s22 }
 0x1c8   : > { %869 = vrot.lane.b32.xlu1 %v846_v10, %s1214_s22 }
 0x1ff   : > { %v727_v11 = vpop.permute.xlu0 %726 }
 0x200   : > { %v750_v14 = vadd.f32 %v727_v11, %v1327_v3 }
 0x201   : > { %v729_v15 = vpop.permute.xlu1 %728 }
 0x202   : > { %758 = vst.msk [vmem:[%s1725_s15] sm:$0xff] %vm357_vm0, %v750_v14  ;;  %v751_v13 = vadd.f32 %v729_v15, %v1345_v6 }
 0x203   : > { %v731_v16 = vpop.permute.xlu0 %730 }
 0x204   : > { %759 = vst.msk [vmem:[%s1725_s15 + $0x8] sm:$0xff] %vm357_vm0, %v751_v13  ;;  %v752_v17 = vadd.f32 %v731_v16, %v1330_v4 }
 0x205   : > { %v733_v18 = vpop.permute.xlu1 %732 }
 0x206   : > { %760 = vst.msk [vmem:[%s1725_s15 + $0x10] sm:$0xff] %vm357_vm0, %v752_v17  ;;  %v753_v19 = vadd.f32 %v733_v18, %v1348_v7 }
 0x207   : > { %v735_v20 = vpop.permute.xlu0 %734 }
 0x208   : > { %761 = vst.msk [vmem:[%s1725_s15 + $0x18] sm:$0xff] %vm357_vm0, %v753_v19  ;;  %v754_v21 = vadd.f32 %v735_v20, %v1359_v23 }
 0x209   : > { %v737_v22 = vpop.permute.xlu1 %736 }
 0x20a   : > { %762 = vst.msk [vmem:[%s1725_s15 + $0x20] sm:$0xff] %vm357_vm0, %v754_v21  ;;  %v755_v26 = vadd.f32 %v737_v22, %v1362_v25 }
 0x20c   : > { %763 = vst.msk [vmem:[%s1725_s15 + $0x28] sm:$0xff] %vm357_vm0, %v755_v26 }
 0x20d   : > { %v739_v27 = vpop.permute.xlu0 %738 }
 0x20e   : > { %v756_v28 = vadd.f32 %v739_v27, %v1380_v40 }
 0x20f   : > { %v741_v30 = vpop.permute.xlu1 %740 }
 0x210   : > { %764 = vst.msk [vmem:[%s1725_s15 + $0x30] sm:$0xff] %vm357_vm0, %v756_v28  ;;  %v757_v31 = vadd.f32 %v741_v30, %v1383_v44 }
 0x211   : > { %v791_v32 = vpop.permute.xlu0 %790 }
 0x212   : > { %765 = vst.msk [vmem:[%s1725_s15 + $0x38] sm:$0xff] %vm357_vm0, %v757_v31  ;;  %v814_v34 = vadd.f32 %v791_v32, %v1327_v3  ;;  %vm887_vm0 = vcmask 785920  }
 0x213   : > { %v793_v35 = vpop.permute.xlu1 %792 }
 0x214   : > { %823 = vst.msk [vmem:[%s1725_s15] sm:$0xff] %vm822_vm10, %v814_v34  ;;  %v815_v36 = vadd.f32 %v793_v35, %v1345_v6 }
 0x215   : > { %v795_v38 = vpop.permute.xlu0 %794 }
 0x216   : > { %824 = vst.msk [vmem:[%s1725_s15 + $0x8] sm:$0xff] %vm822_vm10, %v815_v36  ;;  %v816_v39 = vadd.f32 %v795_v38, %v1330_v4 }
 0x217   : > { %v797_v41 = vpop.permute.xlu1 %796 }
 0x218   : > { %825 = vst.msk [vmem:[%s1725_s15 + $0x10] sm:$0xff] %vm822_vm10, %v816_v39  ;;  %v817_v43 = vadd.f32 %v797_v41, %v1348_v7 }
 0x219   : > { %v799_v45 = vpop.permute.xlu0 %798 }
 0x21a   : > { %826 = vst.msk [vmem:[%s1725_s15 + $0x18] sm:$0xff] %vm822_vm10, %v817_v43  ;;  %v818_v46 = vadd.f32 %v799_v45, %v1359_v23 }
 0x21b   : > { %v801_v49 = vpop.permute.xlu1 %800 }
 0x21c   : > { %827 = vst.msk [vmem:[%s1725_s15 + $0x20] sm:$0xff] %vm822_vm10, %v818_v46  ;;  %v819_v50 = vadd.f32 %v801_v49, %v1362_v25 }
 0x21d   : > { %v803_v53 = vpop.permute.xlu0 %802 }
 0x21e   : > { %828 = vst.msk [vmem:[%s1725_s15 + $0x28] sm:$0xff] %vm822_vm10, %v819_v50  ;;  %v820_v55 = vadd.f32 %v803_v53, %v1380_v40 }
 0x21f   : > { %v805_v56 = vpop.permute.xlu1 %804 }
 0x220   : > { %829 = vst.msk [vmem:[%s1725_s15 + $0x30] sm:$0xff] %vm822_vm10, %v820_v55  ;;  %v821_v57 = vadd.f32 %v805_v56, %v1383_v44 }
 0x221   : > { %v856_v58 = vpop.permute.xlu0 %855 }
 0x222   : > { %830 = vst.msk [vmem:[%s1725_s15 + $0x38] sm:$0xff] %vm822_vm10, %v821_v57  ;;  %v879_v59 = vadd.f32 %v856_v58, %v1327_v3  ;;  %v914_v3 = vadd.f32 %v1595_v33, %v1330_v4 }
 0x223   : > { %v858_v61 = vpop.permute.xlu1 %857 }
 0x224   : > { %888 = vst.msk [vmem:[%s1725_s15] sm:$0xff] %vm887_vm0, %v879_v59  ;;  %v880_v62 = vadd.f32 %v858_v61, %v1345_v6 }
 0x225   : > { %921 = vst.msk [vmem:[%s1725_s15] sm:$0xff] %vm920_vm11, %v912_v60  ;;  %v860_v0 = vpop.permute.xlu0 %859 }
 0x226   : > { %889 = vst.msk [vmem:[%s1725_s15 + $0x8] sm:$0xff] %vm887_vm0, %v880_v62  ;;  %v881_v1 = vadd.f32 %v860_v0, %v1330_v4  ;;  %v916_v4 = vadd.f32 %v1615_v42, %v1359_v23  ;;  %v911_v42 = vsel %vm903_vm13, %v1639_v54, 0.0 }
 0x227   : > { %922 = vst.msk [vmem:[%s1725_s15 + $0x8] sm:$0xff] %vm920_vm11, %v913_v63  ;;  %v862_v24 = vpop.permute.xlu1 %861  ;;  %v919_v47 = vadd.f32 %v911_v42, %v1383_v44 }
 0x228   : > { %890 = vst.msk [vmem:[%s1725_s15 + $0x10] sm:$0xff] %vm887_vm0, %v881_v1  ;;  %v882_v6 = vadd.f32 %v862_v24, %v1348_v7  ;;  %v910_v7 = vsel %vm902_vm12, %v1634_v52, 0.0 }
 0x229   : > { %923 = vst.msk [vmem:[%s1725_s15 + $0x10] sm:$0xff] %vm920_vm11, %v914_v3  ;;  %v918_v52 = vadd.f32 %v910_v7, %v1380_v40 }
 0x22a   : > { %891 = vst.msk [vmem:[%s1725_s15 + $0x18] sm:$0xff] %vm887_vm0, %v882_v6 }
 0x22b   : > { %924 = vst.msk [vmem:[%s1725_s15 + $0x18] sm:$0xff] %vm920_vm11, %v915_v29 }
 0x234   : > { %v864_v12 = vpop.permute.xlu0 %863 }
 0x235   : > { %v883_v8 = vadd.f32 %v864_v12, %v1359_v23 }
 0x236   : > { %v866_v33 = vpop.permute.xlu1 %865 }
 0x237   : > { %892 = vst.msk [vmem:[%s1725_s15 + $0x20] sm:$0xff] %vm887_vm0, %v883_v8  ;;  %v884_v37 = vadd.f32 %v866_v33, %v1362_v25 }
 0x238   : > { %925 = vst.msk [vmem:[%s1725_s15 + $0x20] sm:$0xff] %vm920_vm11, %v916_v4  ;;  %v868_v23 = vpop.permute.xlu0 %867 }
 0x239   : > { %893 = vst.msk [vmem:[%s1725_s15 + $0x28] sm:$0xff] %vm887_vm0, %v884_v37  ;;  %v885_v48 = vadd.f32 %v868_v23, %v1380_v40 }
 0x23a   : > { %926 = vst.msk [vmem:[%s1725_s15 + $0x28] sm:$0xff] %vm920_vm11, %v917_v2  ;;  %v870_v5 = vpop.permute.xlu1 %869 }
 0x23b   : > { %894 = vst.msk [vmem:[%s1725_s15 + $0x30] sm:$0xff] %vm887_vm0, %v885_v48  ;;  %v886_v25 = vadd.f32 %v870_v5, %v1383_v44 }
 0x23c   : > { %927 = vst.msk [vmem:[%s1725_s15 + $0x30] sm:$0xff] %vm920_vm11, %v918_v52 }
 0x23d   : > { %895 = vst.msk [vmem:[%s1725_s15 + $0x38] sm:$0xff] %vm887_vm0, %v886_v25 }
 0x23e   : > { %928 = vst.msk [vmem:[%s1725_s15 + $0x38] sm:$0xff] %vm920_vm11, %v919_v47 }
 0x23f PF: > { %p1107_p5 = scmp.ge.s32.totalorder %s1210_s27, 2  ;;  %s966_s18 = sand.u32 1, %s1198_s24  }
 0x240   : > { %s967_s22 = scalar_lea.sflag [#allocation3], %s966_s18 }
 0x241   : > { %p1104_p1 = pnand %p1107_p5, %p1301_p6 }
 0x243   : > { %1193 = dma.done.wait (!%p1104_p1), %s967_s22, 1024  }
 0x244   : > { %1195 = vsyncadd (!%p1104_p1), %s967_s22, 4294966272  ;;  %p18_p2 = scmp.ge.s32.totalorder %s1284_s30, 4   ;;  %s1860_s24 = smov %s1202_s25 }
 0x245   : > { %s1861_s25 = smov %s1206_s26  ;;  %s1862_s26 = smov %s1295_s10 }
 0x246   : > { %s1863_s27 = smov %s1284_s30  ;;  %20 = sbr.rel (!%p18_p2) target bundleno = 3 (0x3), region = 94 }
 0x24d   :  { %980 = vsyncpa [#allocation3], 1 }
 0x24e   :  { %982 = vsyncpa [#allocation3 + $0x1], 1 }

// kernel: frru_forward.3
= control target key start
LH: loop header
LB: loop body
LE: loop exit
PB: predicated region body
PF: predicated region fallthrough
CT: control target
= control target key end

     0   :  { %s2944_s21 = smov 0   ;;  %s4068_s0 = inlined_call_operand.vmem [shape: f32[2,64,128], index: 0, kind: input, shape index: {}]   ;;  %s4069_s1 = inlined_call_operand.vmem [shape: f32[2,64,16], index: 1, kind: input, shape index: {}]   ;;  %s4070_s2 = inlined_call_operand.vmem [shape: bf16[1152,32], index: 2, kind: input, shape index: {}]   ;;  %s4071_s3 = inlined_call_operand.vmem [shape: f32[1,32], index: 3, kind: input, shape index: {}]   ;;  %s4072_s4 = inlined_call_operand.vmem [shape: f32[2,64,32], index: 4, kind: output, shape index: {0}]   ;;  %s4073_s5 = inlined_call_operand.vmem [shape: f32[2,1,32], index: 5, kind: output, shape index: {1}]   ;;  %s4074_s6 = inlined_call_operand.vmem [shape: f32[2,1,32], index: 6, kind: output, shape index: {2}]  }
   0x1 LB: > { %s2388_s22 = sadd.s32 4294967295, %s2903_s21   ;;  %p2392_p0 = scmp.ge.s32.totalorder %s2903_s21, 1  ;;  %s2903_s21 = sphi %s2944_s21, %s17_s21  }
   0x2   : > { %p227_p1 = scmp.lt.s32.totalorder %s2903_s21, 3 }
   0x4   : > { %p228_p2 = pnand %p2392_p0, %p227_p1 }
   0x5   : > { %p268_p3 = scmp.lt.s32.totalorder (!%p228_p2), %s2388_s22, 1  ;;  %vm4075_vm0 = vsmask.f32 (!%p228_p2), 256  ;;  %vm413_vm1 = vcmask (!%p228_p2), 1040384   ;;  %v416_v0 = vld [vmem:[#allocation2 + $0x4] sm:$0x1] (!%p228_p2) }
   0x6   : > { %231 = sbr.rel (%p228_p2) target bundleno = 502 (0x1f6), region = 36  ;;  %vm415_vm2 = vmand (!%p228_p2), %vm413_vm1, %vm4075_vm0  ;;  %s2905_s30 = smov (!%p228_p2), 96   ;;  %v2817_v20 = vld [vmem:[%s4070_s2 + $0xc0] sm:$0xff] (!%p228_p2)   ;;  %v2821_v30 = vld [vmem:[%s4070_s2 + $0xc8] sm:$0xff] (!%p228_p2)   ;;  %vm450_vm3 = vsmask.f32 (!%p228_p2), 4368 }
   0x7   : > { %v417_v4 = vsel (!%p228_p2), %vm415_vm2, 0, %v416_v0  ;;  %s2906_s7 = smov (!%p228_p2), 32   ;;  %s2907_s8 = smov (!%p228_p2), 64   ;;  %v2818_v21 = vld [vmem:[%s4070_s2 + $0x80] sm:$0xff] (!%p228_p2)   ;;  %2588 = vmatprep.subr.bf16.mxu1 (!%p228_p2), %v2817_v20  ;;  %v2822_v32 = vld [vmem:[%s4070_s2 + $0x88] sm:$0xff] (!%p228_p2)   ;;  %vm419_vm4 = vcmask (!%p228_p2), 1043456   ;;  %vm3042_vm7 = vmor (!%p228_p2), %vm4075_vm0, %vm450_vm3 }
   0x8   : > { %418 = vst [vmem:[#allocation2 + $0x4] sm:$0x1] (!%p228_p2), %v417_v4  ;;  %2589 = vmatpush3.bf16.msra.mxu1 (!%p228_p2), %v2818_v21  ;;  %v2819_v29 = vld [vmem:[%s4070_s2 + $0x40] sm:$0xff] (!%p228_p2)   ;;  %vm420_vm5 = vsmask.f32 (!%p228_p2), 7938  ;;  %v2823_v40 = vld [vmem:[%s4070_s2 + $0x48] sm:$0xff] (!%p228_p2)  }
   0x9   : > { %v2820_v31 = vld [vmem:[%s4070_s2] sm:$0xff] (!%p228_p2)   ;;  %2548 = vmatprep.subr.bf16.mxu0 (!%p228_p2), %v2819_v29  ;;  %2590 = vmatprep.subr.bf16.mxu1 (!%p228_p2), %v2821_v30  ;;  %vm421_vm6 = vmand (!%p228_p2), %vm419_vm4, %vm420_vm5  ;;  %v2825_v41 = vld [vmem:[%s4070_s2 + $0xd0] sm:$0xff] (!%p228_p2)   ;;  %v2908_v21 = vmov (!%p228_p2), 0   ;;  %vm4079_vm11 = vcmask (!%p228_p2), 257024   ;;  %vm4080_vm14 = vcmask (!%p228_p2), 388352   ;;  %vm4076_vm2 = vcmask (!%p228_p2), 1043840  }
   0xa   : > { %v422_v33 = vld [vmem:[#allocation2 + $0x24] sm:$0xf] (!%p228_p2)  ;;  %2549 = vmatpush3.bf16.msra.mxu0 (!%p228_p2), %v2820_v31  ;;  %v2824_v44 = vld [vmem:[%s4070_s2 + $0x8] sm:$0xff] (!%p228_p2)   ;;  %v2826_v45 = vld [vmem:[%s4070_s2 + $0x90] sm:$0xff] (!%p228_p2)   ;;  %412 = vst [vmem:[#allocation2] sm:$0xf] (!%p228_p2), %v2908_v21 }
   0xb   : > { %v423_v43 = vsel (!%p228_p2), %vm421_vm6, 0, %v422_v33  ;;  %2550 = vmatprep.subr.bf16.mxu0 (!%p228_p2), %v2823_v40  ;;  %v2827_v54 = vld [vmem:[%s4070_s2 + $0x50] sm:$0xff] (!%p228_p2)   ;;  %v2829_v56 = vld [vmem:[%s4070_s2 + $0xd8] sm:$0xff] (!%p228_p2)   ;;  %425 = vst [vmem:[#allocation2 + $0x28] sm:$0x1] (!%p228_p2), %v2908_v21  ;;  %v2839_v33 = vld [vmem:[%s4070_s2 + $0x68] sm:$0xff] (!%p228_p2)  }
   0xc   : > { %2591 = vmatpush3.bf16.msra.mxu1 (!%p228_p2), %v2822_v32  ;;  %424 = vst [vmem:[#allocation2 + $0x24] sm:$0xf] (!%p228_p2), %v423_v43  ;;  %v2828_v55 = vld [vmem:[%s4070_s2 + $0x10] sm:$0xff] (!%p228_p2)   ;;  %v2830_v59 = vld [vmem:[%s4070_s2 + $0x98] sm:$0xff] (!%p228_p2)   ;;  %v2838_v32 = vld [vmem:[%s4070_s2 + $0xa8] sm:$0xff] (!%p228_p2)   ;;  %vm903_vm6 = vcmask (!%p228_p2), 1044484  }
   0xd   : > { %s4185_s22 = smov (!%p268_p3, %s2388_s22), 1  ;;  %2592 = vmatprep.subr.bf16.mxu1 %v2825_v41  ;;  %v2842_v43 = vld [vmem:[%s4070_s2 + $0xb0] sm:$0xff]  }
   0xe   : > { %s2955_s23 = sshll.u32 %s4185_s22, 6  ;;  %2551 = vmatpush3.bf16.msra.mxu0 %v2824_v44  ;;  %v2843_v44 = vld [vmem:[%s4070_s2 + $0x70] sm:$0xff]   ;;  %s285_s20 = scalar_lea.vmem %s4073_s5, %s4185_s22 }
   0xf   : > { %s2961_s26 = scalar_lea.vmem %s4068_s0, %s2955_s23  ;;  %s2967_s29 = scalar_lea.vmem %s4069_s1, %s2955_s23  ;;  %2552 = vmatprep.subr.bf16.mxu0 %v2827_v54 }
  0x10   : > { %v2972_v1 = vld [vmem:[%s2961_s26] sm:$0xff]  ;;  %v2975_v2 = vld [vmem:[%s2961_s26 + $0x8] sm:$0xff]  ;;  %v2978_v3 = vld [vmem:[%s2961_s26 + $0x10] sm:$0xff]  ;;  %2593 = vmatpush3.bf16.msra.mxu1 %v2826_v45  ;;  %s288_s25 = scalar_lea.vmem %s4074_s6, %s4185_s22 }
  0x11   : > { %v2772_v5 = vpack.i.bf16 %v2975_v2, %v2972_v1  ;;  %v2983_v6 = vld [vmem:[%s2961_s26 + $0x18] sm:$0xff]  ;;  %v404_v7 = vld [vmem:[%s2967_s29] sm:$0xff]  ;;  %v405_v9 = vld [vmem:[%s2967_s29 + $0x8] sm:$0xff]  ;;  %2594 = vmatprep.subr.bf16.mxu1 %v2829_v56 }
  0x12   : > { %v2540_v8 = vpack.c.bf16 %v404_v7, %v404_v7  ;;  %v2787_v10 = vpack.i.bf16 %v2983_v6, %v2978_v3  ;;  %v2541_v12 = vpack.c.bf16 %v405_v9, %v405_v9  ;;  %v406_v13 = vld [vmem:[%s2967_s29 + $0x10] sm:$0xff]  ;;  %v2995_v16 = vld [vmem:[%s2961_s26 + $0x20] sm:$0xff]  ;;  %v2998_v17 = vld [vmem:[%s2961_s26 + $0x28] sm:$0xff]  ;;  %2553 = vmatpush3.bf16.msra.mxu0 %v2828_v55 }
  0x13   : > { %2773 = vrot.lane.b32.xlu0 %v2772_v5, %s2905_s30  ;;  %2783 = vrot.lane.b32.xlu1 %v2772_v5, %s2906_s7  ;;  %v2542_v19 = vpack.c.bf16 %v406_v13, %v406_v13  ;;  %v2802_v23 = vpack.i.bf16 %v2998_v17, %v2995_v16  ;;  %v407_v24 = vld [vmem:[%s2967_s29 + $0x18] sm:$0xff]  ;;  %v408_v28 = vld [vmem:[%s2967_s29 + $0x20] sm:$0xff] }
  0x14   : > { %v575_v11 = vshrl.u32 %v2540_v8, 16  ;;  %v578_v15 = vshll.u32 %v2540_v8, 16  ;;  %v583_v18 = vshrl.u32 %v2541_v12, 16  ;;  %v586_v26 = vshll.u32 %v2541_v12, 16  ;;  %v3053_v46 = vld [vmem:[%s2961_s26 + $0x30] sm:$0xff]  ;;  %v409_v47 = vld [vmem:[%s2967_s29 + $0x28] sm:$0xff]  ;;  %2595 = vmatpush3.bf16.msra.mxu1 %v2830_v59 }
  0x15   : > { %v592_v27 = vshrl.u32 %v2542_v19, 16  ;;  %v2543_v34 = vpack.c.bf16 %v407_v24, %v407_v24  ;;  %v3028_v35 = vpack.c.bf16 %v408_v28, %v408_v28  ;;  %v595_v39 = vshll.u32 %v2542_v19, 16  ;;  %v410_v53 = vld [vmem:[%s2967_s29 + $0x30] sm:$0xff]  ;;  %v411_v0 = vld [vmem:[%s2967_s29 + $0x38] sm:$0xff]  ;;  %v2834_v13 = vld [vmem:[%s4070_s2 + $0xa0] sm:$0xff]  }
  0x16   : > { %v577_v14 = vrot.slane %v575_v11, 7  ;;  %v3011_v25 = vrot.slane %v583_v18, 7  ;;  %v3075_v58 = vpack.c.bf16 %v409_v47, %v409_v47  ;;  %v2807_v60 = vpack.i.bf16 %v3053_v46, %v2998_v17  ;;  %v2831_v7 = vld [vmem:[%s4070_s2 + $0x58] sm:$0xff]   ;;  %v2836_v24 = vld [vmem:[%s4070_s2 + $0x20] sm:$0xff]   ;;  %v2837_v28 = vld [vmem:[%s4070_s2 + $0xe8] sm:$0xff]  }
  0x17   : > { %2778 = vrot.lane.b32.xlu0 %v2772_v5, %s2907_s8  ;;  %2788 = vrot.lane.b32.xlu1 %v2787_v10, %s2905_s30  ;;  %v3031_v38 = vrot.slane %v592_v27, 7  ;;  %v601_v48 = vshrl.u32 %v2543_v34, 16  ;;  %v610_v52 = vshrl.u32 %v3028_v35, 16  ;;  %v604_v57 = vshll.u32 %v2543_v34, 16  ;;  %v2832_v8 = vld [vmem:[%s4070_s2 + $0x18] sm:$0xff]   ;;  %v2840_v34 = vld [vmem:[%s4070_s2 + $0x28] sm:$0xff]  }
  0x18   : > { %v580_v22 = vor.u32 %v578_v15, %v577_v14  ;;  %v581_v36 = vrot.slane %v577_v14, 4  ;;  %v588_v37 = vor.u32 %v586_v26, %v3011_v25  ;;  %v590_v50 = vrot.slane %v3011_v25, 4  ;;  %2554 = vmatprep.subr.bf16.mxu0 %v2831_v7  ;;  %v3108_v14 = vld [vmem:[%s2961_s26 + $0x38] sm:$0xff]  ;;  %v2844_v45 = vld [vmem:[%s4070_s2 + $0x30] sm:$0xff]  }
  0x19   : > { %v597_v51 = vor.u32 %v595_v39, %v3031_v38  ;;  %v603_v61 = vrot.slane %v601_v48, 7  ;;  %v613_v62 = vshll.u32 %v3028_v35, 16  ;;  %v2546_v63 = vpack.c.bf16 %v410_v53, %v410_v53  ;;  %2555 = vmatpush3.bf16.msra.mxu0 %v2832_v8  ;;  %v2848_v53 = vld [vmem:[%s4070_s2 + $0x78] sm:$0xff]  }
  0x1a   : > { %v589_v49 = vsel %vm3042_vm7, %v581_v36, %v588_v37  ;;  %v3089_v5 = vrot.slane %v610_v52, 7  ;;  %v619_v9 = vshrl.u32 %v3075_v58, 16  ;;  %v599_v11 = vrot.slane %v3031_v38, 4  ;;  %v2841_v38 = vld [vmem:[%s4070_s2 + $0xf0] sm:$0xff]   ;;  %v2846_v52 = vld [vmem:[%s4070_s2 + $0xb8] sm:$0xff]  }
  0x1b   : > { %2793 = vrot.lane.b32.xlu0 %v2787_v10, %s2907_s8  ;;  %2798 = vrot.lane.b32.xlu1 %v2787_v10, %s2906_s7  ;;  %v598_v4 = vsel %vm3042_vm7, %v590_v50, %v597_v51  ;;  %v2833_v10 = vld [vmem:[%s4070_s2 + $0xe0] sm:$0xff]   ;;  %v628_v12 = vshrl.u32 %v2546_v63, 16  ;;  %v606_v15 = vor.u32 %v604_v57, %v603_v61  ;;  %v608_v18 = vrot.slane %v603_v61, 4  ;;  %v2845_v51 = vld [vmem:[%s4070_s2 + $0xf8] sm:$0xff]  }
  0x1c   : > { %v615_v19 = vor.u32 %v613_v62, %v3089_v5  ;;  %v2547_v20 = vpack.c.bf16 %v411_v0, %v411_v0  ;;  %2596 = vmatprep.subr.bf16.mxu1 %v2833_v10  ;;  %v631_v26 = vshll.u32 %v2546_v63, 16  ;;  %v622_v27 = vshll.u32 %v3075_v58, 16  ;;  %v2849_v55 = vld [vmem:[%s4070_s2 + $0x38] sm:$0xff]   ;;  %v2850_v57 = vld [vmem:[%s4070_s2 + $0x1c0] sm:$0xff]  }
  0x1d   : > { %2597 = vmatpush3.bf16.msra.mxu1 %v2834_v13  ;;  %v630_v25 = vrot.slane %v628_v12, 7  ;;  %v607_v29 = vsel %vm3042_vm7, %v599_v11, %v606_v15  ;;  %v617_v36 = vrot.slane %v3089_v5, 4  ;;  %v2852_v58 = vld [vmem:[%s4070_s2 + $0x140] sm:$0xff]   ;;  %v708_v59 = vlaneseq }
  0x1e   : > { %v616_v30 = vsel %vm3042_vm7, %v608_v18, %v615_v19  ;;  %v637_v31 = vshrl.u32 %v2547_v20, 16  ;;  %2598 = vmatprep.subr.bf16.mxu1 %v2837_v28  ;;  %v640_v37 = vshll.u32 %v2547_v20, 16 }
  0x1f   : > { %645 = vrot.lane.b32.xlu0 %v580_v22, %s2906_s7  ;;  %2803 = vrot.lane.b32.xlu1 %v2802_v23, %s2905_s30  ;;  %v2835_v22 = vld [vmem:[%s4070_s2 + $0x60] sm:$0xff]   ;;  %v621_v23 = vrot.slane %v619_v9, 7  ;;  %v633_v39 = vor.u32 %v631_v26, %v630_v25 }
  0x20   : > { %2556 = vmatprep.subr.bf16.mxu0 %v2835_v22  ;;  %v639_v41 = vrot.slane %v637_v31, 7 }
  0x21   : > { %2557 = vmatpush3.bf16.msra.mxu0 %v2836_v24  ;;  %2599 = vmatpush3.bf16.msra.mxu1 %v2838_v32  ;;  %v626_v35 = vrot.slane %v621_v23, 4  ;;  %v624_v40 = vor.u32 %v622_v27, %v621_v23 }
  0x22   : > { %2558 = vmatprep.subr.bf16.mxu0 %v2839_v33  ;;  %2600 = vmatprep.subr.bf16.mxu1 %v2841_v38  ;;  %v642_v50 = vor.u32 %v640_v37, %v639_v41  ;;  %v644_v54 = vrot.slane %v639_v41, 4 }
  0x23   : > { %348 = vrot.lane.b32.xlu0 %v2995_v16, %s2907_s8  ;;  %380 = vrot.lane.b32.xlu1 %v2995_v16, %s2906_s7  ;;  %v634_v47 = vsel %vm3042_vm7, %v626_v35, %v633_v39  ;;  %v625_v48 = vsel %vm3042_vm7, %v617_v36, %v624_v40 }
  0x25   : > { %2559 = vmatpush3.bf16.msra.mxu0 %v2840_v34  ;;  %2601 = vmatpush3.bf16.msra.mxu1 %v2842_v43 }
  0x26   : > { %2560 = vmatprep.subr.bf16.mxu0 %v2843_v44  ;;  %2602 = vmatprep.subr.bf16.mxu1 %v2845_v51 }
  0x27   : > { %320 = vrot.lane.b32.xlu0 %v3053_v46, %s2905_s30  ;;  %647 = vrot.lane.b32.xlu1 %v589_v49, %s2906_s7  ;;  %v635_v49 = vrot.slane %v630_v25, 4 }
  0x29   : > { %2561 = vmatpush3.bf16.msra.mxu0 %v2844_v45  ;;  %v643_v56 = vsel %vm3042_vm7, %v635_v49, %v642_v50  ;;  %2603 = vmatpush3.bf16.msra.mxu1 %v2846_v52 }
  0x2a   : > { %2562 = vmatprep.subr.bf16.mxu0 %v2848_v53  ;;  %2668 = vmatprep.subr.bf16.mxu1 %v2850_v57 }
  0x2b   : > { %649 = vrot.lane.b32.xlu0 %v598_v4, %s2906_s7  ;;  %2808 = vrot.lane.b32.xlu1 %v2807_v60, %s2907_s8 }
  0x2d   : > { %2563 = vmatpush3.bf16.msra.mxu0 %v2849_v55 }
  0x2e   : > { %2628 = vmatprep.subr.bf16.mxu0 %v2852_v58 }
  0x2f   : > { %2813 = vrot.lane.b32.xlu0 %v2807_v60, %s2906_s7  ;;  %322 = vrot.lane.b32.xlu1 %v3108_v14, %s2905_s30  ;;  %v3186_v60 = vshrl.u32 %v708_v59, 7  ;;  %s282_s30 = scalar_lea.vmem %s4072_s4, %s2955_s23 }
  0x31   : > { %v3189_v61 = vadd.s32 8, %v3186_v60  ;;  %v721_v62 = vand.u32 7, %v3186_v60  ;;  %v3200_v9 = vadd.s32 16, %v3186_v60  ;;  %v3203_v10 = vadd.s32 24, %v3186_v60 }
  0x32   : > { %v3227_v34 = vadd.s32 40, %v3186_v60  ;;  %v3258_v55 = vadd.s32 48, %v3186_v60 }
  0x33   : > { %651 = vrot.lane.b32.xlu0 %v607_v29, %s2906_s7  ;;  %653 = vrot.lane.b32.xlu1 %v616_v30, %s2906_s7  ;;  %v728_v7 = vand.u32 7, %v3189_v61  ;;  %vm3195_vm8 = vcmp.ne.s32.totalorder %v721_v62, 7  ;;  %v742_v33 = vand.u32 7, %v3203_v10 }
  0x34   : > { %vm887_vm9 = vmpackc.low %vm3195_vm8, %vm3195_vm8  ;;  %v756_v51 = vand.u32 7, %v3227_v34 }
  0x35   : > { %vm3212_vm10 = vcmp.ne.s32.totalorder %v728_v7, 7  ;;  %v3223_v32 = vsel %vm887_vm9, 65537, %v2908_v21  ;;  %vm3244_vm15 = vcmp.ne.s32.totalorder %v742_v33, 7  ;;  %vm3271_vm8 = vmand %vm4079_vm11, %vm420_vm5  ;;  %vm3445_vm0 = vcmp.ne.s32.totalorder %v742_v33, 0 }
  0x36   : > { %vm888_vm12 = vmpackc.low %vm3212_vm10, %vm3212_vm10  ;;  %v905_v49 = vrot.slane %v3223_v32, 7 }
  0x37   : > { %354 = vrot.lane.b32.xlu0 %v3108_v14, %s2907_s8  ;;  %386 = vrot.lane.b32.xlu1 %v3108_v14, %s2906_s7  ;;  %vm890_vm10 = vmpackc.low %vm3244_vm15, %vm3244_vm15 }
  0x38   : > { %vm3287_vm9 = vcmp.ne.s16.totalorder %v905_v49, 0  ;;  %vm3342_vm15 = vmand %vm4080_vm14, %vm420_vm5 }
  0x3b   : > { %657 = vrot.lane.b32.xlu1 %v634_v47, %s2906_s7  ;;  %655 = vrot.lane.b32.xlu0 %v625_v48, %s2906_s7 }
  0x3f   : > { %659 = vrot.lane.b32.xlu0 %v643_v56, %s2906_s7  ;;  %661 = vrot.lane.b32.xlu1 %v644_v54, %s2906_s7  ;;  %v3255_v54 = vsel %vm888_vm12, 65537, %v2908_v21  ;;  %vm3311_vm12 = vcmp.ne.s32.totalorder %v756_v51, 7 }
  0x85   : > { %v2774_v63 = vpop.permute.xlu0 %2773  ;;  %v2784_v0 = vpop.permute.xlu1 %2783 }
  0x86   : > { %v2776_v4 = vunpack.i.h.bf16 %v2774_v63  ;;  %v2775_v5 = vunpack.i.l.bf16 %v2774_v63  ;;  %v2786_v13 = vunpack.i.h.bf16 %v2784_v0  ;;  %v2785_v15 = vunpack.i.l.bf16 %v2784_v0 }
  0x88   : > { %v333_v11 = vmax.f32 %v2975_v2, %v2776_v4  ;;  %v332_v12 = vmax.f32 %v2972_v1, %v2775_v5  ;;  %v735_v1 = vand.u32 7, %v3200_v9  ;;  %v3218_v2 = vadd.s32 32, %v3186_v60 }
  0x89   : > { %v2779_v18 = vpop.permute.xlu0 %2778  ;;  %v2789_v19 = vpop.permute.xlu1 %2788 }
  0x8a   : > { %v2781_v20 = vunpack.i.h.bf16 %v2779_v18  ;;  %v2780_v22 = vunpack.i.l.bf16 %v2779_v18  ;;  %v2791_v23 = vunpack.i.h.bf16 %v2789_v19  ;;  %v2790_v24 = vunpack.i.l.bf16 %v2789_v19 }
  0x8b   : > { %vm3234_vm13 = vcmp.ne.s32.totalorder %v735_v1, 7 }
  0x8c   : > { %v364_v26 = vmax.f32 %v332_v12, %v2780_v22  ;;  %v365_v27 = vmax.f32 %v333_v11, %v2781_v20  ;;  %v335_v28 = vmax.f32 %v2983_v6, %v2791_v23  ;;  %v334_v29 = vmax.f32 %v2978_v3, %v2790_v24  ;;  %vm889_vm3 = vmpackc.low %vm3234_vm13, %vm3234_vm13  ;;  %v3479_v12 = vld [vmem:[#allocation2] sm:$0xf] }
  0x8d   : > { %v2794_v30 = vpop.permute.xlu0 %2793  ;;  %v2799_v31 = vpop.permute.xlu1 %2798  ;;  %v749_v6 = vand.u32 7, %v3218_v2  ;;  %v907_v20 = vrot.slane %v3255_v54, 7  ;;  %v3283_v25 = vsel %vm889_vm3, 65537, %v2908_v21  ;;  %v3302_v3 = vadd.s32 56, %v3186_v60 }
  0x8e   : > { %v396_v35 = vmax.f32 %v364_v26, %v2785_v15  ;;  %v397_v36 = vmax.f32 %v365_v27, %v2786_v13  ;;  %v2796_v37 = vunpack.i.h.bf16 %v2794_v30  ;;  %v2795_v38 = vunpack.i.l.bf16 %v2794_v30  ;;  %v534_v13 = vld [vmem:[#allocation2 + $0x4] sm:$0xf] }
  0x8f   : > { %v2801_v39 = vunpack.i.h.bf16 %v2799_v31  ;;  %v2800_v40 = vunpack.i.l.bf16 %v2799_v31  ;;  %vm3265_vm4 = vcmp.ne.s32.totalorder %v749_v6, 7 }
  0x90   : > { %v2532_v41 = vpack.c.bf16 %v396_v35, %v396_v35  ;;  %v2533_v43 = vpack.c.bf16 %v397_v36, %v397_v36  ;;  %v367_v44 = vmax.f32 %v335_v28, %v2796_v37  ;;  %v366_v45 = vmax.f32 %v334_v29, %v2795_v38  ;;  %vm891_vm13 = vmpackc.low %vm3265_vm4, %vm3265_vm4 }
  0x91   : > { %v3239_v47 = vpop.permute.xlu0 %645  ;;  %v2804_v48 = vpop.permute.xlu1 %2803  ;;  %vm3380_vm4 = vcmp.ne.s32.totalorder %v721_v62, 0 }
  0x92   : > { %v453_v52 = vshrl.u32 %v2532_v41, 16  ;;  %v461_v53 = vshrl.u32 %v2533_v43, 16  ;;  %v398_v56 = vmax.f32 %v366_v45, %v2800_v40  ;;  %v399_v57 = vmax.f32 %v367_v44, %v2801_v39 }
  0x93   : > { %v2805_v58 = vunpack.i.l.bf16 %v2804_v48  ;;  %v456_v0 = vshll.u32 %v2532_v41, 16  ;;  %v464_v5 = vshll.u32 %v2533_v43, 16  ;;  %v2806_v31 = vunpack.i.h.bf16 %v2804_v48 }
  0x94   : > { %v455_v63 = vrot.slane %v453_v52, 7  ;;  %v463_v4 = vrot.slane %v461_v53, 7  ;;  %v2534_v8 = vpack.c.bf16 %v398_v56, %v398_v56  ;;  %v2535_v11 = vpack.c.bf16 %v399_v57, %v399_v57 }
  0x95   : > { %v336_v15 = vmax.f32 %v2995_v16, %v2805_v58  ;;  %v349_v18 = vpop.permute.xlu0 %348  ;;  %v381_v19 = vpop.permute.xlu1 %380  ;;  %v763_v41 = vand.u32 7, %v3258_v55  ;;  %v909_v44 = vrot.slane %v907_v20, 4  ;;  %v910_v45 = vrot.slane %v3283_v25, 7 }
  0x96   : > { %v458_v22 = vor.u32 %v456_v0, %v455_v63  ;;  %v459_v23 = vrot.slane %v455_v63, 4  ;;  %v466_v24 = vor.u32 %v464_v5, %v463_v4  ;;  %v470_v16 = vshrl.u32 %v2534_v8, 16 }
  0x97   : > { %v473_v27 = vshll.u32 %v2534_v8, 16  ;;  %v479_v28 = vshrl.u32 %v2535_v11, 16  ;;  %v482_v29 = vshll.u32 %v2535_v11, 16  ;;  %v368_v35 = vmax.f32 %v336_v15, %v349_v18 }
  0x98   : > { %v535_v30 = vsel %vm3271_vm8, %v458_v22, %v534_v13  ;;  %v467_v36 = vsel %vm3042_vm7, %v459_v23, %v466_v24  ;;  %v472_v37 = vrot.slane %v470_v16, 7  ;;  %v468_v57 = vrot.slane %v463_v4, 4  ;;  %v3348_v22 = vld [vmem:[#allocation2] sm:$0xe]  ;;  %vm3352_vm8 = vmor %vm413_vm1, %vm903_vm6 }
  0x99   : > { %v3295_v38 = vrot.slane %v479_v28, 7  ;;  %536 = vst [vmem:[#allocation2 + $0x4] sm:$0xf] %v535_v30  ;;  %v321_v39 = vpop.permute.xlu0 %320  ;;  %v648_v40 = vpop.permute.xlu1 %647  ;;  %538 = vst.msk [vmem:[#allocation2 + $0x8] sm:$0xf] %vm4079_vm11, %v467_v36  ;;  %v400_v43 = vmax.f32 %v368_v35, %v381_v19  ;;  %v337_v58 = vmax.f32 %v2998_v17, %v2806_v31  ;;  %v898_v5 = vsel %vm890_vm10, 65537, %v2908_v21 }
  0x9a   : > { %678 = vst.msk [vmem:[#allocation2 + $0x8] sm:$0xf] %vm4080_vm14, %v648_v40  ;;  %v475_v52 = vor.u32 %v473_v27, %v472_v37  ;;  %v477_v53 = vrot.slane %v472_v37, 4  ;;  %v338_v0 = vmax.f32 %v3053_v46, %v321_v39  ;;  %v770_v46 = vand.u32 7, %v3302_v3  ;;  %vm892_vm1 = vmpackc.low %vm3311_vm12, %vm3311_vm12 }
  0x9b   : > { %v484_v56 = vor.u32 %v482_v29, %v3295_v38  ;;  %696 = vst.msk [vmem:[#allocation2 + $0x8] sm:$0xf] %vm4076_vm2, %v2908_v21  ;;  %v2536_v63 = vpack.c.bf16 %v400_v43, %v400_v43  ;;  %vm3336_vm3 = vcmp.ne.s32.totalorder %v763_v41, 7  ;;  %v906_v24 = vrot.slane %v905_v49, 4 }
  0x9c   : > { %v476_v4 = vsel %vm3042_vm7, %v468_v57, %v475_v52  ;;  %v912_v25 = vrot.slane %v910_v45, 4  ;;  %v913_v16 = vrot.slane %v898_v5, 7  ;;  %v3365_v27 = vsel %vm891_vm13, 65537, %v2908_v21  ;;  %vm893_vm10 = vmpackc.low %vm3336_vm3, %vm3336_vm3 }
  0x9d   : > { %v650_v8 = vpop.permute.xlu0 %649  ;;  %v2809_v11 = vpop.permute.xlu1 %2808  ;;  %v485_v17 = vsel %vm3042_vm7, %v477_v53, %v484_v56  ;;  %v488_v13 = vshrl.u32 %v2536_v63, 16  ;;  %v491_v15 = vshll.u32 %v2536_v63, 16  ;;  %539 = vst.msk [vmem:[#allocation2 + $0xc] sm:$0xf] %vm4079_vm11, %v476_v4  ;;  %v486_v28 = vrot.slane %v3295_v38, 4 }
  0x9e   : > { %v2811_v18 = vunpack.i.h.bf16 %v2809_v11  ;;  %v2810_v19 = vunpack.i.l.bf16 %v2809_v11  ;;  %540 = vst.msk [vmem:[#allocation2 + $0x10] sm:$0xf] %vm4079_vm11, %v485_v17  ;;  %v937_v37 = vsel %vm3287_vm9, %v3348_v22, 0  ;;  %vm3389_vm6 = vcmp.ne.s32.totalorder %v770_v46, 7 }
  0x9f   : > { %679 = vst.msk [vmem:[#allocation2 + $0xc] sm:$0xf] %vm4080_vm14, %v650_v8  ;;  %v3368_v30 = vrot.slane %v488_v13, 7  ;;  %vm3399_vm13 = vcmp.ne.s32.totalorder %v728_v7, 0  ;;  %v3405_v40 = vsel %vm3352_vm8, %v909_v44, %v910_v45  ;;  %v3411_v43 = vsel %vm3352_vm8, %v906_v24, %v907_v20 }
  0xa0   : > { %v674_v29 = vld [vmem:[#allocation2 + $0x4] sm:$0xf]  ;;  %697 = vst.msk [vmem:[#allocation2 + $0xc] sm:$0xf] %vm4076_vm2, %v2908_v21  ;;  %v369_v32 = vmax.f32 %v337_v58, %v2810_v19  ;;  %v370_v49 = vmax.f32 %v338_v0, %v2811_v18  ;;  %v3415_v52 = vsel %vm3352_vm8, %v912_v25, %v913_v16  ;;  %v900_v61 = vsel %vm892_vm1, 65537, %v2908_v21 }
  0xa1   : > { %v675_v59 = vsel %vm3342_vm15, %v3239_v47, %v674_v29  ;;  %v2814_v31 = vpop.permute.xlu0 %2813  ;;  %v323_v35 = vpop.permute.xlu1 %322  ;;  %v493_v60 = vor.u32 %v491_v15, %v3368_v30  ;;  %v916_v7 = vrot.slane %v3365_v27, 7  ;;  %vm894_vm15 = vmpackc.low %vm3389_vm6, %vm3389_vm6  ;;  %v901_v20 = vsel %vm893_vm10, 65537, %v2908_v21 }
  0xa2   : > { %676 = vst [vmem:[#allocation2 + $0x4] sm:$0xf] %v675_v59  ;;  %v2816_v62 = vunpack.i.h.bf16 %v2814_v31  ;;  %v2815_v47 = vunpack.i.l.bf16 %v2814_v31  ;;  %vm4078_vm12 = vcmp.ne.s16.totalorder %v3405_v40, 0  ;;  %vm3439_vm1 = vcmp.ne.s32.totalorder %v735_v1, 0  ;;  %vm3455_vm10 = vmand %vm4076_vm2, %vm420_vm5  ;;  %v3482_v24 = vld [vmem:[#allocation2 + $0x8] sm:$0xf] }
  0xa3   : > { %v494_v54 = vsel %vm3042_vm7, %v486_v28, %v493_v60  ;;  %v915_v58 = vrot.slane %v913_v16, 4  ;;  %v339_v5 = vmax.f32 %v3108_v14, %v323_v35  ;;  %vm4077_vm3 = vcmp.ne.s16.totalorder %v3415_v52, 0  ;;  %vm3474_vm5 = vmpackc.low %vm3380_vm4, %vm3380_vm4 }
  0xa4   : > { %v402_v44 = vmax.f32 %v370_v49, %v2816_v62  ;;  %v401_v45 = vmax.f32 %v369_v32, %v2815_v47  ;;  %541 = vst.msk [vmem:[#allocation2 + $0x14] sm:$0xf] %vm4079_vm11, %v494_v54  ;;  %v918_v10 = vrot.slane %v916_v7, 4  ;;  %v919_v14 = vrot.slane %v900_v61, 7  ;;  %vm3506_vm4 = vmpackc.low %vm3399_vm13, %vm3399_vm13 }
  0xa5   : > { %v652_v48 = vpop.permute.xlu0 %651  ;;  %v654_v53 = vpop.permute.xlu1 %653  ;;  %v3469_v1 = vsel %vm894_vm15, 65537, %v2908_v21  ;;  %v922_v33 = vrot.slane %v901_v20, 7  ;;  %v495_v15 = vrot.slane %v3368_v30, 4  ;;  %v861_v30 = vsel %vm3474_vm5, %v3479_v12, 0  ;;  %vm3531_vm13 = vmpackc.low %vm3439_vm1, %vm3439_vm1 }
  0xa6   : > { %v2538_v63 = vpack.c.bf16 %v402_v44, %v402_v44  ;;  %v2537_v0 = vpack.c.bf16 %v401_v45, %v401_v45  ;;  %680 = vst.msk [vmem:[#allocation2 + $0x10] sm:$0xf] %vm4080_vm14, %v652_v48  ;;  %681 = vst.msk [vmem:[#allocation2 + $0x14] sm:$0xf] %vm4080_vm14, %v654_v53  ;;  %v921_v25 = vrot.slane %v919_v14, 4  ;;  %v3495_v49 = vsel %vm3352_vm8, %v915_v58, %v916_v7 }
  0xa7   : > { %698 = vst.msk [vmem:[#allocation2 + $0x10] sm:$0xf] %vm4076_vm2, %v2908_v21  ;;  %699 = vst.msk [vmem:[#allocation2 + $0x14] sm:$0xf] %vm4076_vm2, %v2908_v21  ;;  %vm929_vm2 = vcmp.ne.s16.totalorder %v3411_v43, 0  ;;  %v3499_v59 = vsel %vm3352_vm8, %v918_v10, %v919_v14  ;;  %v925_v31 = vrot.slane %v3469_v1, 7 }
  0xa8   : > { %v506_v8 = vshrl.u32 %v2538_v63, 16  ;;  %v509_v4 = vshll.u32 %v2538_v63, 16  ;;  %v497_v11 = vshrl.u32 %v2537_v0, 16  ;;  %v500_v17 = vshll.u32 %v2537_v0, 16  ;;  %v3488_v32 = vld [vmem:[#allocation2 + $0xc] sm:$0xf] }
  0xa9   : > { %v692_v13 = vld [vmem:[#allocation2 + $0x4] sm:$0xf]  ;;  %v355_v18 = vpop.permute.xlu0 %354  ;;  %v387_v19 = vpop.permute.xlu1 %386  ;;  %v924_v60 = vrot.slane %v922_v33, 4  ;;  %v939_v44 = vsel %vm4078_vm12, %v3482_v24, 0  ;;  %v940_v45 = vsel %vm4077_vm3, %v3488_v32, 0  ;;  %v3518_v54 = vsel %vm3352_vm8, %v921_v25, %v922_v33  ;;  %vm3546_vm3 = vmpackc.low %vm3445_vm0, %vm3445_vm0  ;;  %v2894_v43 = vld [vmem:[%s4070_s2 + $0x230] sm:$0xff]  }
  0xaa   : > { %v693_v16 = vsel %vm3455_vm10, 0, %v692_v13  ;;  %v3486_v27 = vrot.slane %v506_v8, 7  ;;  %v499_v28 = vrot.slane %v497_v11, 7  ;;  %v371_v29 = vmax.f32 %v339_v5, %v355_v18  ;;  %v547_v25 = vld [vmem:[#allocation2 + $0x24] sm:$0x1] }
  0xab   : > { %694 = vst [vmem:[#allocation2 + $0x4] sm:$0xf] %v693_v16  ;;  %v3526_v48 = vcombine.low %v3482_v24, %v3488_v32  ;;  %vm3537_vm10 = vcmp.ne.s32.totalorder %v749_v6, 0  ;;  %vm4084_vm1 = vcmp.ne.s16.totalorder %v3495_v49, 0  ;;  %vm4081_vm12 = vcmp.ne.s16.totalorder %v3499_v59, 0 }
  0xac   : > { %v511_v35 = vor.u32 %v509_v4, %v3486_v27  ;;  %v502_v36 = vor.u32 %v500_v17, %v499_v28  ;;  %v504_v38 = vrot.slane %v499_v28, 4  ;;  %v403_v62 = vmax.f32 %v371_v29, %v387_v19 }
  0xad   : > { %v658_v61 = vpop.permute.xlu1 %657  ;;  %v656_v7 = vpop.permute.xlu0 %655  ;;  %vm3554_vm15 = vcmp.ne.s32.totalorder %v756_v51, 0  ;;  %v948_v6 = vsel %vm3506_vm4, %v3482_v24, 0  ;;  %v2425_v57 = vcombine.low %v939_v44, %v940_v45  ;;  %v3571_v34 = vsel %vm3352_vm8, %v924_v60, %v925_v31 }
  0xae   : > { %v512_v39 = vsel %vm3042_vm7, %v504_v38, %v511_v35  ;;  %v503_v20 = vsel %vm3042_vm7, %v495_v15, %v502_v36  ;;  %v2539_v63 = vpack.c.bf16 %v403_v62, %v403_v62  ;;  %v3563_v0 = vld [vmem:[#allocation2 + $0x10] sm:$0xf]  ;;  %v3565_v5 = vld [vmem:[#allocation2 + $0x14] sm:$0xf]  ;;  %vm4083_vm0 = vcmp.ne.s16.totalorder %v3518_v54, 0 }
  0xaf   : > { %543 = vst.msk [vmem:[#allocation2 + $0x1c] sm:$0xf] %vm4079_vm11, %v512_v39  ;;  %542 = vst.msk [vmem:[#allocation2 + $0x18] sm:$0xf] %vm4079_vm11, %v503_v20  ;;  %vm4133_vm11 = vcmask 1043840   ;;  %v949_v10 = vsel %vm3531_vm13, %v3488_v32, 0  ;;  %v3583_v23 = vcombine.low %v3563_v0, %v3565_v5 }
  0xb0   : > { %683 = vst.msk [vmem:[#allocation2 + $0x1c] sm:$0xf] %vm4080_vm14, %v658_v61  ;;  %682 = vst.msk [vmem:[#allocation2 + $0x18] sm:$0xf] %vm4080_vm14, %v656_v7  ;;  %v515_v51 = vshrl.u32 %v2539_v63, 16  ;;  %v518_v9 = vshll.u32 %v2539_v63, 16 }
  0xb1   : > { %701 = vst.msk [vmem:[#allocation2 + $0x1c] sm:$0xf] %vm4133_vm11, %v2908_v21  ;;  %vm4134_vm14 = vmmov %vm4133_vm11  ;;  %vm1033_vm6 = vsmask.f32 7424  ;;  %v1042_v33 = vshll.u32 %v3526_v48, 16  ;;  %v950_v8 = vsel %vm3546_vm3, %v3563_v0, 0  ;;  %v660_v22 = vpop.permute.xlu0 %659 }
  0xb2   : > { %700 = vst.msk [vmem:[#allocation2 + $0x18] sm:$0xf] %vm4134_vm14, %v2908_v21  ;;  %v3585_v14 = vld [vmem:[#allocation2 + $0x4] sm:$0xf]  ;;  %v941_v4 = vsel %vm4084_vm1, %v3563_v0, 0  ;;  %v1046_v11 = vshrl.u32 %v3526_v48, 16  ;;  %v2430_v45 = vcombine.low %v949_v10, %v950_v8 }
  0xb3   : > { %v517_v17 = vrot.slane %v515_v51, 7  ;;  %v947_v13 = vsel %vm3474_vm5, %v3585_v14, 0  ;;  %v938_v15 = vsel %vm929_vm2, %v3585_v14, 0  ;;  %v942_v18 = vsel %vm4081_vm12, %v3565_v5, 0  ;;  %v2851_v7 = vld [vmem:[%s4070_s2 + $0x180] sm:$0xff]  }
  0xb4   : > { %vm4135_vm11 = vsmask.f32 256  ;;  %vm4136_vm14 = vcmask 253952   ;;  %v2429_v16 = vcombine.low %v947_v13, %v948_v6  ;;  %v2424_v28 = vcombine.low %v937_v37, %v938_v15  ;;  %v2858_v15 = vld [vmem:[%s4070_s2 + $0x1d0] sm:$0xff]  }
  0xb5   : > { %vm3606_vm8 = vmand %vm4136_vm14, %vm4135_vm11  ;;  %v1099_v29 = vrot.slane %v2425_v57, 1  ;;  %v2419_v35 = vcombine.low %v3479_v12, %v3585_v14  ;;  %v513_v36 = vrot.slane %v3486_v27, 4  ;;  %v520_v38 = vor.u32 %v518_v9, %v517_v17  ;;  %v2854_v27 = vld [vmem:[%s4070_s2 + $0x1c8] sm:$0xff]   ;;  %v662_v12 = vpop.permute.xlu1 %661 }
  0xb6   : > { %v522_v60 = vrot.slane %v517_v17, 4  ;;  %v1050_v62 = vshll.u32 %v3583_v23, 16  ;;  %1981 = vmatprep.mubr.bf16.mxu1 %v2429_v16  ;;  %v1098_v61 = vrot.slane %v2424_v28, 1  ;;  %v2426_v37 = vcombine.low %v941_v4, %v942_v18  ;;  %vm3631_vm11 = vmpackc.low %vm3537_vm10, %vm3537_vm10  ;;  %v2855_v17 = vld [vmem:[%s4070_s2 + $0x188] sm:$0xff]  }
  0xb7   : > { %v1037_v44 = vshll.u32 %v2419_v35, 16  ;;  %v1044_v20 = vrot.slane %v1042_v33, 1  ;;  %v521_v48 = vsel %vm3042_vm7, %v513_v36, %v520_v38  ;;  %vm4082_vm14 = vcmp.ne.s16.totalorder %v3571_v34, 0  ;;  %vm3643_vm7 = vmpackc.low %vm3554_vm15, %vm3554_vm15 }
  0xb8   : > { %v548_v39 = vsel %vm3606_vm8, %v522_v60, %v547_v25  ;;  %vm4141_vm12 = vcmask 1046528   ;;  %v1035_v57 = vshrl.u32 %v2419_v35, 16  ;;  %vm4142_vm8 = vcmask 257024   ;;  %v3647_v58 = vld [vmem:[#allocation2 + $0x1c] sm:$0xf]  ;;  %v2856_v35 = vld [vmem:[%s4070_s2 + $0x148] sm:$0xff]  }
  0xb9   : > { %549 = vst [vmem:[#allocation2 + $0x24] sm:$0x1] %v548_v39  ;;  %v1100_v6 = vsel %vm4141_vm12, %v1098_v61, %v1099_v29  ;;  %v1039_v51 = vrot.slane %v1037_v44, 1  ;;  %544 = vst.msk [vmem:[#allocation2 + $0x20] sm:$0xf] %vm4142_vm8, %v521_v48  ;;  %v862_v10 = vsel %vm3506_vm4, %v3585_v14, 0  ;;  %v1048_v33 = vor.u32 %v1046_v11, %v1044_v20 }
  0xba   : > { %v3638_v9 = vld [vmem:[#allocation2 + $0x18] sm:$0xf]  ;;  %1982 = vmatmul.mubr.bf16.vlgmr.msra.gmra.mrb[0].mxu1 %v1100_v6  ;;  %vm4145_vm12 = vcmask 388352   ;;  %v1052_v8 = vrot.slane %v1050_v62, 1  ;;  %vm4146_vm15 = vcmask 1043840   ;;  %v3662_v13 = vrot.slane %v2426_v37, 1 }
  0xbb   : > { %684 = vst.msk [vmem:[#allocation2 + $0x20] sm:$0xf] %vm4145_vm12, %v660_v22  ;;  %v3655_v4 = vcombine.low %v3638_v9, %v3647_v58  ;;  %2669 = vmatpush3.bf16.msra.mxu1 %v2851_v7  ;;  %v1040_v2 = vor.u32 %v1039_v51, %v1035_v57  ;;  %1989 = vmatprep.mubr.bf16.mxu1 %v2430_v45  ;;  %vm685_vm10 = vcmask 385280   ;;  %v2853_v11 = vld [vmem:[%s4070_s2 + $0x100] sm:$0xff]   ;;  %v951_v18 = vsel %vm3631_vm11, %v3565_v5, 0  ;;  %v2857_v62 = vld [vmem:[%s4070_s2 + $0x108] sm:$0xff]  }
  0xbc   : > { %702 = vst.msk [vmem:[#allocation2 + $0x20] sm:$0xf] %vm4146_vm15, %v2908_v21  ;;  %2670 = vmatprep.subr.bf16.mxu1 %v2854_v27  ;;  %v952_v21 = vsel %vm3643_vm7, %v3638_v9, 0  ;;  %v943_v19 = vsel %vm4083_vm0, %v3638_v9, 0  ;;  %v944_v25 = vsel %vm4082_vm14, %v3647_v58, 0  ;;  %v2415_v28 = vcombine.low %v861_v30, %v862_v10  ;;  %v2862_v44 = vld [vmem:[%s4070_s2 + $0x1d8] sm:$0xff]  }
  0xbd   : > { %v1045_v16 = vsel %vm1033_vm6, %v1040_v2, %v1044_v20  ;;  %vm3692_vm8 = vcmp.ne.s32.totalorder %v763_v41, 0  ;;  %v3698_v38 = vrot.slane %v925_v31, 4  ;;  %vm4149_vm12 = vsmask.f32 256  ;;  %v2860_v37 = vld [vmem:[%s4070_s2 + $0x150] sm:$0xff]   ;;  %v2863_v51 = vld [vmem:[%s4070_s2 + $0x198] sm:$0xff]  }
  0xbe   : > { %1916 = vmatprep.mubr.bf16.mxu0 %v1045_v16  ;;  %vm3701_vm15 = vmand %vm685_vm10, %vm4149_vm12  ;;  %v3706_v30 = vsel %vm1033_vm6, %v1048_v33, %v1052_v8  ;;  %v1054_v55 = vshrl.u32 %v3583_v23, 16  ;;  %v1058_v41 = vshll.u32 %v3655_v4, 16  ;;  %vm3712_vm14 = vcmp.ne.s32.totalorder %v770_v46, 0  ;;  %v2859_v23 = vld [vmem:[%s4070_s2 + $0x190] sm:$0xff]   ;;  %v2866_v2 = vld [vmem:[%s4070_s2 + $0x1e0] sm:$0xff]  }
  0xbf   : > { %1917 = vmatmul.mubr.bf16.vlgmr.msra.gmra.mrb[0].mxu0 %v2415_v28  ;;  %2671 = vmatpush3.bf16.msra.mxu1 %v2855_v17  ;;  %vm4154_vm10 = vcmask 1046528   ;;  %v2431_v61 = vcombine.low %v951_v18, %v952_v21  ;;  %v2427_v7 = vcombine.low %v943_v19, %v944_v25  ;;  %v863_v46 = vsel %vm3531_vm13, %v3482_v24, 0  ;;  %vm3736_vm12 = vmpackc.low %vm3692_vm8, %vm3692_vm8  ;;  %v2864_v18 = vld [vmem:[%s4070_s2 + $0x158] sm:$0xff]  }
  0xc0   : > { %v1102_v31 = vsel %vm4154_vm10, %v1099_v29, %v3662_v13  ;;  %2629 = vmatpush3.bf16.msra.mxu0 %v2853_v11  ;;  %2672 = vmatprep.subr.bf16.mxu1 %v2858_v15  ;;  %v687_v3 = vld [vmem:[#allocation2 + $0x24] sm:$0x1]  ;;  %v864_v29 = vsel %vm3546_vm3, %v3488_v32, 0  ;;  %vm3749_vm10 = vmpackc.low %vm3712_vm14, %vm3712_vm14  ;;  %vm936_vm8 = vcmp.ne.s16.totalorder %v3698_v38, 0  ;;  %v1056_v20 = vor.u32 %v1054_v55, %v1052_v8  ;;  %v2861_v8 = vld [vmem:[%s4070_s2 + $0x110] sm:$0xff]  }
  0xc1   : > { %2630 = vmatprep.subr.bf16.mxu0 %v2856_v35  ;;  %v688_v22 = vsel %vm3701_vm15, %v662_v12, %v687_v3  ;;  %1924 = vmatprep.mubr.bf16.mxu0 %v3706_v30  ;;  %v1060_v27 = vrot.slane %v1058_v41, 1  ;;  %v2416_v57 = vcombine.low %v863_v46, %v864_v29  ;;  %v3759_v10 = vrot.slane %v2427_v7, 1  ;;  %v2867_v35 = vld [vmem:[%s4070_s2 + $0x1a0] sm:$0xff]   ;;  %v2871_v55 = vld [vmem:[%s4070_s2 + $0x1e8] sm:$0xff]   ;;  %v2896_v45 = vld [vmem:[%s4070_s2 + $0x238] sm:$0xff]  }
  0xc2   : > { %1990 = vmatmul.mubr.bf16.gmra.mrb[4].mxu1 %v1102_v31  ;;  %689 = vst [vmem:[#allocation2 + $0x24] sm:$0x1] %v688_v22  ;;  %vm703_vm14 = vcmask 1040768   ;;  %v953_v17 = vsel %vm3736_vm12, %v3647_v58, 0  ;;  %v1062_v19 = vshrl.u32 %v3655_v4, 16  ;;  %vm4162_vm1 = vcmask 1046528  }
  0xc3   : > { %v3754_v48 = vld [vmem:[#allocation2 + $0x20] sm:$0xf]  ;;  %2673 = vmatpush3.bf16.msra.mxu1 %v2859_v23  ;;  %1997 = vmatprep.mubr.bf16.mxu1 %v2431_v61  ;;  %v3779_v21 = vsel %vm1033_vm6, %v1056_v20, %v1060_v27  ;;  %vm4159_vm15 = vsmask.f32 256  ;;  %v1104_v28 = vsel %vm4162_vm1, %v3662_v13, %v3759_v10  ;;  %v2865_v4 = vld [vmem:[%s4070_s2 + $0x118] sm:$0xff]   ;;  %v865_v12 = vsel %vm3631_vm11, %v3563_v0, 0 }
  0xc4   : > { %v869_v6 = vld [vmem:[#allocation2 + $0x20] sm:$0x1]  ;;  %2631 = vmatpush3.bf16.msra.mxu0 %v2857_v62  ;;  %2674 = vmatprep.subr.bf16.mxu1 %v2862_v44  ;;  %v954_v11 = vsel %vm3749_vm10, %v3754_v48, 0  ;;  %vm3783_vm0 = vmand %vm703_vm14, %vm4159_vm15  ;;  %v866_v13 = vsel %vm3643_vm7, %v3565_v5, 0  ;;  %v956_v41 = vld [vmem:[#allocation2 + $0x4] sm:$0xe]  ;;  %v3813_v61 = vor.u32 %v1062_v19, %v1060_v27 }
  0xc5   : > { %v2423_v33 = vcombine.low %v869_v6, %v869_v6  ;;  %v945_v15 = vsel %vm936_vm8, %v869_v6, 0  ;;  %2632 = vmatprep.subr.bf16.mxu0 %v2860_v37  ;;  %v2432_v36 = vcombine.low %v953_v17, %v954_v11  ;;  %v2869_v31 = vld [vmem:[%s4070_s2 + $0x160] sm:$0xff]   ;;  %v3809_v62 = vld [vmem:[#allocation2 + $0x28] sm:$0x1]  ;;  %v2417_v3 = vcombine.low %v865_v12, %v866_v13  ;;  %v2875_v20 = vld [vmem:[%s4070_s2 + $0x1f0] sm:$0xff]  }
  0xc6   : > { %v2428_v60 = vcombine.low %v945_v15, %v945_v15  ;;  %v2872_v46 = vld [vmem:[%s4070_s2 + $0x1a8] sm:$0xff]   ;;  %v957_v44 = vsel %vm3287_vm9, %v956_v41, 0  ;;  %v958_v22 = vsel %vm929_vm2, %v3482_v24, 0  ;;  %v2870_v37 = vld [vmem:[%s4070_s2 + $0x120] sm:$0xff]   ;;  %vm4163_vm1 = vcmp.ne.s16.totalorder %v3405_v40, 0  ;;  %v2876_v40 = vld [vmem:[%s4070_s2 + $0x1b0] sm:$0xff]  }
  0xc7   : > { %v1066_v25 = vshll.u32 %v2423_v33, 16  ;;  %1925 = vmatmul.mubr.bf16.gmra.mrb[4].mxu0 %v2416_v57  ;;  %2675 = vmatpush3.bf16.msra.mxu1 %v2863_v51  ;;  %v959_v27 = vsel %vm4163_vm1, %v3488_v32, 0  ;;  %v985_v57 = vsel %vm936_vm8, %v3809_v62, 0  ;;  %v3840_v51 = vcombine.low %v3585_v14, %v3482_v24  ;;  %v2873_v33 = vld [vmem:[%s4070_s2 + $0x168] sm:$0xff]   ;;  %v2878_v12 = vld [vmem:[%s4070_s2 + $0x170] sm:$0xff]  }
  0xc8   : > { %2633 = vmatpush3.bf16.msra.mxu0 %v2861_v8  ;;  %2676 = vmatprep.subr.bf16.mxu1 %v2866_v2  ;;  %v1105_v29 = vrot.slane %v2428_v60, 1  ;;  %vm4165_vm14 = vcmp.ne.s16.totalorder %v3495_v49, 0  ;;  %vm4166_vm15 = vcmp.ne.s16.totalorder %v3499_v59, 0  ;;  %v979_v17 = vsel %vm4163_vm1, %v3563_v0, 0 }
  0xc9   : > { %v705_v1 = vld [vmem:[#allocation2 + $0x24] sm:$0x1]  ;;  %2634 = vmatprep.subr.bf16.mxu0 %v2864_v18  ;;  %1932 = vmatprep.mubr.bf16.mxu0 %v3779_v21  ;;  %v1068_v7 = vrot.slane %v1066_v25, 1  ;;  %v981_v8 = vsel %vm4165_vm14, %v3638_v9, 0  ;;  %v982_v2 = vsel %vm4166_vm15, %v3647_v58, 0  ;;  %v867_v11 = vsel %vm3736_vm12, %v3638_v9, 0 }
  0xca   : > { %v706_v23 = vsel %vm3783_vm0, 0, %v705_v1  ;;  %1998 = vmatmul.mubr.bf16.gmra.mrb[8].mxu1 %v1104_v28  ;;  %vm4164_vm0 = vcmp.ne.s16.totalorder %v3415_v52, 0  ;;  %v2438_v15 = vcombine.low %v957_v44, %v958_v22  ;;  %vm4167_vm14 = vcmask 1046528   ;;  %v2874_v52 = vld [vmem:[%s4070_s2 + $0x128] sm:$0xff]  }
  0xcb   : > { %707 = vst [vmem:[#allocation2 + $0x24] sm:$0x1] %v706_v23  ;;  %2677 = vmatpush3.bf16.msra.mxu1 %v2867_v35  ;;  %2005 = vmatprep.mubr.bf16.mxu1 %v2432_v36  ;;  %v960_v6 = vsel %vm4164_vm0, %v3563_v0, 0  ;;  %v1069_v14 = vsel %vm1033_vm6, %v3813_v61, %v1068_v7  ;;  %v980_v18 = vsel %vm4164_vm0, %v3565_v5, 0  ;;  %v1106_v19 = vsel %vm4167_vm14, %v3759_v10, %v1105_v29  ;;  %v2880_v10 = vld [vmem:[%s4070_s2 + $0x1f8] sm:$0xff]   ;;  %v2879_v29 = vld [vmem:[%s4070_s2 + $0x130] sm:$0xff]   ;;  %vm4172_vm0 = vmmov %vm4167_vm14 }
  0xcc   : > { %2635 = vmatpush3.bf16.msra.mxu0 %v2865_v4  ;;  %2678 = vmatprep.subr.bf16.mxu1 %v2871_v55  ;;  %v868_v25 = vsel %vm3749_vm10, %v3647_v58, 0  ;;  %v2439_v16 = vcombine.low %v959_v27, %v960_v6  ;;  %v2450_v28 = vcombine.low %v979_v17, %v980_v18  ;;  %v2453_v35 = vcombine.low %v985_v57, %v985_v57  ;;  %v2881_v23 = vld [vmem:[%s4070_s2 + $0x1b8] sm:$0xff]   ;;  %vm4173_vm14 = vmmov %vm4172_vm0 }
  0xcd   : > { %2636 = vmatprep.subr.bf16.mxu0 %v2869_v31  ;;  %v2451_v36 = vcombine.low %v981_v8, %v982_v2  ;;  %v967_v60 = vsel %vm3474_vm5, %v3482_v24, 0  ;;  %v968_v4 = vsel %vm3506_vm4, %v3488_v32, 0  ;;  %v1147_v13 = vshll.u32 %v3840_v51, 16  ;;  %v2883_v2 = vld [vmem:[%s4070_s2 + $0x138] sm:$0xff]  }
  0xce   : > { %vm4168_vm15 = vcmp.ne.s16.totalorder %v3518_v54, 0  ;;  %v2418_v41 = vcombine.low %v867_v11, %v868_v25  ;;  %v1207_v50 = vrot.slane %v2438_v15, 1  ;;  %v3891_v24 = vcombine.low %v3488_v32, %v3563_v0 }
  0xcf   : > { %1933 = vmatmul.mubr.bf16.gmra.mrb[8].mxu0 %v2417_v3  ;;  %2679 = vmatpush3.bf16.msra.mxu1 %v2872_v46  ;;  %v983_v55 = vsel %vm4168_vm15, %v3754_v48, 0  ;;  %v3895_v1 = vrot.slane %v2450_v28, 1  ;;  %v1208_v31 = vrot.slane %v2439_v16, 1  ;;  %vm4169_vm5 = vcmp.ne.s16.totalorder %v3495_v49, 0  ;;  %vm4174_vm15 = vmmov %vm4172_vm0  ;;  %v2886_v28 = vld [vmem:[%s4070_s2 + $0x210] sm:$0xff]  }
  0xd0   : > { %2637 = vmatpush3.bf16.msra.mxu0 %v2870_v37  ;;  %2680 = vmatprep.subr.bf16.mxu1 %v2875_v20  ;;  %v961_v7 = vsel %vm4169_vm5, %v3565_v5, 0  ;;  %vm4170_vm4 = vcmp.ne.s16.totalorder %v3499_v59, 0  ;;  %vm4171_vm1 = vcmp.ne.s16.totalorder %v3571_v34, 0  ;;  %v1295_v44 = vrot.slane %v2453_v35, 1  ;;  %v2882_v59 = vld [vmem:[%s4070_s2 + $0x178] sm:$0xff]   ;;  %v2884_v37 = vld [vmem:[%s4070_s2 + $0x200] sm:$0xff]   ;;  %vm4177_vm5 = vmmov %vm4172_vm0 }
  0xd1   : > { %2638 = vmatprep.subr.bf16.mxu0 %v2873_v33  ;;  %1940 = vmatprep.mubr.bf16.mxu0 %v1069_v14  ;;  %v962_v3 = vsel %vm4170_vm4, %v3638_v9, 0  ;;  %v3913_v22 = vrot.slane %v2451_v36, 1  ;;  %v2443_v49 = vcombine.low %v967_v60, %v968_v4  ;;  %v1149_v20 = vrot.slane %v1147_v13, 1  ;;  %v2885_v14 = vld [vmem:[%s4070_s2 + $0x208] sm:$0xff]  }
  0xd2   : > { %2006 = vmatmul.mubr.bf16.gmra.mrb[12].mxu1 %v1106_v19  ;;  %v3893_v47 = vld [vmem:[#allocation2 + $0x24] sm:$0xf]  ;;  %v1152_v27 = vshll.u32 %v3891_v24, 16  ;;  %v2440_v6 = vcombine.low %v961_v7, %v962_v3  ;;  %v1209_v8 = vsel %vm4173_vm14, %v1207_v50, %v1208_v31  ;;  %v1145_v17 = vshrl.u32 %v3840_v51, 16 }
  0xd3   : > { %2681 = vmatpush3.bf16.msra.mxu1 %v2876_v40  ;;  %2111 = vmatprep.mubr.bf16.mxu1 %v3706_v30  ;;  %v984_v46 = vsel %vm4171_vm1, %v3893_v47, 0  ;;  %v3927_v33 = vsel %vm4172_vm0, %v3895_v1, %v3913_v22  ;;  %v2447_v11 = vcombine.low %v3754_v48, %v3893_v47  ;;  %v3941_v15 = vcombine.low %v3565_v5, %v3638_v9  ;;  %v955_v13 = vld [vmem:[#allocation2 + $0x24] sm:$0x1] }
  0xd4   : > { %2639 = vmatpush3.bf16.msra.mxu0 %v2874_v52  ;;  %2682 = vmatprep.subr.bf16.mxu1 %v2880_v10  ;;  %v2452_v30 = vcombine.low %v983_v55, %v984_v46  ;;  %v1150_v19 = vor.u32 %v1149_v20, %v1145_v17  ;;  %v1154_v51 = vrot.slane %v1152_v27, 1  ;;  %v1210_v40 = vrot.slane %v2440_v6, 1 }
  0xd5   : > { %2640 = vmatprep.subr.bf16.mxu0 %v2878_v12  ;;  %v969_v25 = vsel %vm3531_vm13, %v3563_v0, 0  ;;  %v970_v16 = vsel %vm3546_vm3, %v3565_v5, 0  ;;  %v1251_v52 = vshll.u32 %v2447_v11, 16  ;;  %v1156_v10 = vshrl.u32 %v3891_v24, 16  ;;  %vm4176_vm3 = vmmov %vm4171_vm1 }
  0xd6   : > { %v3922_v57 = vrot.slane %v2452_v30, 1  ;;  %v1160_v35 = vshll.u32 %v3941_v15, 16  ;;  %v2448_v53 = vcombine.low %v3809_v62, %v3809_v62  ;;  %vm4175_vm13 = vcmp.ne.s16.totalorder %v3518_v54, 0  ;;  %v2889_v54 = vld [vmem:[%s4070_s2 + $0x218] sm:$0xff]  }
  0xd7   : > { %1941 = vmatmul.mubr.bf16.gmra.mrb[12].mxu0 %v2418_v41  ;;  %2683 = vmatpush3.bf16.msra.mxu1 %v2881_v23  ;;  %v963_v56 = vsel %vm4175_vm13, %v3647_v58, 0  ;;  %v964_v0 = vsel %vm4176_vm3, %v3754_v48, 0  ;;  %v1155_v5 = vsel %vm1033_vm6, %v1150_v19, %v1154_v51  ;;  %v1211_v36 = vsel %vm4177_vm5, %v1208_v31, %v1210_v40 }
  0xd8   : > { %2641 = vmatpush3.bf16.msra.mxu0 %v2879_v29  ;;  %2046 = vmatprep.mubr.bf16.mxu0 %v1209_v8  ;;  %v3945_v18 = vsel %vm4174_vm15, %v3922_v57, %v1295_v44  ;;  %v1253_v60 = vrot.slane %v1251_v52, 1  ;;  %v1158_v4 = vor.u32 %v1156_v10, %v1154_v51  ;;  %v1162_v62 = vrot.slane %v1160_v35, 1  ;;  %v976_v44 = vld [vmem:[#allocation2 + $0x8] sm:$0xe] }
  0xd9   : > { %2642 = vmatprep.subr.bf16.mxu0 %v2882_v59  ;;  %2744 = vmatprep.subr.bf16.mxu1 %v2884_v37  ;;  %v2441_v12 = vcombine.low %v963_v56, %v964_v0  ;;  %v1259_v34 = vshll.u32 %v2448_v53, 16  ;;  %v1255_v41 = vshrl.u32 %v2447_v11, 16  ;;  %v2436_v50 = vcombine.low %v3647_v58, %v3754_v48  ;;  %v2893_v59 = vld [vmem:[%s4070_s2 + $0x228] sm:$0xff]  }
  0xda   : > { %2112 = vmatmul.mubr.bf16.vlgmr.msra.gmra.mrb[16].mxu1 %v2443_v49  ;;  %v1254_v55 = vsel %vm1033_vm6, %v3813_v61, %v1253_v60  ;;  %v971_v24 = vsel %vm3631_vm11, %v3638_v9, 0  ;;  %v972_v31 = vsel %vm3643_vm7, %v3647_v58, 0  ;;  %v1163_v23 = vsel %vm1033_vm6, %v1158_v4, %v1162_v62  ;;  %v2890_v61 = vld [vmem:[%s4070_s2 + $0x220] sm:$0xff]   ;;  %vm4178_vm11 = vmmov %vm4172_vm0 }
  0xdb   : > { %2752 = vmatpush3.bf16.msra.mxu1 %v2884_v37  ;;  %2119 = vmatprep.mubr.bf16.mxu1 %v3779_v21  ;;  %v2444_v21 = vcombine.low %v969_v25, %v970_v16  ;;  %v1212_v7 = vrot.slane %v2441_v12, 1  ;;  %v1164_v3 = vshrl.u32 %v3941_v15, 16  ;;  %v965_v46 = vsel %vm936_vm8, %v955_v13, 0  ;;  %vm4181_vm7 = vmmov %vm4172_vm0 }
  0xdc   : > { %2643 = vmatpush3.bf16.msra.mxu0 %v2883_v2  ;;  %2745 = vmatprep.subr.bf16.mxu1 %v2885_v14  ;;  %v1261_v63 = vrot.slane %v1259_v34, 1  ;;  %v2445_v9 = vcombine.low %v971_v24, %v972_v31  ;;  %v1257_v29 = vor.u32 %v1255_v41, %v1253_v60  ;;  %v1168_v58 = vshll.u32 %v2436_v50, 16 }
  0xdd   : > { %2720 = vmatprep.subr.bf16.mxu0 %v2884_v37  ;;  %v1213_v42 = vsel %vm4178_vm11, %v1210_v40, %v1212_v7  ;;  %v2442_v30 = vcombine.low %v965_v46, %v965_v46  ;;  %v1166_v49 = vor.u32 %v1164_v3, %v1162_v62  ;;  %v977_v38 = vsel %vm3287_vm9, %v976_v44, 0  ;;  %vm4180_vm9 = vmmov %vm4172_vm0 }
  0xde   : > { %v1170_v20 = vrot.slane %v1168_v58, 1  ;;  %v2437_v27 = vcombine.low %v955_v13, %v955_v13  ;;  %v978_v6 = vsel %vm929_vm2, %v3488_v32, 0  ;;  %v973_v26 = vsel %vm3736_vm12, %v3754_v48, 0  ;;  %vm4179_vm2 = vmmov %vm4172_vm0 }
  0xdf   : > { %2047 = vmatmul.mubr.bf16.vlgmr.msra.gmra.mrb[16].mxu0 %v1155_v5  ;;  %2753 = vmatpush3.bf16.msra.mxu1 %v2885_v14  ;;  %v1214_v8 = vrot.slane %v2442_v30, 1  ;;  %v974_v17 = vsel %vm3749_vm10, %v3893_v47, 0  ;;  %v2449_v32 = vcombine.low %v977_v38, %v978_v6  ;;  %v1294_v48 = vsel %vm4180_vm9, %v3913_v22, %v3922_v57 }
  0xe0   : > { %2721 = vmatpush3.bf16.msra.mxu0 %v2884_v37  ;;  %2746 = vmatprep.subr.bf16.mxu1 %v2886_v28  ;;  %v1262_v37 = vsel %vm1033_vm6, %v1257_v29, %v1261_v63  ;;  %v1171_v2 = vsel %vm1033_vm6, %v1166_v49, %v1170_v20  ;;  %v1176_v11 = vshll.u32 %v2437_v27, 16  ;;  %v2446_v19 = vcombine.low %v973_v26, %v974_v17 }
  0xe1   : > { %2722 = vmatprep.subr.bf16.mxu0 %v2885_v14  ;;  %2054 = vmatprep.mubr.bf16.mxu0 %v1211_v36  ;;  %v1215_v15 = vsel %vm4179_vm2, %v1212_v7, %v1214_v8  ;;  %v1288_v39 = vrot.slane %v2449_v32, 1  ;;  %vm4182_vm12 = vcmask 253952  }
  0xe2   : > { %2120 = vmatmul.mubr.bf16.gmra.mrb[20].mxu1 %v2444_v21  ;;  %v1178_v51 = vrot.slane %v1176_v11, 1  ;;  %vm4183_vm10 = vmmov %vm4182_vm12 }
  0xe3   : > { %2127 = vmatprep.mubr.bf16.mxu1 %v1254_v55  ;;  %2754 = vmatpush3.bf16.msra.mxu1 %v2886_v28  ;;  %v1290_v40 = vsel %vm4181_vm7, %v1288_v39, %v3895_v1  ;;  %v2454_v1 = vld [vmem:[%s4071_s3] ss:$0 sm:$0xff] }
  0xe4   : > { %2723 = vmatpush3.bf16.msra.mxu0 %v2885_v14  ;;  %2747 = vmatprep.subr.bf16.mxu1 %v2889_v54  ;;  %v1172_v14 = vshrl.u32 %v2436_v50, 16 }
  0xe5   : > { %2724 = vmatprep.subr.bf16.mxu0 %v2886_v28 }
  0xe6   : > { %v1174_v47 = vor.u32 %v1172_v14, %v1170_v20 }
  0xe7   : > { %2055 = vmatmul.mubr.bf16.gmra.mrb[20].mxu0 %v1163_v23  ;;  %2755 = vmatpush3.bf16.msra.mxu1 %v2889_v54 }
  0xe8   : > { %2725 = vmatpush3.bf16.msra.mxu0 %v2886_v28  ;;  %2748 = vmatprep.subr.bf16.mxu1 %v2890_v61  ;;  %v1179_v25 = vsel %vm1033_vm6, %v1174_v47, %v1178_v51  ;;  %vm2209_vm6 = vcmask 261120  }
  0xe9   : > { %2726 = vmatprep.subr.bf16.mxu0 %v2889_v54  ;;  %2062 = vmatprep.mubr.bf16.mxu0 %v1213_v42 }
  0xea   : > { %2128 = vmatmul.mubr.bf16.gmra.mrb[24].mxu1 %v2445_v9 }
  0xeb   : > { %2135 = vmatprep.mubr.bf16.mxu1 %v1262_v37  ;;  %2756 = vmatpush3.bf16.msra.mxu1 %v2890_v61 }
  0xec   : > { %2727 = vmatpush3.bf16.msra.mxu0 %v2889_v54  ;;  %2749 = vmatprep.subr.bf16.mxu1 %v2893_v59 }
  0xed   : > { %2728 = vmatprep.subr.bf16.mxu0 %v2890_v61 }
  0xef   : > { %2063 = vmatmul.mubr.bf16.gmra.mrb[24].mxu0 %v1171_v2  ;;  %2757 = vmatpush3.bf16.msra.mxu1 %v2893_v59 }
  0xf0   : > { %2729 = vmatpush3.bf16.msra.mxu0 %v2890_v61  ;;  %2070 = vmatprep.mubr.bf16.mxu0 %v1215_v15 }
  0xf1   : > { %2730 = vmatprep.subr.bf16.mxu0 %v2893_v59  ;;  %2750 = vmatprep.subr.bf16.mxu1 %v2894_v43 }
  0xf2   : > { %2136 = vmatmul.mubr.bf16.gmra.mrb[28].mxu1 %v2446_v19 }
  0xf3   : > { %2758 = vmatpush3.bf16.msra.mxu1 %v2894_v43  ;;  %2740 = vmatprep.mubr.bf16.mxu1 %v1294_v48 }
  0xf4   : > { %2731 = vmatpush3.bf16.msra.mxu0 %v2893_v59  ;;  %2751 = vmatprep.subr.bf16.mxu1 %v2896_v45 }
  0xf5   : > { %2732 = vmatprep.subr.bf16.mxu0 %v2894_v43 }
  0xf7   : > { %2071 = vmatmul.mubr.bf16.gmra.mrb[28].mxu0 %v1179_v25  ;;  %2759 = vmatpush3.bf16.msra.mxu1 %v2896_v45 }
  0xf8   : > { %2733 = vmatpush3.bf16.msra.mxu0 %v2894_v43  ;;  %2736 = vmatprep.mubr.bf16.mxu0 %v1290_v40 }
  0xf9   : > { %2734 = vmatprep.subr.bf16.mxu0 %v2896_v45 }
  0xfa   : > { %2741 = vmatmul.mubr.bf16.vlgmr.msra.gmra.mrb[32].mxu1 %v3945_v18 }
  0xfc   : > { %2735 = vmatpush3.bf16.msra.mxu0 %v2896_v45 }
  0xff   : > { %2737 = vmatmul.mubr.bf16.vlgmr.msra.gmra.mrb[32].mxu0 %v3927_v33 }
 0x18d   : > { %v2604_v22 = vpop.f32.mrb[0].mxu1 }
 0x18e   : > { %v2605_v57 = vpop.f32.mrb[1].mxu1 }
 0x18f   : > { %v2606_v16 = vadd.f32 %v2605_v57, %v2604_v22  ;;  %v2607_v28 = vpop.f32.mrb[2].mxu1 }
 0x190   : > { %v2608_v52 = vpop.f32.mrb[3].mxu1 }
 0x191   : > { %v2609_v10 = vadd.f32 %v2608_v52, %v2607_v28 }
 0x192   : > { %v2564_v35 = vpop.f32.mrb[0].mxu0 }
 0x193   : > { %v2565_v53 = vpop.f32.mrb[1].mxu0 }
 0x194   : > { %v2566_v56 = vadd.f32 %v2565_v53, %v2564_v35  ;;  %v2567_v0 = vpop.f32.mrb[2].mxu0 }
 0x195   : > { %v2568_v5 = vpop.f32.mrb[3].mxu0  ;;  %v2610_v21 = vpop.f32.mrb[4].mxu1 }
 0x196   : > { %v1919_v18 = vadd.f32 %v2566_v56, %v2454_v1  ;;  %v2569_v36 = vadd.f32 %v2568_v5, %v2567_v0  ;;  %v2611_v60 = vpop.f32.mrb[5].mxu1 }
 0x197   : > { %v2612_v33 = vadd.f32 %v2611_v60, %v2610_v21  ;;  %v2613_v4 = vpop.f32.mrb[6].mxu1 }
 0x198   : > { %v1922_v62 = vadd.f32 %v2569_v36, %v2454_v1  ;;  %v2614_v54 = vpop.f32.mrb[7].mxu1  ;;  %v1984_v12 = vadd.f32 %v2606_v16, %v1919_v18 }
 0x199   : > { %v2615_v34 = vadd.f32 %v2614_v54, %v2613_v4 }
 0x19a   : > { %v2570_v13 = vpop.f32.mrb[4].mxu0  ;;  %v1987_v55 = vadd.f32 %v2609_v10, %v1922_v62 }
 0x19b   : > { %v2571_v41 = vpop.f32.mrb[5].mxu0 }
 0x19c   : > { %v2572_v50 = vadd.f32 %v2571_v41, %v2570_v13  ;;  %v2573_v24 = vpop.f32.mrb[6].mxu0 }
 0x19d   : > { %v2574_v31 = vpop.f32.mrb[7].mxu0  ;;  %v2616_v23 = vpop.f32.mrb[8].mxu1 }
 0x19e   : > { %v1927_v61 = vadd.f32 %v2572_v50, %v2454_v1  ;;  %v2575_v7 = vadd.f32 %v2574_v31, %v2573_v24  ;;  %v2617_v3 = vpop.f32.mrb[9].mxu1 }
 0x19f   : > { %v2618_v46 = vadd.f32 %v2617_v3, %v2616_v23  ;;  %v2619_v63 = vpop.f32.mrb[10].mxu1 }
 0x1a0   : > { %v1930_v9 = vadd.f32 %v2575_v7, %v2454_v1  ;;  %v1992_v29 = vadd.f32 %v2612_v33, %v1927_v61  ;;  %v2620_v42 = vpop.f32.mrb[11].mxu1 }
 0x1a1   : > { %v2621_v58 = vadd.f32 %v2620_v42, %v2619_v63 }
 0x1a2   : > { %v1995_v44 = vadd.f32 %v2615_v34, %v1930_v9  ;;  %v2576_v30 = vpop.f32.mrb[8].mxu0 }
 0x1a3   : > { %v2577_v49 = vpop.f32.mrb[9].mxu0 }
 0x1a4   : > { %v2578_v59 = vadd.f32 %v2577_v49, %v2576_v30  ;;  %v2579_v38 = vpop.f32.mrb[10].mxu0 }
 0x1a5   : > { %v2580_v37 = vpop.f32.mrb[11].mxu0  ;;  %v2622_v20 = vpop.f32.mrb[12].mxu1 }
 0x1a6   : > { %v1935_v27 = vadd.f32 %v2578_v59, %v2454_v1  ;;  %v2581_v6 = vadd.f32 %v2580_v37, %v2579_v38  ;;  %v2623_v8 = vpop.f32.mrb[13].mxu1 }
 0x1a7   : > { %v2624_v2 = vadd.f32 %v2623_v8, %v2622_v20  ;;  %v2625_v26 = vpop.f32.mrb[14].mxu1 }
 0x1a8   : > { %v1938_v17 = vadd.f32 %v2581_v6, %v2454_v1  ;;  %v2000_v43 = vadd.f32 %v2618_v46, %v1935_v27  ;;  %v2626_v32 = vpop.f32.mrb[15].mxu1 }
 0x1a9   : > { %v2627_v14 = vadd.f32 %v2626_v32, %v2625_v26 }
 0x1aa   : > { %v2003_v11 = vadd.f32 %v2621_v58, %v1938_v17  ;;  %v2582_v15 = vpop.f32.mrb[12].mxu0 }
 0x1ab   : > { %v2583_v19 = vpop.f32.mrb[13].mxu0 }
 0x1ac   : > { %v2584_v45 = vadd.f32 %v2583_v19, %v2582_v15  ;;  %v2585_v39 = vpop.f32.mrb[14].mxu0 }
 0x1ad   : > { %v2586_v48 = vpop.f32.mrb[15].mxu0  ;;  %v2684_v47 = vpop.f32.mrb[16].mxu1 }
 0x1ae   : > { %v1943_v51 = vadd.f32 %v2584_v45, %v2454_v1  ;;  %v2587_v40 = vadd.f32 %v2586_v48, %v2585_v39  ;;  %v2685_v25 = vpop.f32.mrb[17].mxu1 }
 0x1af   : > { %v2686_v22 = vadd.f32 %v2685_v25, %v2684_v47  ;;  %v2687_v57 = vpop.f32.mrb[18].mxu1 }
 0x1b0   : > { %v1946_v16 = vadd.f32 %v2587_v40, %v2454_v1  ;;  %v2008_v28 = vadd.f32 %v2624_v2, %v1943_v51  ;;  %v2688_v52 = vpop.f32.mrb[19].mxu1 }
 0x1b1   : > { %v2689_v10 = vadd.f32 %v2688_v52, %v2687_v57 }
 0x1b2   : > { %v2011_v35 = vadd.f32 %v2627_v14, %v1946_v16  ;;  %v2644_v53 = vpop.f32.mrb[16].mxu0 }
 0x1b3   : > { %v2645_v56 = vpop.f32.mrb[17].mxu0 }
 0x1b4   : > { %v2646_v0 = vadd.f32 %v2645_v56, %v2644_v53  ;;  %v2647_v5 = vpop.f32.mrb[18].mxu0 }
 0x1b5   : > { %v2648_v21 = vpop.f32.mrb[19].mxu0  ;;  %v2690_v18 = vpop.f32.mrb[20].mxu1 }
 0x1b6   : > { %v2049_v36 = vadd.f32 %v2646_v0, %v1984_v12  ;;  %v2649_v60 = vadd.f32 %v2648_v21, %v2647_v5  ;;  %v2691_v33 = vpop.f32.mrb[21].mxu1 }
 0x1b7   : > { %v2692_v4 = vadd.f32 %v2691_v33, %v2690_v18  ;;  %v2693_v62 = vpop.f32.mrb[22].mxu1 }
 0x1b8   : > { %v2052_v54 = vadd.f32 %v2649_v60, %v1987_v55  ;;  %v2694_v34 = vpop.f32.mrb[23].mxu1  ;;  %v2114_v13 = vadd.f32 %v2686_v22, %v2049_v36 }
 0x1b9   : > { %v2695_v41 = vadd.f32 %v2694_v34, %v2693_v62 }
 0x1ba   : > { %v2650_v1 = vpop.f32.mrb[20].mxu0  ;;  %v4024_v50 = vadd.f32 %v2689_v10, %v2052_v54 }
 0x1bb   : > { %v2651_v24 = vpop.f32.mrb[21].mxu0 }
 0x1bc   : > { %v2652_v31 = vadd.f32 %v2651_v24, %v2650_v1  ;;  %v2653_v23 = vpop.f32.mrb[22].mxu0 }
 0x1bd   : > { %v2654_v61 = vpop.f32.mrb[23].mxu0  ;;  %v2696_v7 = vpop.f32.mrb[24].mxu1 }
 0x1be   : > { %v2057_v3 = vadd.f32 %v2652_v31, %v1992_v29  ;;  %v2655_v46 = vadd.f32 %v2654_v61, %v2653_v23  ;;  %v2697_v63 = vpop.f32.mrb[25].mxu1 }
 0x1bf   : > { %v2698_v12 = vadd.f32 %v2697_v63, %v2696_v7  ;;  %v2699_v9 = vpop.f32.mrb[26].mxu1 }
 0x1c0   : > { %v2060_v42 = vadd.f32 %v2655_v46, %v1995_v44  ;;  %v2700_v58 = vpop.f32.mrb[27].mxu1  ;;  %v2122_v30 = vadd.f32 %v2692_v4, %v2057_v3 }
 0x1c1   : > { %v2701_v55 = vadd.f32 %v2700_v58, %v2699_v9 }
 0x1c2   : > { %v2656_v49 = vpop.f32.mrb[24].mxu0  ;;  %v2125_v59 = vadd.f32 %v2695_v41, %v2060_v42 }
 0x1c3   : > { %v2657_v38 = vpop.f32.mrb[25].mxu0 }
 0x1c4   : > { %v2658_v37 = vadd.f32 %v2657_v38, %v2656_v49  ;;  %v2659_v20 = vpop.f32.mrb[26].mxu0 }
 0x1c5   : > { %v2660_v27 = vpop.f32.mrb[27].mxu0  ;;  %v2702_v6 = vpop.f32.mrb[28].mxu1 }
 0x1c6   : > { %v2065_v8 = vadd.f32 %v2658_v37, %v2000_v43  ;;  %v2661_v2 = vadd.f32 %v2660_v27, %v2659_v20  ;;  %v2703_v26 = vpop.f32.mrb[29].mxu1 }
 0x1c7   : > { %v2704_v29 = vadd.f32 %v2703_v26, %v2702_v6  ;;  %v2705_v17 = vpop.f32.mrb[30].mxu1 }
 0x1c8   : > { %v2068_v32 = vadd.f32 %v2661_v2, %v2003_v11  ;;  %v2706_v14 = vpop.f32.mrb[31].mxu1  ;;  %v2130_v15 = vadd.f32 %v2698_v12, %v2065_v8 }
 0x1c9   : > { %v2707_v44 = vadd.f32 %v2706_v14, %v2705_v17 }
 0x1ca   : > { %v2662_v19 = vpop.f32.mrb[28].mxu0  ;;  %v2133_v45 = vadd.f32 %v2701_v55, %v2068_v32 }
 0x1cb   : > { %v2663_v39 = vpop.f32.mrb[29].mxu0 }
 0x1cc   : > { %v2664_v48 = vadd.f32 %v2663_v39, %v2662_v19  ;;  %v2665_v47 = vpop.f32.mrb[30].mxu0 }
 0x1cd   : > { %v2666_v51 = vpop.f32.mrb[31].mxu0  ;;  %v2742_v40 = vpop.f32.mrb[32].mxu1 }
 0x1ce   : > { %v2073_v25 = vadd.f32 %v2664_v48, %v2008_v28  ;;  %v2667_v22 = vadd.f32 %v2666_v51, %v2665_v47  ;;  %v2194_v43 = vpop.f32.mrb[33].mxu1 }
 0x1cf   : > { %v2195_v57 = vadd.f32 %v2194_v43, %v2130_v15  ;;  %v2743_v11 = vpop.f32.mrb[34].mxu1 }
 0x1d0   : > { %v2076_v16 = vadd.f32 %v2667_v22, %v2011_v35  ;;  %v2138_v52 = vadd.f32 %v2704_v29, %v2073_v25  ;;  %v2197_v10 = vpop.f32.mrb[35].mxu1 }
 0x1d1   : > { %2214 = vst.msk [vmem:[%s282_s30 + $0x20] sm:$0xff] %vm2209_vm6, %v2195_v57  ;;  %v2198_v53 = vadd.f32 %v2197_v10, %v2133_v45  ;;  %v2245_v46 = vmul.f32 %v2195_v57, %v2195_v57  ;;  %v2225_v42 = vsel %vm2209_vm6, %v2195_v57, 0.0 }
 0x1d2   : > { %v2203_v56 = vadd.f32 %v2742_v40, %v2138_v52  ;;  %v2141_v0 = vadd.f32 %v2707_v44, %v2076_v16  ;;  %v2738_v5 = vpop.f32.mrb[32].mxu0 }
 0x1d3   : > { %2215 = vst.msk [vmem:[%s282_s30 + $0x28] sm:$0xff] %vm2209_vm6, %v2198_v53  ;;  %v2187_v28 = vadd.f32 %v2738_v5, %v2122_v30  ;;  %v2178_v21 = vpop.f32.mrb[33].mxu0  ;;  %v2246_v58 = vmul.f32 %v2198_v53, %v2198_v53  ;;  %v2256_v38 = vsel %vm2209_vm6, %v2245_v46, 0.0  ;;  %v2227_v37 = vsel %vm2209_vm6, %v2198_v53, 0.0 }
 0x1d4   : > { %2216 = vst.msk [vmem:[%s282_s30 + $0x30] sm:$0xff] %vm2209_vm6, %v2203_v56  ;;  %v2206_v18 = vadd.f32 %v2743_v11, %v2141_v0  ;;  %v2179_v36 = vadd.f32 %v2178_v21, %v2114_v13  ;;  %v2739_v60 = vpop.f32.mrb[34].mxu0  ;;  %v2229_v6 = vsel %vm2209_vm6, %v2203_v56, 0.0 }
 0x1d5   : > { %2212 = vst.msk [vmem:[%s282_s30 + $0x10] sm:$0xff] %vm2209_vm6, %v2187_v28  ;;  %v2190_v35 = vadd.f32 %v2739_v60, %v2125_v59  ;;  %v2181_v33 = vpop.f32.mrb[35].mxu0  ;;  %v2243_v54 = vmul.f32 %v2187_v28, %v2187_v28  ;;  %v2221_v24 = vsel %vm2209_vm6, %v2187_v28, 0.0  ;;  %v2247_v59 = vmul.f32 %v2203_v56, %v2203_v56 }
 0x1d6   : > { %2217 = vst.msk [vmem:[%s282_s30 + $0x38] sm:$0xff] %vm2209_vm6, %v2206_v18  ;;  %2210 = vst.msk [vmem:[%s282_s30] sm:$0xff] %vm2209_vm6, %v2179_v36  ;;  %v2241_v4 = vmul.f32 %v2179_v36, %v2179_v36  ;;  %v2182_v62 = vadd.f32 %v2181_v33, %v4024_v50  ;;  %v2218_v34 = vsel %vm2209_vm6, %v2179_v36, 0.0  ;;  %v2248_v8 = vmul.f32 %v2206_v18, %v2206_v18 }
 0x1d7   : > { %2213 = vst.msk [vmem:[%s282_s30 + $0x18] sm:$0xff] %vm2209_vm6, %v2190_v35  ;;  %v2244_v23 = vmul.f32 %v2190_v35, %v2190_v35  ;;  %v2252_v50 = vsel %vm2209_vm6, %v2243_v54, 0.0  ;;  %v2223_v63 = vsel %vm2209_vm6, %v2190_v35, 0.0  ;;  %v2258_v2 = vsel %vm2209_vm6, %v2246_v58, 0.0 }
 0x1d8   : > { %2211 = vst.msk [vmem:[%s282_s30 + $0x8] sm:$0xff] %vm2209_vm6, %v2182_v62  ;;  %v2219_v13 = vsel %vm2209_vm6, %v2182_v62, 0.0  ;;  %v2242_v41 = vmul.f32 %v2182_v62, %v2182_v62  ;;  %v2249_v31 = vsel %vm2209_vm6, %v2241_v4, 0.0  ;;  %v2260_v17 = vsel %vm2209_vm6, %v2247_v59, 0.0 }
 0x1d9   : > { %v2220_v1 = vadd.f32 %v2219_v13, %v2218_v34  ;;  %v2254_v30 = vsel %vm2209_vm6, %v2244_v23, 0.0  ;;  %v2231_v32 = vsel %vm2209_vm6, %v2206_v18, 0.0  ;;  %v2262_v44 = vsel %vm2209_vm6, %v2248_v8, 0.0 }
 0x1da   : > { %v2250_v61 = vsel %vm2209_vm6, %v2242_v41, 0.0 }
 0x1db   : > { %v2222_v7 = vadd.f32 %v2221_v24, %v2220_v1  ;;  %v2251_v3 = vadd.f32 %v2250_v61, %v2249_v31 }
 0x1dd   : > { %v2224_v12 = vadd.f32 %v2223_v63, %v2222_v7  ;;  %v2253_v9 = vadd.f32 %v2252_v50, %v2251_v3 }
 0x1df   : > { %v2226_v55 = vadd.f32 %v2225_v42, %v2224_v12  ;;  %v2255_v49 = vadd.f32 %v2254_v30, %v2253_v9 }
 0x1e1   : > { %v2228_v20 = vadd.f32 %v2227_v37, %v2226_v55  ;;  %v2257_v27 = vadd.f32 %v2256_v38, %v2255_v49 }
 0x1e3   : > { %v2230_v26 = vadd.f32 %v2229_v6, %v2228_v20  ;;  %v2259_v29 = vadd.f32 %v2258_v2, %v2257_v27 }
 0x1e5   : > { %v2232_v14 = vadd.f32 %v2231_v32, %v2230_v26  ;;  %v2261_v15 = vadd.f32 %v2260_v17, %v2259_v29 }
 0x1e7   : > { %v2233_v19 = vrot.slane %v2232_v14, 4  ;;  %v2263_v45 = vadd.f32 %v2262_v44, %v2261_v15 }
 0x1e9   : > { %v2234_v39 = vadd.f32 %v2233_v19, %v2232_v14  ;;  %v2264_v48 = vrot.slane %v2263_v45, 4 }
 0x1eb   : > { %v2235_v47 = vrot.slane %v2234_v39, 2  ;;  %v2265_v51 = vadd.f32 %v2264_v48, %v2263_v45 }
 0x1ed   : > { %v2236_v40 = vadd.f32 %v2235_v47, %v2234_v39  ;;  %v2266_v25 = vrot.slane %v2265_v51, 2 }
 0x1ef   : > { %v2237_v22 = vrot.slane %v2236_v40, 1  ;;  %v2267_v43 = vadd.f32 %v2266_v25, %v2265_v51 }
 0x1f1   : > { %v2238_v57 = vadd.f32 %v2237_v22, %v2236_v40  ;;  %v2268_v11 = vrot.slane %v2267_v43, 1 }
 0x1f3   : > { %2240 = vst.msk [vmem:[%s285_s20] sm:$0x1] %vm4182_vm12, %v2238_v57  ;;  %v2269_v16 = vadd.f32 %v2268_v11, %v2267_v43 }
 0x1f5   : > { %2270 = vst.msk [vmem:[%s288_s25] sm:$0x1] %vm4183_vm10, %v2269_v16 }
 0x1f6 PF: > { %s17_s21 = sadd.s32 1, %s2903_s21  }
 0x1f7   : > { %p14_p4 = scmp.ge.s32.totalorder %s17_s21, 4  }
 0x1f9   :  { %16 = sbr.rel (!%p14_p4) target bundleno = 1 (0x1), region = 93 }

// kernel: frru_forward.4
= control target key start
LH: loop header
LB: loop body
LE: loop exit
PB: predicated region body
PF: predicated region fallthrough
CT: control target
= control target key end

     0   :  { %s2659_s24 = smov 0   ;;  %s3663_s0 = inlined_call_operand.vmem [shape: f32[2,64,32], index: 0, kind: input, shape index: {}]   ;;  %s3664_s1 = inlined_call_operand.vmem [shape: f32[1,32], index: 1, kind: input, shape index: {}]   ;;  %s3665_s2 = inlined_call_operand.vmem [shape: f32[1,32], index: 2, kind: input, shape index: {}]   ;;  %s3666_s3 = inlined_call_operand.vmem [shape: bf16[1152,32], index: 3, kind: input, shape index: {}]   ;;  %s3667_s4 = inlined_call_operand.vmem [shape: f32[1,32], index: 4, kind: input, shape index: {}]   ;;  %s3668_s5 = inlined_call_operand.vmem [shape: f32[2,64,32], index: 5, kind: output, shape index: {0}]   ;;  %s3669_s6 = inlined_call_operand.vmem [shape: f32[2,1,32], index: 6, kind: output, shape index: {1}]   ;;  %s3670_s7 = inlined_call_operand.vmem [shape: f32[2,1,32], index: 7, kind: output, shape index: {2}]  }
   0x1 LB: > { %s2169_s25 = sadd.s32 4294967295, %s2616_s24   ;;  %p2173_p0 = scmp.ge.s32.totalorder %s2616_s24, 1  ;;  %s2616_s24 = sphi %s2659_s24, %s18_s24  }
   0x2   : > { %p242_p1 = scmp.lt.s32.totalorder %s2616_s24, 3 }
   0x4   : > { %p243_p2 = pnand %p2173_p0, %p242_p1 }
   0x5   : > { %v2533_v0 = vld [vmem:[%s3666_s3 + $0xc0] sm:$0xff] (!%p243_p2)   ;;  %v2618_v3 = vmov (!%p243_p2), 0   ;;  %v2537_v5 = vld [vmem:[%s3666_s3 + $0xc8] sm:$0xff] (!%p243_p2)   ;;  %v2541_v9 = vld [vmem:[%s3666_s3 + $0xd0] sm:$0xff] (!%p243_p2)   ;;  %p280_p3 = scmp.lt.s32.totalorder (!%p243_p2), %s2169_s25, 1  ;;  %v501_v22 = vlaneseq (!%p243_p2)  ;;  %vm346_vm0 = vcmask (!%p243_p2), 1040384  }
   0x6   : > { %246 = sbr.rel (%p243_p2) target bundleno = 376 (0x178), region = 40  ;;  %v2534_v1 = vld [vmem:[%s3666_s3 + $0x80] sm:$0xff] (!%p243_p2)   ;;  %2352 = vmatprep.subr.bf16.mxu1 (!%p243_p2), %v2533_v0  ;;  %345 = vst [vmem:[#allocation2] sm:$0xf] (!%p243_p2), %v2618_v3  ;;  %358 = vst [vmem:[#allocation2 + $0x28] sm:$0x1] (!%p243_p2), %v2618_v3 }
   0x7   : > { %v2535_v2 = vld [vmem:[%s3666_s3 + $0x40] sm:$0xff] (!%p243_p2)   ;;  %2353 = vmatpush3.bf16.msra.mxu1 (!%p243_p2), %v2534_v1  ;;  %v2538_v6 = vld [vmem:[%s3666_s3 + $0x88] sm:$0xff] (!%p243_p2)   ;;  %v2542_v10 = vld [vmem:[%s3666_s3 + $0x90] sm:$0xff] (!%p243_p2)   ;;  %v2750_v27 = vshrl.u32 (!%p243_p2), %v501_v22, 7  ;;  %vm3671_vm1 = vsmask.f32 (!%p243_p2), 256 }
   0x8   : > { %v2536_v4 = vld [vmem:[%s3666_s3] sm:$0xff] (!%p243_p2)   ;;  %2312 = vmatprep.subr.bf16.mxu0 (!%p243_p2), %v2535_v2  ;;  %2354 = vmatprep.subr.bf16.mxu1 (!%p243_p2), %v2537_v5  ;;  %v2539_v7 = vld [vmem:[%s3666_s3 + $0x48] sm:$0xff] (!%p243_p2)   ;;  %v2543_v11 = vld [vmem:[%s3666_s3 + $0x50] sm:$0xff] (!%p243_p2)   ;;  %vm465_vm3 = vcmask (!%p243_p2), 257024   ;;  %vm3672_vm8 = vsmask.f32 (!%p243_p2), 7938 }
   0x9   : > { %2313 = vmatpush3.bf16.msra.mxu0 (!%p243_p2), %v2536_v4  ;;  %v2540_v8 = vld [vmem:[%s3666_s3 + $0x8] sm:$0xff] (!%p243_p2)   ;;  %v2544_v12 = vld [vmem:[%s3666_s3 + $0x10] sm:$0xff] (!%p243_p2)   ;;  %v2545_v13 = vld [vmem:[%s3666_s3 + $0xd8] sm:$0xff] (!%p243_p2)   ;;  %v2773_v32 = vadd.s32 (!%p243_p2), 8, %v2750_v27  ;;  %v2779_v34 = vadd.s32 (!%p243_p2), 16, %v2750_v27  ;;  %v2785_v36 = vadd.s32 (!%p243_p2), 24, %v2750_v27 }
   0xa   : > { %2314 = vmatprep.subr.bf16.mxu0 (!%p243_p2), %v2539_v7  ;;  %v2546_v14 = vld [vmem:[%s3666_s3 + $0x98] sm:$0xff] (!%p243_p2)   ;;  %v2549_v17 = vld [vmem:[%s3666_s3 + $0xe0] sm:$0xff] (!%p243_p2)   ;;  %v2553_v21 = vld [vmem:[%s3666_s3 + $0xe8] sm:$0xff] (!%p243_p2)   ;;  %v514_v42 = vand.u32 (!%p243_p2), 7, %v2750_v27  ;;  %v2813_v52 = vadd.s32 (!%p243_p2), 32, %v2750_v27  ;;  %v2846_v0 = vadd.s32 (!%p243_p2), 40, %v2750_v27 }
   0xb   : > { %2355 = vmatpush3.bf16.msra.mxu1 (!%p243_p2), %v2538_v6  ;;  %v2547_v15 = vld [vmem:[%s3666_s3 + $0x58] sm:$0xff] (!%p243_p2)   ;;  %v2550_v18 = vld [vmem:[%s3666_s3 + $0xa0] sm:$0xff] (!%p243_p2)   ;;  %v2554_v23 = vld [vmem:[%s3666_s3 + $0xa8] sm:$0xff] (!%p243_p2)   ;;  %v521_v43 = vand.u32 (!%p243_p2), 7, %v2773_v32  ;;  %v528_v48 = vand.u32 (!%p243_p2), 7, %v2779_v34  ;;  %v535_v51 = vand.u32 (!%p243_p2), 7, %v2785_v36 }
   0xc   : > { %2356 = vmatprep.subr.bf16.mxu1 (!%p243_p2), %v2541_v9  ;;  %v2548_v16 = vld [vmem:[%s3666_s3 + $0x18] sm:$0xff] (!%p243_p2)   ;;  %v2551_v19 = vld [vmem:[%s3666_s3 + $0x60] sm:$0xff] (!%p243_p2)   ;;  %v2555_v24 = vld [vmem:[%s3666_s3 + $0x68] sm:$0xff] (!%p243_p2)   ;;  %vm2835_vm6 = vcmp.ne.s32.totalorder (!%p243_p2), %v514_v42, 7  ;;  %v542_v1 = vand.u32 (!%p243_p2), 7, %v2813_v52 }
   0xd   : > { %2315 = vmatpush3.bf16.msra.mxu0 %v2540_v8  ;;  %v2552_v20 = vld [vmem:[%s3666_s3 + $0x20] sm:$0xff]   ;;  %s3772_s25 = smov (!%p280_p3, %s2169_s25), 1  ;;  %v2556_v25 = vld [vmem:[%s3666_s3 + $0x28] sm:$0xff]   ;;  %v2557_v26 = vld [vmem:[%s3666_s3 + $0xf0] sm:$0xff]   ;;  %vm2820_vm4 = vcmp.ne.s32.totalorder %v521_v43, 7  ;;  %vm2829_vm5 = vcmp.ne.s32.totalorder %v528_v48, 7 }
   0xe   : > { %2316 = vmatprep.subr.bf16.mxu0 %v2543_v11  ;;  %v2558_v28 = vld [vmem:[%s3666_s3 + $0xb0] sm:$0xff]   ;;  %s2302_s13 = sshll.u32 %s3772_s25, 6  ;;  %v2561_v31 = vld [vmem:[%s3666_s3 + $0xf8] sm:$0xff]   ;;  %v2793_v40 = vld [vmem:[%s3664_s1] ss:$0 sm:$0xff]  ;;  %vm2841_vm7 = vcmp.ne.s32.totalorder %v535_v51, 7  ;;  %s292_s19 = scalar_lea.vmem %s3669_s6, %s3772_s25 }
   0xf   : > { %2357 = vmatpush3.bf16.msra.mxu1 %v2542_v10  ;;  %v2559_v29 = vld [vmem:[%s3666_s3 + $0x70] sm:$0xff]   ;;  %s2770_s22 = scalar_lea.vmem %s3663_s0, %s2302_s13  ;;  %v2562_v33 = vld [vmem:[%s3666_s3 + $0xb8] sm:$0xff]   ;;  %v2798_v41 = vld [vmem:[%s3665_s2] ss:$0 sm:$0xff]  ;;  %vm383_vm10 = vsmask.f32 4368  ;;  %s289_s17 = scalar_lea.vmem %s3668_s5, %s2302_s13 }
  0x10   : > { %2358 = vmatprep.subr.bf16.mxu1 %v2545_v13  ;;  %v2560_v30 = vld [vmem:[%s3666_s3 + $0x30] sm:$0xff]   ;;  %v2563_v35 = vld [vmem:[%s3666_s3 + $0x78] sm:$0xff]   ;;  %v299_v37 = vld [vmem:[%s2770_s22] sm:$0xff]  ;;  %vm2882_vm15 = vcmp.ne.s32.totalorder %v542_v1, 7  ;;  %s295_s23 = scalar_lea.vmem %s3670_s7, %s3772_s25 }
  0x11   : > { %2317 = vmatpush3.bf16.msra.mxu0 %v2544_v12  ;;  %v300_v38 = vld [vmem:[%s2770_s22 + $0x8] sm:$0xff]  ;;  %v301_v39 = vld [vmem:[%s2770_s22 + $0x10] sm:$0xff]  ;;  %vm348_vm2 = vmand %vm346_vm0, %vm3671_vm1  ;;  %v314_v44 = vmul.f32 %v2793_v40, %v299_v37 }
  0x12   : > { %2318 = vmatprep.subr.bf16.mxu0 %v2547_v15  ;;  %v315_v45 = vmul.f32 %v2793_v40, %v300_v38  ;;  %v316_v46 = vmul.f32 %v2793_v40, %v301_v39  ;;  %v349_v47 = vld [vmem:[#allocation2 + $0x4] sm:$0x1]  ;;  %v2565_v50 = vld [vmem:[%s3666_s3 + $0x38] sm:$0xff]   ;;  %vm681_vm9 = vmpackc.low %vm2820_vm4, %vm2820_vm4  ;;  %v549_v15 = vand.u32 7, %v2846_v0  ;;  %vm696_vm4 = vcmask 1044484  }
  0x13   : > { %2359 = vmatpush3.bf16.msra.mxu1 %v2546_v14  ;;  %v350_v49 = vsel %vm348_vm2, 0, %v349_v47  ;;  %v329_v53 = vadd.f32 %v2798_v41, %v314_v44  ;;  %v2566_v57 = vld [vmem:[%s3666_s3 + $0x1c0] sm:$0xff]   ;;  %v2853_v6 = vsel %vm681_vm9, 65537, %v2618_v3  ;;  %vm682_vm11 = vmpackc.low %vm2829_vm5, %vm2829_vm5  ;;  %vm3676_vm5 = vcmask 1043712  }
  0x14   : > { %2360 = vmatprep.subr.bf16.mxu1 %v2549_v17  ;;  %v330_v54 = vadd.f32 %v2798_v41, %v315_v45  ;;  %v331_v55 = vadd.f32 %v2798_v41, %v316_v46  ;;  %351 = vst [vmem:[#allocation2 + $0x4] sm:$0x1] %v350_v49  ;;  %v2569_v7 = vld [vmem:[%s3666_s3 + $0x140] sm:$0xff]   ;;  %vm680_vm12 = vmpackc.low %vm2835_vm6, %vm2835_vm6  ;;  %vm2907_vm6 = vcmp.ne.s32.totalorder %v549_v15, 7  ;;  %v2920_v49 = vadd.s32 48, %v2750_v27 }
  0x15   : > { %2319 = vmatpush3.bf16.msra.mxu0 %v2548_v16  ;;  %v337_v58 = vmax.f32 %v329_v53, 0.0  ;;  %vm2866_vm13 = vmand %vm465_vm3, %vm3672_vm8  ;;  %v303_v47 = vld [vmem:[%s2770_s22 + $0x20] sm:$0xff] }
  0x16   : > { %2320 = vmatprep.subr.bf16.mxu0 %v2551_v19  ;;  %v338_v59 = vmax.f32 %v330_v54, 0.0  ;;  %v339_v60 = vmax.f32 %v331_v55, 0.0  ;;  %vm683_vm14 = vmpackc.low %vm2841_vm7, %vm2841_vm7  ;;  %v690_v19 = vsel %vm682_vm11, 65537, %v2618_v3  ;;  %v318_v56 = vmul.f32 %v2793_v40, %v303_v47  ;;  %v2584_v0 = vld [vmem:[%s3666_s3 + $0x1a0] sm:$0xff]  }
  0x17   : > { %2361 = vmatpush3.bf16.msra.mxu1 %v2550_v18  ;;  %v2304_v2 = vpack.c.bf16 %v337_v58, %v337_v58  ;;  %vm2888_vm2 = vmor %vm3671_vm1, %vm383_vm10  ;;  %v2942_v58 = vadd.s32 56, %v2750_v27  ;;  %vm2952_vm10 = vcmp.ne.s32.totalorder %v521_v43, 0  ;;  %vm826_vm1 = vsmask.f32 7424 }
  0x18   : > { %2362 = vmatprep.subr.bf16.mxu1 %v2553_v21  ;;  %v2305_v4 = vpack.c.bf16 %v338_v59, %v338_v59  ;;  %v2306_v5 = vpack.c.bf16 %v339_v60, %v339_v60  ;;  %vm684_vm7 = vmpackc.low %vm2882_vm15, %vm2882_vm15  ;;  %v333_v62 = vadd.f32 %v2798_v41, %v318_v56 }
  0x19   : > { %2321 = vmatpush3.bf16.msra.mxu0 %v2552_v20  ;;  %v386_v8 = vshrl.u32 %v2304_v2, 16  ;;  %v389_v9 = vshll.u32 %v2304_v2, 16  ;;  %vm2927_vm9 = vmor %vm346_vm0, %vm696_vm4  ;;  %vm2946_vm0 = vcmp.ne.s32.totalorder %v514_v42, 0  ;;  %v556_v42 = vand.u32 7, %v2920_v49 }
  0x1a   : > { %2322 = vmatprep.subr.bf16.mxu0 %v2555_v24  ;;  %v394_v10 = vshrl.u32 %v2305_v4, 16  ;;  %v397_v11 = vshll.u32 %v2305_v4, 16  ;;  %v403_v12 = vshrl.u32 %v2306_v5, 16  ;;  %v406_v13 = vshll.u32 %v2306_v5, 16  ;;  %vm685_vm11 = vmpackc.low %vm2907_vm6, %vm2907_vm6 }
  0x1b   : > { %2363 = vmatpush3.bf16.msra.mxu1 %v2554_v23  ;;  %v388_v16 = vrot.slane %v386_v8, 7  ;;  %v467_v18 = vld [vmem:[#allocation2 + $0x4] sm:$0xf]  ;;  %v2895_v23 = vsel %vm680_vm12, 65537, %v2618_v3  ;;  %v700_v24 = vrot.slane %v2853_v6, 7  ;;  %vm2968_vm12 = vmand %vm3676_vm5, %vm3672_vm8  ;;  %v341_v5 = vmax.f32 %v333_v62, 0.0 }
  0x1c   : > { %2364 = vmatprep.subr.bf16.mxu1 %v2557_v26  ;;  %v396_v17 = vrot.slane %v394_v10, 7  ;;  %v2892_v22 = vrot.slane %v403_v12, 7  ;;  %v698_v45 = vrot.slane %v2895_v23, 7  ;;  %v563_v8 = vand.u32 7, %v2942_v58  ;;  %v2987_v10 = vld [vmem:[#allocation2] sm:$0xf]  ;;  %vm2999_vm4 = vmpackc.low %vm2946_vm0, %vm2946_vm0 }
  0x1d   : > { %2323 = vmatpush3.bf16.msra.mxu0 %v2556_v25  ;;  %v703_v25 = vrot.slane %v690_v19, 7  ;;  %v391_v26 = vor.u32 %v389_v9, %v388_v16  ;;  %v702_v46 = vrot.slane %v700_v24, 4  ;;  %v2308_v14 = vpack.c.bf16 %v341_v5, %v341_v5 }
  0x1e   : > { %2324 = vmatprep.subr.bf16.mxu0 %v2559_v29  ;;  %v399_v29 = vor.u32 %v397_v11, %v396_v17  ;;  %v699_v63 = vrot.slane %v698_v45, 4  ;;  %vm3009_vm6 = vcmp.ne.s32.totalorder %v535_v51, 0  ;;  %vm3677_vm0 = vcmask 1046528  }
  0x1f   : > { %2365 = vmatpush3.bf16.msra.mxu1 %v2558_v28  ;;  %v392_v28 = vrot.slane %v388_v16, 4  ;;  %v468_v38 = vsel %vm2866_vm13, %v391_v26, %v467_v18  ;;  %v705_v53 = vrot.slane %v703_v25, 4  ;;  %v2963_v27 = vsel %vm2927_vm9, %v702_v46, %v703_v25  ;;  %v305_v46 = vld [vmem:[%s2770_s22 + $0x30] sm:$0xff] }
  0x20   : > { %2366 = vmatprep.subr.bf16.mxu1 %v2561_v31  ;;  %v408_v31 = vor.u32 %v406_v13, %v2892_v22  ;;  %469 = vst [vmem:[#allocation2 + $0x4] sm:$0xf] %v468_v38  ;;  %vm2978_vm13 = vcmp.ne.s32.totalorder %v528_v48, 0  ;;  %v663_v13 = vld [vmem:[#allocation2] sm:$0xe]  ;;  %v3005_v18 = vsel %vm2927_vm9, %v699_v63, %v700_v24  ;;  %v410_v24 = vrot.slane %v2892_v22, 4 }
  0x21   : > { %2325 = vmatpush3.bf16.msra.mxu0 %v2560_v30  ;;  %v401_v30 = vrot.slane %v396_v17, 4  ;;  %v400_v37 = vsel %vm2888_vm2, %v392_v28, %v399_v29  ;;  %v654_v28 = vsel %vm2999_vm4, %v2987_v10, 0  ;;  %v424_v38 = vshll.u32 %v2308_v14, 16 }
  0x22   : > { %2326 = vmatprep.subr.bf16.mxu0 %v2563_v35  ;;  %v302_v35 = vld [vmem:[%s2770_s22 + $0x18] sm:$0xff]  ;;  %471 = vst.msk [vmem:[#allocation2 + $0x8] sm:$0xf] %vm465_vm3, %v400_v37  ;;  %v421_v37 = vshrl.u32 %v2308_v14, 16  ;;  %v320_v5 = vmul.f32 %v2793_v40, %v305_v46 }
  0x23   : > { %2367 = vmatpush3.bf16.msra.mxu1 %v2562_v33  ;;  %v691_v33 = vsel %vm683_vm14, 65537, %v2618_v3  ;;  %v409_v44 = vsel %vm2888_vm2, %v401_v30, %v408_v31  ;;  %489 = vst.msk [vmem:[#allocation2 + $0x8] sm:$0xf] %vm3676_vm5, %v2618_v3  ;;  %v317_v55 = vmul.f32 %v2793_v40, %v302_v35  ;;  %vm3674_vm14 = vcmp.ne.s16.totalorder %v2963_v27, 0 }
  0x24   : > { %2432 = vmatprep.subr.bf16.mxu1 %v2566_v57  ;;  %472 = vst.msk [vmem:[#allocation2 + $0xc] sm:$0xf] %vm465_vm3, %v409_v44  ;;  %v706_v54 = vrot.slane %v691_v33, 7  ;;  %v692_v57 = vsel %vm684_vm7, 65537, %v2618_v3  ;;  %vm3014_vm7 = vcmp.ne.s16.totalorder %v698_v45, 0  ;;  %v304_v33 = vld [vmem:[%s2770_s22 + $0x28] sm:$0xff] }
  0x25   : > { %2327 = vmatpush3.bf16.msra.mxu0 %v2565_v50  ;;  %490 = vst.msk [vmem:[#allocation2 + $0xc] sm:$0xf] %vm3676_vm5, %v2618_v3  ;;  %v332_v61 = vadd.f32 %v2798_v41, %v317_v55  ;;  %v709_v6 = vrot.slane %v692_v57, 7  ;;  %v730_v39 = vsel %vm3014_vm7, %v663_v13, 0  ;;  %v3060_v55 = vrot.slane %v421_v37, 7 }
  0x26   : > { %2392 = vmatprep.subr.bf16.mxu0 %v2569_v7  ;;  %v2974_v43 = vsel %vm2927_vm9, %v705_v53, %v706_v54  ;;  %v2983_v7 = vsel %vm685_vm11, 65537, %v2618_v3  ;;  %v708_v12 = vrot.slane %v706_v54, 4  ;;  %vm3036_vm11 = vmpackc.low %vm2952_vm10, %vm2952_vm10  ;;  %vm3056_vm10 = vcmp.ne.s32.totalorder %v556_v42, 7 }
  0x27   : > { %v340_v2 = vmax.f32 %v332_v61, 0.0  ;;  %v485_v9 = vld [vmem:[#allocation2 + $0x4] sm:$0xf]  ;;  %vm3673_vm15 = vcmp.ne.s16.totalorder %v2974_v43, 0  ;;  %v711_v23 = vrot.slane %v709_v6, 4  ;;  %v712_v25 = vrot.slane %v2983_v7, 7 }
  0x28   : > { %v486_v34 = vsel %vm2968_vm12, 0, %v485_v9  ;;  %v3030_v31 = vsel %vm2927_vm9, %v708_v12, %v709_v6  ;;  %vm3675_vm12 = vcmp.ne.s16.totalorder %v3005_v18, 0  ;;  %v319_v56 = vmul.f32 %v2793_v40, %v304_v33  ;;  %v2580_v7 = vld [vmem:[%s3666_s3 + $0x198] sm:$0xff]  }
  0x29   : > { %v2307_v11 = vpack.c.bf16 %v340_v2, %v340_v2  ;;  %487 = vst [vmem:[#allocation2 + $0x4] sm:$0xf] %v486_v34  ;;  %v3051_v45 = vsel %vm2927_vm9, %v711_v23, %v712_v25  ;;  %vm725_vm8 = vcmp.ne.s16.totalorder %v3030_v31, 0  ;;  %v426_v32 = vor.u32 %v424_v38, %v3060_v55 }
  0x2a   : > { %v2991_v48 = vld [vmem:[#allocation2 + $0x8] sm:$0xf]  ;;  %v334_v2 = vadd.f32 %v2798_v41, %v319_v56  ;;  %v335_v37 = vadd.f32 %v2798_v41, %v320_v5 }
  0x2b   : > { %v412_v19 = vshrl.u32 %v2307_v11, 16  ;;  %v415_v29 = vshll.u32 %v2307_v11, 16  ;;  %v732_v36 = vsel %vm3674_vm14, %v2991_v48, 0  ;;  %v741_v57 = vsel %vm3036_vm11, %v2991_v48, 0  ;;  %vm3082_vm14 = vmpackc.low %vm2978_vm13, %vm2978_vm13  ;;  %v2572_v56 = vld [vmem:[%s3666_s3 + $0x188] sm:$0xff]  }
  0x2c   : > { %v2994_v16 = vld [vmem:[#allocation2 + $0xc] sm:$0xf]  ;;  %vm726_vm13 = vcmp.ne.s16.totalorder %v3051_v45, 0  ;;  %v656_v20 = vsel %vm3082_vm14, %v2991_v48, 0  ;;  %v343_v52 = vmax.f32 %v335_v37, 0.0 }
  0x2d   : > { %v733_v51 = vsel %vm3673_vm15, %v2994_v16, 0  ;;  %v414_v30 = vrot.slane %v412_v19, 7  ;;  %v3043_v35 = vcombine.low %v2991_v48, %v2994_v16  ;;  %vm3071_vm15 = vcmp.ne.s32.totalorder %v563_v8, 7  ;;  %v2573_v5 = vld [vmem:[%s3666_s3 + $0x148] sm:$0xff]  }
  0x2e   : > { %v2198_v53 = vcombine.low %v732_v36, %v733_v51  ;;  %v742_v23 = vsel %vm3082_vm14, %v2994_v16, 0  ;;  %v2567_v36 = vld [vmem:[%s3666_s3 + $0x180] sm:$0xff]  }
  0x2f   : > { %v417_v44 = vor.u32 %v415_v29, %v414_v30  ;;  %v419_v54 = vrot.slane %v414_v30, 4  ;;  %v835_v62 = vshll.u32 %v3043_v35, 16  ;;  %v839_v33 = vshrl.u32 %v3043_v35, 16 }
  0x30   : > { %v3075_v61 = vld [vmem:[#allocation2 + $0x4] sm:$0xf]  ;;  %v3100_v34 = vrot.slane %v2198_v53, 1 }
  0x31   : > { %v418_v59 = vsel %vm2888_vm2, %v410_v24, %v417_v44  ;;  %v740_v6 = vsel %vm2999_vm4, %v3075_v61, 0  ;;  %v731_v9 = vsel %vm3675_vm12, %v3075_v61, 0  ;;  %v2192_v4 = vcombine.low %v2987_v10, %v3075_v61  ;;  %vm3117_vm12 = vmpackc.low %vm3009_vm6, %vm3009_vm6  ;;  %v2571_v44 = vld [vmem:[%s3666_s3 + $0x1c8] sm:$0xff]   ;;  %v355_v53 = vld [vmem:[#allocation2 + $0x24] sm:$0xf] }
  0x32   : > { %473 = vst.msk [vmem:[#allocation2 + $0x10] sm:$0xf] %vm465_vm3, %v418_v59  ;;  %v2202_v11 = vcombine.low %v740_v6, %v741_v57  ;;  %v2197_v12 = vcombine.low %v730_v39, %v731_v9  ;;  %v427_v13 = vsel %vm2888_vm2, %v419_v54, %v426_v32  ;;  %v342_v24 = vmax.f32 %v334_v2, 0.0  ;;  %v2570_v54 = vld [vmem:[%s3666_s3 + $0x100] sm:$0xff]  }
  0x33   : > { %491 = vst.msk [vmem:[#allocation2 + $0x10] sm:$0xf] %vm3676_vm5, %v2618_v3  ;;  %v828_v14 = vshrl.u32 %v2192_v4, 16  ;;  %v830_v19 = vshll.u32 %v2192_v4, 16  ;;  %v655_v51 = vsel %vm3036_vm11, %v3075_v61, 0  ;;  %v837_v39 = vrot.slane %v835_v62, 1 }
  0x34   : > { %474 = vst.msk [vmem:[#allocation2 + $0x14] sm:$0xf] %vm465_vm3, %v427_v13  ;;  %1774 = vmatprep.mubr.bf16.mxu1 %v2202_v11  ;;  %v891_v29 = vrot.slane %v2197_v12, 1  ;;  %v2309_v46 = vpack.c.bf16 %v342_v24, %v342_v24  ;;  %vm3133_vm6 = vcmp.ne.s32.totalorder %v542_v1, 0  ;;  %v306_v1 = vld [vmem:[%s2770_s22 + $0x38] sm:$0xff]  ;;  %v2188_v59 = vcombine.low %v654_v28, %v655_v51  ;;  %v2575_v12 = vld [vmem:[%s3666_s3 + $0x1d0] sm:$0xff]  }
  0x35   : > { %492 = vst.msk [vmem:[#allocation2 + $0x14] sm:$0xf] %vm3676_vm5, %v2618_v3  ;;  %v832_v38 = vrot.slane %v830_v19, 1  ;;  %vm686_vm5 = vmpackc.low %vm3056_vm10, %vm3056_vm10  ;;  %v428_v6 = vrot.slane %v3060_v55, 4  ;;  %v2310_v9 = vpack.c.bf16 %v343_v52, %v343_v52  ;;  %v321_v28 = vmul.f32 %v2793_v40, %v306_v1  ;;  %v2574_v40 = vld [vmem:[%s3666_s3 + $0x108] sm:$0xff]  }
  0x36   : > { %v893_v35 = vsel %vm3677_vm0, %v891_v29, %v3100_v34  ;;  %v430_v62 = vshrl.u32 %v2309_v46, 16  ;;  %v433_v32 = vshll.u32 %v2309_v46, 16  ;;  %vm687_vm0 = vmpackc.low %vm3071_vm15, %vm3071_vm15  ;;  %v694_v10 = vsel %vm686_vm5, 65537, %v2618_v3  ;;  %v2576_v29 = vld [vmem:[%s3666_s3 + $0x190] sm:$0xff]  }
  0x37   : > { %1775 = vmatmul.mubr.bf16.vlgmr.msra.gmra.mrb[0].mxu1 %v893_v35  ;;  %v833_v57 = vor.u32 %v832_v38, %v828_v14  ;;  %v439_v14 = vshrl.u32 %v2310_v9, 16  ;;  %v442_v19 = vshll.u32 %v2310_v9, 16  ;;  %v715_v37 = vrot.slane %v694_v10, 7  ;;  %v2577_v46 = vld [vmem:[%s3666_s3 + $0x150] sm:$0xff]   ;;  %vm3236_vm15 = vmpackc.low %vm3133_vm6, %vm3133_vm6 }
  0x38   : > { %2433 = vmatpush3.bf16.msra.mxu1 %v2567_v36  ;;  %v432_v47 = vrot.slane %v430_v62, 7  ;;  %v657_v36 = vsel %vm3117_vm12, %v2994_v16, 0  ;;  %v714_v1 = vrot.slane %v712_v25, 4  ;;  %vm3725_vm5 = vcmask 1043712  }
  0x39   : > { %v838_v4 = vsel %vm826_vm1, %v833_v57, %v837_v39  ;;  %2434 = vmatprep.subr.bf16.mxu1 %v2571_v44  ;;  %v3208_v60 = vrot.slane %v439_v14, 7  ;;  %v336_v57 = vadd.f32 %v2798_v41, %v321_v28  ;;  %v2189_v9 = vcombine.low %v656_v20, %v657_v36  ;;  %vm3731_vm6 = vmmov %vm3725_vm5 }
  0x3a   : > { %v3153_v2 = vld [vmem:[#allocation2 + $0x10] sm:$0xf]  ;;  %1709 = vmatprep.mubr.bf16.mxu0 %v838_v4  ;;  %v435_v51 = vor.u32 %v433_v32, %v432_v47  ;;  %v437_v35 = vrot.slane %v432_v47, 4  ;;  %v717_v10 = vrot.slane %v715_v37, 4  ;;  %vm3251_vm10 = vcmp.ne.s32.totalorder %v549_v15, 0  ;;  %v2582_v15 = vld [vmem:[%s3666_s3 + $0x118] sm:$0xff]  }
  0x3b   : > { %v743_v55 = vsel %vm3117_vm12, %v3153_v2, 0  ;;  %v734_v11 = vsel %vm725_vm8, %v3153_v2, 0  ;;  %1710 = vmatmul.mubr.bf16.vlgmr.msra.gmra.mrb[0].mxu0 %v2188_v59  ;;  %v841_v59 = vor.u32 %v839_v33, %v837_v39  ;;  %v444_v32 = vor.u32 %v442_v19, %v3208_v60  ;;  %v2581_v39 = vld [vmem:[%s3666_s3 + $0x158] sm:$0xff]   ;;  %v2587_v47 = vld [vmem:[%s3666_s3 + $0x1e8] sm:$0xff]  }
  0x3c   : > { %v2203_v13 = vcombine.low %v742_v23, %v743_v55  ;;  %v3182_v24 = vld [vmem:[#allocation2 + $0x14] sm:$0xf]  ;;  %v3196_v23 = vsel %vm687_vm0, 65537, %v2618_v3  ;;  %2393 = vmatpush3.bf16.msra.mxu0 %v2570_v54  ;;  %2435 = vmatpush3.bf16.msra.mxu1 %v2572_v56  ;;  %v2579_v54 = vld [vmem:[%s3666_s3 + $0x1d8] sm:$0xff]   ;;  %v436_v56 = vsel %vm2888_vm2, %v428_v6, %v435_v51  ;;  %v344_v41 = vmax.f32 %v336_v57, 0.0 }
  0x3d   : > { %v735_v38 = vsel %vm726_vm13, %v3182_v24, 0  ;;  %v3203_v44 = vcombine.low %v3153_v2, %v3182_v24  ;;  %2394 = vmatprep.subr.bf16.mxu0 %v2573_v5  ;;  %2436 = vmatprep.subr.bf16.mxu1 %v2575_v12  ;;  %475 = vst.msk [vmem:[#allocation2 + $0x18] sm:$0xf] %vm465_vm3, %v436_v56  ;;  %v2578_v6 = vld [vmem:[%s3666_s3 + $0x110] sm:$0xff]   ;;  %v445_v20 = vsel %vm2888_vm2, %v437_v35, %v444_v32  ;;  %v718_v28 = vrot.slane %v3196_v23, 7 }
  0x3e   : > { %1782 = vmatprep.mubr.bf16.mxu1 %v2203_v13  ;;  %v2199_v52 = vcombine.low %v734_v11, %v735_v38  ;;  %493 = vst.msk [vmem:[#allocation2 + $0x18] sm:$0xf] %vm3725_vm5, %v2618_v3  ;;  %vm3728_vm0 = vcmask 1046528   ;;  %v3258_v55 = vsel %vm2927_vm9, %v714_v1, %v715_v37  ;;  %v2583_v11 = vld [vmem:[%s3666_s3 + $0x1e0] sm:$0xff]   ;;  %v2311_v12 = vpack.c.bf16 %v344_v41, %v344_v41  ;;  %vm3282_vm5 = vmpackc.low %vm3251_vm10, %vm3251_vm10  ;;  %v2589_v1 = vld [vmem:[%s3666_s3 + $0x168] sm:$0xff]  }
  0x3f   : > { %v843_v62 = vshll.u32 %v3203_v44, 16  ;;  %476 = vst.msk [vmem:[#allocation2 + $0x1c] sm:$0xf] %vm465_vm3, %v445_v20  ;;  %v744_v19 = vsel %vm3236_vm15, %v3182_v24, 0  ;;  %v446_v36 = vrot.slane %v3208_v60, 4  ;;  %v2585_v37 = vld [vmem:[%s3666_s3 + $0x160] sm:$0xff]  }
  0x40   : > { %v3221_v5 = vrot.slane %v2199_v52, 1  ;;  %2395 = vmatpush3.bf16.msra.mxu0 %v2574_v40  ;;  %2437 = vmatpush3.bf16.msra.mxu1 %v2576_v29  ;;  %494 = vst.msk [vmem:[#allocation2 + $0x1c] sm:$0xf] %vm3731_vm6, %v2618_v3  ;;  %v448_v13 = vshrl.u32 %v2311_v12, 16  ;;  %v451_v40 = vshll.u32 %v2311_v12, 16  ;;  %v3291_v29 = vsel %vm2927_vm9, %v717_v10, %v718_v28  ;;  %v2586_v38 = vld [vmem:[%s3666_s3 + $0x120] sm:$0xff]  }
  0x41   : > { %v3231_v25 = vrot.slane %v843_v62, 1  ;;  %2396 = vmatprep.subr.bf16.mxu0 %v2577_v46  ;;  %2438 = vmatprep.subr.bf16.mxu1 %v2579_v54  ;;  %vm352_vm10 = vcmask 1043456   ;;  %vm3678_vm9 = vcmp.ne.s16.totalorder %v3291_v29, 0  ;;  %v2588_v46 = vld [vmem:[%s3666_s3 + $0x1a8] sm:$0xff]   ;;  %v847_v54 = vshrl.u32 %v3203_v44, 16  ;;  %v2591_v57 = vld [vmem:[%s3666_s3 + $0x1f0] sm:$0xff]  }
  0x42   : > { %v895_v4 = vsel %vm3728_vm0, %v3100_v34, %v3221_v5  ;;  %vm3679_vm0 = vcmp.ne.s16.totalorder %v3258_v55, 0  ;;  %v3295_v51 = vrot.slane %v448_v13, 7  ;;  %v658_v56 = vsel %vm3236_vm15, %v3153_v2, 0 }
  0x43   : > { %1783 = vmatmul.mubr.bf16.gmra.mrb[4].mxu1 %v895_v4  ;;  %v3265_v34 = vsel %vm826_vm1, %v841_v59, %v3231_v25  ;;  %v659_v62 = vsel %vm3282_vm5, %v3182_v24, 0  ;;  %vm3335_vm6 = vcmp.ne.s32.totalorder %v556_v42, 0  ;;  %v3347_v21 = vrot.slane %v718_v28, 4  ;;  %v2590_v42 = vld [vmem:[%s3666_s3 + $0x128] sm:$0xff]   ;;  %v2592_v28 = vld [vmem:[%s3666_s3 + $0x1b0] sm:$0xff]  }
  0x44   : > { %1717 = vmatprep.mubr.bf16.mxu0 %v3265_v34  ;;  %2439 = vmatpush3.bf16.msra.mxu1 %v2580_v7  ;;  %v453_v35 = vor.u32 %v451_v40, %v3295_v51  ;;  %v749_v7 = vld [vmem:[#allocation2 + $0x4] sm:$0xe]  ;;  %v849_v20 = vor.u32 %v847_v54, %v3231_v25  ;;  %v3386_v25 = vcombine.low %v3075_v61, %v2991_v48  ;;  %v760_v61 = vsel %vm2999_vm4, %v2991_v48, 0  ;;  %v2598_v54 = vld [vmem:[%s3666_s3 + $0x178] sm:$0xff]  }
  0x45   : > { %1718 = vmatmul.mubr.bf16.gmra.mrb[4].mxu0 %v2189_v9  ;;  %2440 = vmatprep.subr.bf16.mxu1 %v2583_v11  ;;  %v3297_v23 = vld [vmem:[#allocation2 + $0x18] sm:$0xf]  ;;  %v750_v58 = vsel %vm3014_vm7, %v749_v7, 0  ;;  %v3454_v7 = vld [vmem:[%s3666_s3 + $0x200] sm:$0xff]   ;;  %v754_v22 = vsel %vm725_vm8, %v3182_v24, 0  ;;  %vm496_vm4 = vcmask 1040640  }
  0x46   : > { %2397 = vmatpush3.bf16.msra.mxu0 %v2578_v6  ;;  %v745_v50 = vsel %vm3282_vm5, %v3297_v23, 0  ;;  %v736_v52 = vsel %vm3679_vm0, %v3297_v23, 0  ;;  %v454_v44 = vsel %vm2888_vm2, %v446_v36, %v453_v35  ;;  %vm3736_vm2 = vcmask 1043712   ;;  %v2595_v36 = vld [vmem:[%s3666_s3 + $0x130] sm:$0xff]  }
  0x47   : > { %2398 = vmatprep.subr.bf16.mxu0 %v2581_v39  ;;  %v2204_v60 = vcombine.low %v744_v19, %v745_v50  ;;  %v3326_v59 = vld [vmem:[#allocation2 + $0x1c] sm:$0xf]  ;;  %477 = vst.msk [vmem:[#allocation2 + $0x20] sm:$0xf] %vm465_vm3, %v454_v44  ;;  %vm3738_vm0 = vcmp.ne.s16.totalorder %v2974_v43, 0  ;;  %vm3364_vm3 = vcmp.ne.s32.totalorder %v563_v8, 0 }
  0x48   : > { %2441 = vmatpush3.bf16.msra.mxu1 %v2584_v0  ;;  %v737_v9 = vsel %vm3678_vm9, %v3326_v59, 0  ;;  %v3344_v6 = vcombine.low %v3297_v23, %v3326_v59  ;;  %495 = vst.msk [vmem:[#allocation2 + $0x20] sm:$0xf] %vm3736_vm2, %v2618_v3  ;;  %vm3737_vm9 = vcmp.ne.s16.totalorder %v2963_v27, 0  ;;  %v753_v39 = vsel %vm3738_vm0, %v3153_v2, 0  ;;  %v2597_v50 = vld [vmem:[%s3666_s3 + $0x1b8] sm:$0xff]  }
  0x49   : > { %2442 = vmatprep.subr.bf16.mxu1 %v2587_v47  ;;  %1790 = vmatprep.mubr.bf16.mxu1 %v2204_v60  ;;  %v2200_v49 = vcombine.low %v736_v52, %v737_v9  ;;  %v752_v41 = vsel %vm3737_vm9, %v2994_v16, 0  ;;  %vm3741_vm9 = vcmp.ne.s16.totalorder %v3005_v18, 0  ;;  %vm3742_vm0 = vsmask.f32 7938  ;;  %v2594_v47 = vld [vmem:[%s3666_s3 + $0x170] sm:$0xff]   ;;  %v2609_v19 = vld [vmem:[%s3666_s3 + $0x238] sm:$0xff]  }
  0x4a   : > { %2399 = vmatpush3.bf16.msra.mxu0 %v2582_v15  ;;  %v851_v10 = vshll.u32 %v3344_v6, 16  ;;  %v751_v4 = vsel %vm3741_vm9, %v2991_v48, 0  ;;  %vm3380_vm2 = vmand %vm352_vm10, %vm3742_vm0  ;;  %v2190_v0 = vcombine.low %v658_v56, %v659_v62  ;;  %v2212_v13 = vcombine.low %v752_v41, %v753_v39 }
  0x4b   : > { %2400 = vmatprep.subr.bf16.mxu0 %v2585_v37  ;;  %v3374_v11 = vrot.slane %v2200_v49, 1  ;;  %vm3391_vm9 = vmpackc.low %vm3335_vm6, %vm3335_vm6  ;;  %vm3747_vm10 = vcmask 1046528   ;;  %vm3680_vm0 = vcmp.ne.s16.totalorder %v3347_v21, 0  ;;  %v2596_v37 = vld [vmem:[%s3666_s3 + $0x1f8] sm:$0xff]   ;;  %v855_v60 = vshrl.u32 %v3344_v6, 16 }
  0x4c   : > { %2443 = vmatpush3.bf16.msra.mxu1 %v2588_v46  ;;  %v853_v12 = vrot.slane %v851_v10, 1  ;;  %vm3407_vm6 = vmpackc.low %vm3364_vm3, %vm3364_vm3  ;;  %v356_v46 = vsel %vm3380_vm2, 0, %v355_v53  ;;  %v746_v35 = vsel %vm3391_vm9, %v3326_v59, 0  ;;  %v660_v52 = vsel %vm3391_vm9, %v3297_v23, 0 }
  0x4d   : > { %2444 = vmatprep.subr.bf16.mxu1 %v2591_v57  ;;  %v897_v40 = vsel %vm3747_vm10, %v3221_v5, %v3374_v11  ;;  %357 = vst [vmem:[#allocation2 + $0x24] sm:$0xf] %v356_v46  ;;  %v3439_v57 = vrot.slane %v2212_v13, 1  ;;  %v3443_v62 = vcombine.low %v2994_v16, %v3153_v2  ;;  %v940_v44 = vshll.u32 %v3386_v25, 16  ;;  %v769_v46 = vld [vmem:[#allocation2 + $0x8] sm:$0xe] }
  0x4e   : > { %2401 = vmatpush3.bf16.msra.mxu0 %v2586_v38  ;;  %1791 = vmatmul.mubr.bf16.gmra.mrb[8].mxu1 %v897_v40  ;;  %v3419_v5 = vsel %vm826_vm1, %v849_v20, %v853_v12  ;;  %v2211_v38 = vcombine.low %v750_v58, %v751_v4  ;;  %vm478_vm3 = vcmask 253952   ;;  %v661_v41 = vsel %vm3407_vm6, %v3326_v59, 0 }
  0x4f   : > { %2402 = vmatprep.subr.bf16.mxu0 %v2589_v1  ;;  %1725 = vmatprep.mubr.bf16.mxu0 %v3419_v5  ;;  %v3437_v56 = vld [vmem:[#allocation2 + $0x20] sm:$0xf]  ;;  %v761_v20 = vsel %vm3036_vm11, %v2994_v16, 0  ;;  %v3462_v10 = vor.u32 %v855_v60, %v853_v12  ;;  %v455_v4 = vrot.slane %v3295_v51, 4  ;;  %v945_v58 = vshll.u32 %v3443_v62, 16 }
  0x50   : > { %1726 = vmatmul.mubr.bf16.gmra.mrb[8].mxu0 %v2190_v0  ;;  %v662_v1 = vld [vmem:[#allocation2 + $0x20] sm:$0x1]  ;;  %2445 = vmatpush3.bf16.msra.mxu1 %v2592_v28  ;;  %v747_v32 = vsel %vm3407_vm6, %v3437_v56, 0  ;;  %v1000_v39 = vrot.slane %v2211_v38, 1  ;;  %v2599_v28 = vld [vmem:[%s3666_s3 + $0x138] sm:$0xff]   ;;  %v755_v8 = vsel %vm726_vm13, %v3297_v23, 0  ;;  %v2191_v0 = vcombine.low %v660_v52, %v661_v41 }
  0x51   : > { %v738_v9 = vsel %vm3680_vm0, %v662_v1, 0  ;;  %v2196_v6 = vcombine.low %v662_v1, %v662_v1  ;;  %2446 = vmatprep.subr.bf16.mxu1 %v2596_v37  ;;  %v2205_v49 = vcombine.low %v746_v35, %v747_v32  ;;  %vm3750_vm11 = vsmask.f32 256  ;;  %vm3751_vm0 = vmmov %vm3747_vm10 }
  0x52   : > { %2403 = vmatpush3.bf16.msra.mxu0 %v2590_v42  ;;  %v2201_v42 = vcombine.low %v738_v9, %v738_v9  ;;  %vm479_vm2 = vmand %vm478_vm3, %vm3750_vm11  ;;  %v938_v51 = vshrl.u32 %v3386_v25, 16  ;;  %v1002_v40 = vsel %vm3751_vm0, %v1000_v39, %v3439_v57  ;;  %v2216_v25 = vcombine.low %v760_v61, %v761_v20 }
  0x53   : > { %2404 = vmatprep.subr.bf16.mxu0 %v2594_v47  ;;  %v859_v3 = vshll.u32 %v2196_v6, 16  ;;  %1798 = vmatprep.mubr.bf16.mxu1 %v2205_v49  ;;  %v942_v47 = vrot.slane %v940_v44, 1  ;;  %v3493_v60 = vcombine.low %v3182_v24, %v3297_v23  ;;  %v774_v17 = vsel %vm725_vm8, %v3297_v23, 0 }
  0x54   : > { %v898_v53 = vrot.slane %v2201_v42, 1  ;;  %2447 = vmatpush3.bf16.msra.mxu1 %v2597_v50  ;;  %v2213_v50 = vcombine.low %v754_v22, %v755_v8  ;;  %v775_v48 = vsel %vm726_vm13, %v3326_v59, 0  ;;  %v770_v61 = vsel %vm3014_vm7, %v769_v46, 0  ;;  %v2603_v8 = vld [vmem:[%s3666_s3 + $0x218] sm:$0xff]  }
  0x55   : > { %v861_v12 = vrot.slane %v859_v3, 1  ;;  %2508 = vmatprep.subr.bf16.mxu1 %v3454_v7  ;;  %v943_v35 = vor.u32 %v942_v47, %v938_v51  ;;  %vm3752_vm0 = vcmp.ne.s16.totalorder %v3005_v18, 0  ;;  %vm3753_vm11 = vcmp.ne.s16.totalorder %v2963_v27, 0  ;;  %v2601_v27 = vld [vmem:[%s3666_s3 + $0x208] sm:$0xff]  }
  0x56   : > { %2405 = vmatpush3.bf16.msra.mxu0 %v2595_v36  ;;  %v899_v13 = vsel %vm3747_vm10, %v3374_v11, %v898_v53  ;;  %v480_v36 = vld [vmem:[#allocation2 + $0x24] sm:$0x1]  ;;  %v947_v11 = vrot.slane %v945_v58, 1  ;;  %v771_v52 = vsel %vm3752_vm0, %v2994_v16, 0  ;;  %v772_v31 = vsel %vm3753_vm11, %v3153_v2, 0 }
  0x57   : > { %2406 = vmatprep.subr.bf16.mxu0 %v2598_v54  ;;  %1799 = vmatmul.mubr.bf16.gmra.mrb[12].mxu1 %v899_v13  ;;  %v862_v37 = vsel %vm826_vm1, %v3462_v10, %v861_v12  ;;  %v481_v38 = vsel %vm479_vm2, %v455_v4, %v480_v36  ;;  %v1003_v54 = vrot.slane %v2213_v50, 1  ;;  %vm3754_vm8 = vcmp.ne.s16.totalorder %v2974_v43, 0 }
  0x58   : > { %1733 = vmatprep.mubr.bf16.mxu0 %v862_v37  ;;  %1904 = vmatprep.mubr.bf16.mxu1 %v3265_v34  ;;  %482 = vst [vmem:[#allocation2 + $0x24] sm:$0x1] %v481_v38  ;;  %v2224_v34 = vcombine.low %v774_v17, %v775_v48  ;;  %v773_v45 = vsel %vm3754_vm8, %v3182_v24, 0  ;;  %v2222_v1 = vcombine.low %v770_v61, %v771_v52  ;;  %vm3755_vm13 = vcmp.ne.s16.totalorder %v3258_v55, 0  ;;  %v2604_v38 = vld [vmem:[%s3666_s3 + $0x220] sm:$0xff]  }
  0x59   : > { %1734 = vmatmul.mubr.bf16.gmra.mrb[12].mxu0 %v2191_v0  ;;  %v756_v44 = vsel %vm3755_vm13, %v3326_v59, 0  ;;  %vm3756_vm7 = vcmp.ne.s16.totalorder %v3291_v29, 0  ;;  %v2223_v18 = vcombine.low %v772_v31, %v773_v45  ;;  %v948_v16 = vsel %vm826_vm1, %v943_v35, %v947_v11 }
  0x5a   : > { %2407 = vmatpush3.bf16.msra.mxu0 %v2599_v28  ;;  %1839 = vmatprep.mubr.bf16.mxu0 %v1002_v40  ;;  %v757_v26 = vsel %vm3756_vm7, %v3437_v56, 0  ;;  %vm3757_vm2 = vsmask.f32 256  ;;  %v1081_v32 = vrot.slane %v2222_v1, 1  ;;  %v949_v9 = vshrl.u32 %v3443_v62, 16 }
  0x5b   : > { %2484 = vmatprep.subr.bf16.mxu0 %v3454_v7  ;;  %vm3523_vm10 = vmand %vm496_vm4, %vm3757_vm2  ;;  %v953_v6 = vshll.u32 %v3493_v60, 16  ;;  %v3529_v49 = vrot.slane %v2224_v34, 1  ;;  %v1082_v42 = vrot.slane %v2223_v18, 1  ;;  %v762_v41 = vsel %vm3082_vm14, %v3153_v2, 0  ;;  %v2602_v2 = vld [vmem:[%s3666_s3 + $0x210] sm:$0xff]  }
  0x5c   : > { %vm3760_vm0 = vcmask 1046528   ;;  %v2214_v3 = vcombine.low %v756_v44, %v757_v26  ;;  %v763_v62 = vsel %vm3117_vm12, %v3182_v24, 0  ;;  %v951_v30 = vor.u32 %v949_v9, %v947_v11  ;;  %v2607_v26 = vld [vmem:[%s3666_s3 + $0x230] sm:$0xff]  }
  0x5d   : > { %v1004_v39 = vsel %vm3760_vm0, %v3439_v57, %v1003_v54  ;;  %vm3761_vm4 = vmmov %vm3760_vm0  ;;  %v955_v24 = vrot.slane %v953_v6, 1  ;;  %v3558_v57 = vcombine.low %v3326_v59, %v3437_v56  ;;  %v2217_v53 = vcombine.low %v762_v41, %v763_v62 }
  0x5e   : > { %v3544_v4 = vsel %vm3761_vm4, %v1081_v32, %v1082_v42  ;;  %vm3762_vm14 = vmmov %vm3760_vm0  ;;  %v1005_v58 = vrot.slane %v2214_v3, 1  ;;  %v957_v12 = vshrl.u32 %v3493_v60, 16  ;;  %v764_v37 = vsel %vm3236_vm15, %v3297_v23, 0 }
  0x5f   : > { %1905 = vmatmul.mubr.bf16.vlgmr.msra.gmra.mrb[16].mxu1 %v2216_v25  ;;  %v498_v20 = vld [vmem:[#allocation2 + $0x24] sm:$0x1]  ;;  %v3548_v63 = vsel %vm3762_vm14, %v1082_v42, %v3529_v49  ;;  %v961_v0 = vshll.u32 %v3558_v57, 16  ;;  %vm3763_vm12 = vmmov %vm3760_vm0  ;;  %v765_v50 = vsel %vm3282_vm5, %v3326_v59, 0  ;;  %vm3764_vm11 = vcmp.ne.s16.totalorder %v3347_v21, 0 }
  0x60   : > { %2516 = vmatpush3.bf16.msra.mxu1 %v3454_v7  ;;  %1912 = vmatprep.mubr.bf16.mxu1 %v3419_v5  ;;  %v499_v28 = vsel %vm3523_vm10, 0, %v498_v20  ;;  %v3553_v5 = vld [vmem:[#allocation2 + $0x28] sm:$0x1]  ;;  %v1006_v51 = vsel %vm3763_vm12, %v1003_v54, %v1005_v58  ;;  %v959_v25 = vor.u32 %v957_v12, %v955_v24  ;;  %v2218_v23 = vcombine.low %v764_v37, %v765_v50  ;;  %vm3765_vm15 = vmmov %vm3755_vm13 }
  0x61   : > { %1840 = vmatmul.mubr.bf16.vlgmr.msra.gmra.mrb[16].mxu0 %v948_v16  ;;  %2509 = vmatprep.subr.bf16.mxu1 %v2601_v27  ;;  %500 = vst [vmem:[#allocation2 + $0x24] sm:$0x1] %v499_v28  ;;  %v2221_v22 = vcombine.low %v3553_v5, %v3553_v5  ;;  %v963_v11 = vrot.slane %v961_v0, 1  ;;  %v776_v34 = vsel %vm3765_vm15, %v3437_v56, 0  ;;  %vm3766_vm5 = vmmov %vm3756_vm7  ;;  %v2605_v54 = vld [vmem:[%s3666_s3 + $0x228] sm:$0xff]   ;;  %v965_v31 = vshrl.u32 %v3558_v57, 16 }
  0x62   : > { %2485 = vmatpush3.bf16.msra.mxu0 %v3454_v7  ;;  %1847 = vmatprep.mubr.bf16.mxu0 %v1004_v39  ;;  %v956_v7 = vsel %vm826_vm1, %v951_v30, %v955_v24  ;;  %vm3767_vm8 = vmmov %vm3760_vm0 }
  0x63   : > { %2486 = vmatprep.subr.bf16.mxu0 %v2601_v27  ;;  %v1052_v13 = vshll.u32 %v2221_v22, 16  ;;  %v964_v52 = vsel %vm826_vm1, %v959_v25, %v963_v11  ;;  %vm3768_vm13 = vmmov %vm3764_vm11 }
  0x64   : > { %2517 = vmatpush3.bf16.msra.mxu1 %v2601_v27  ;;  %v778_v32 = vsel %vm3768_vm13, %v3553_v5, 0  ;;  %v2227_v5 = vld [vmem:[%s3667_s4] ss:$0 sm:$0xff] }
  0x65   : > { %2510 = vmatprep.subr.bf16.mxu1 %v2602_v2  ;;  %v1054_v14 = vrot.slane %v1052_v13, 1  ;;  %v2226_v42 = vcombine.low %v778_v32, %v778_v32 }
  0x66   : > { %2487 = vmatpush3.bf16.msra.mxu0 %v2601_v27  ;;  %v967_v27 = vor.u32 %v965_v31, %v963_v11 }
  0x67   : > { %1913 = vmatmul.mubr.bf16.gmra.mrb[20].mxu1 %v2217_v53  ;;  %2488 = vmatprep.subr.bf16.mxu0 %v2602_v2 }
  0x68   : > { %2518 = vmatpush3.bf16.msra.mxu1 %v2602_v2  ;;  %v759_v47 = vld [vmem:[#allocation2 + $0x24] sm:$0xf] }
  0x69   : > { %v748_v40 = vld [vmem:[#allocation2 + $0x24] sm:$0x1]  ;;  %1848 = vmatmul.mubr.bf16.gmra.mrb[20].mxu0 %v956_v7  ;;  %2511 = vmatprep.subr.bf16.mxu1 %v2603_v8  ;;  %v2220_v36 = vcombine.low %v3437_v56, %v759_v47  ;;  %v777_v61 = vsel %vm3766_vm5, %v759_v47, 0  ;;  %v767_v16 = vsel %vm3407_vm6, %v759_v47, 0  ;;  %vm2002_vm6 = vcmask 261120  }
  0x6a   : > { %v758_v46 = vsel %vm3764_vm11, %v748_v40, 0  ;;  %2489 = vmatpush3.bf16.msra.mxu0 %v2602_v2  ;;  %1855 = vmatprep.mubr.bf16.mxu0 %v1006_v51  ;;  %v2210_v60 = vcombine.low %v748_v40, %v748_v40  ;;  %v2225_v55 = vcombine.low %v776_v34, %v777_v61 }
  0x6b   : > { %v2215_v35 = vcombine.low %v758_v46, %v758_v46  ;;  %v1044_v17 = vshll.u32 %v2220_v36, 16  ;;  %2490 = vmatprep.subr.bf16.mxu0 %v2603_v8  ;;  %v1048_v33 = vshrl.u32 %v2220_v36, 16 }
  0x6c   : > { %2519 = vmatpush3.bf16.msra.mxu1 %v2603_v8  ;;  %v969_v45 = vshll.u32 %v2210_v60, 16  ;;  %v1086_v9 = vrot.slane %v2225_v55, 1 }
  0x6d   : > { %v1046_v59 = vrot.slane %v1044_v17, 1  ;;  %2512 = vmatprep.subr.bf16.mxu1 %v2604_v38  ;;  %v1007_v48 = vrot.slane %v2215_v35, 1 }
  0x6e   : > { %2491 = vmatpush3.bf16.msra.mxu0 %v2603_v8  ;;  %v971_v43 = vrot.slane %v969_v45, 1 }
  0x6f   : > { %v1047_v1 = vsel %vm826_vm1, %v3462_v10, %v1046_v59  ;;  %2492 = vmatprep.subr.bf16.mxu0 %v2604_v38  ;;  %v1050_v44 = vor.u32 %v1048_v33, %v1046_v59  ;;  %v1008_v18 = vsel %vm3767_vm8, %v1005_v58, %v1007_v48  ;;  %v766_v10 = vsel %vm3391_vm9, %v3437_v56, 0  ;;  %vm3769_vm9 = vmmov %vm3760_vm0 }
  0x70   : > { %1920 = vmatprep.mubr.bf16.mxu1 %v1047_v1  ;;  %2520 = vmatpush3.bf16.msra.mxu1 %v2604_v38  ;;  %v2219_v6 = vcombine.low %v766_v10, %v767_v16  ;;  %v972_v15 = vsel %vm826_vm1, %v967_v27, %v971_v43  ;;  %v1087_v21 = vsel %vm3769_vm9, %v3529_v49, %v1086_v9  ;;  %v1088_v56 = vrot.slane %v2226_v42, 1 }
  0x71   : > { %1921 = vmatmul.mubr.bf16.gmra.mrb[24].mxu1 %v2218_v23  ;;  %1856 = vmatmul.mubr.bf16.gmra.mrb[24].mxu0 %v964_v52  ;;  %v1055_v29 = vsel %vm826_vm1, %v1050_v44, %v1054_v14  ;;  %vm3770_vm1 = vmmov %vm3760_vm0 }
  0x72   : > { %2493 = vmatpush3.bf16.msra.mxu0 %v2604_v38  ;;  %2513 = vmatprep.subr.bf16.mxu1 %v2605_v54  ;;  %v1089_v41 = vsel %vm3770_vm1, %v1086_v9, %v1088_v56 }
  0x73   : > { %1928 = vmatprep.mubr.bf16.mxu1 %v1055_v29  ;;  %2494 = vmatprep.subr.bf16.mxu0 %v2605_v54 }
  0x74   : > { %2521 = vmatpush3.bf16.msra.mxu1 %v2605_v54  ;;  %1863 = vmatprep.mubr.bf16.mxu0 %v1008_v18 }
  0x75   : > { %2514 = vmatprep.subr.bf16.mxu1 %v2607_v26 }
  0x76   : > { %2495 = vmatpush3.bf16.msra.mxu0 %v2605_v54 }
  0x77   : > { %2496 = vmatprep.subr.bf16.mxu0 %v2607_v26 }
  0x78   : > { %2522 = vmatpush3.bf16.msra.mxu1 %v2607_v26 }
  0x79   : > { %1929 = vmatmul.mubr.bf16.gmra.mrb[28].mxu1 %v2219_v6  ;;  %1864 = vmatmul.mubr.bf16.gmra.mrb[28].mxu0 %v972_v15 }
  0x7a   : > { %2497 = vmatpush3.bf16.msra.mxu0 %v2607_v26  ;;  %2515 = vmatprep.subr.bf16.mxu1 %v2609_v19 }
  0x7b   : > { %2498 = vmatprep.subr.bf16.mxu0 %v2609_v19  ;;  %2504 = vmatprep.mubr.bf16.mxu1 %v1087_v21 }
  0x7c   : > { %2523 = vmatpush3.bf16.msra.mxu1 %v2609_v19  ;;  %2500 = vmatprep.mubr.bf16.mxu0 %v3544_v4 }
  0x7e   : > { %2499 = vmatpush3.bf16.msra.mxu0 %v2609_v19 }
  0x81   : > { %2505 = vmatmul.mubr.bf16.vlgmr.msra.gmra.mrb[32].mxu1 %v1089_v41  ;;  %2501 = vmatmul.mubr.bf16.vlgmr.msra.gmra.mrb[32].mxu0 %v3548_v63 }
 0x10a   : > { %v2368_v39 = vpop.f32.mrb[0].mxu1 }
 0x10b   : > { %v2369_v20 = vpop.f32.mrb[1].mxu1 }
 0x10c   : > { %v2370_v3 = vadd.f32 %v2369_v20, %v2368_v39  ;;  %v2371_v49 = vpop.f32.mrb[2].mxu1 }
 0x10d   : > { %v2372_v62 = vpop.f32.mrb[3].mxu1 }
 0x10e   : > { %v2328_v28 = vpop.f32.mrb[0].mxu0  ;;  %v2373_v2 = vadd.f32 %v2372_v62, %v2371_v49 }
 0x10f   : > { %v2329_v30 = vpop.f32.mrb[1].mxu0 }
 0x110   : > { %v2330_v24 = vadd.f32 %v2329_v30, %v2328_v28  ;;  %v2331_v4 = vpop.f32.mrb[2].mxu0 }
 0x111   : > { %v2332_v57 = vpop.f32.mrb[3].mxu0 }
 0x112   : > { %v1712_v53 = vadd.f32 %v2330_v24, %v2227_v5  ;;  %v2333_v58 = vadd.f32 %v2332_v57, %v2331_v4 }
 0x114   : > { %v1715_v22 = vadd.f32 %v2333_v58, %v2227_v5  ;;  %v1777_v8 = vadd.f32 %v2370_v3, %v1712_v53 }
 0x116   : > { %v2374_v63 = vpop.f32.mrb[4].mxu1  ;;  %v1780_v7 = vadd.f32 %v2373_v2, %v1715_v22 }
 0x117   : > { %v2375_v12 = vpop.f32.mrb[5].mxu1 }
 0x118   : > { %v2334_v0 = vpop.f32.mrb[4].mxu0  ;;  %v2376_v51 = vadd.f32 %v2375_v12, %v2374_v63  ;;  %v2377_v47 = vpop.f32.mrb[6].mxu1 }
 0x119   : > { %v2335_v13 = vpop.f32.mrb[5].mxu0  ;;  %v2378_v40 = vpop.f32.mrb[7].mxu1 }
 0x11a   : > { %v2336_v36 = vadd.f32 %v2335_v13, %v2334_v0  ;;  %v2337_v37 = vpop.f32.mrb[6].mxu0  ;;  %v2379_v50 = vadd.f32 %v2378_v40, %v2377_v47 }
 0x11b   : > { %v2338_v38 = vpop.f32.mrb[7].mxu0 }
 0x11c   : > { %v1720_v46 = vadd.f32 %v2336_v36, %v2227_v5  ;;  %v2339_v25 = vadd.f32 %v2338_v38, %v2337_v37 }
 0x11e   : > { %v1723_v11 = vadd.f32 %v2339_v25, %v2227_v5  ;;  %v1785_v35 = vadd.f32 %v2376_v51, %v1720_v46 }
 0x120   : > { %v1788_v60 = vadd.f32 %v2379_v50, %v1723_v11 }
 0x121   : > { %v2380_v17 = vpop.f32.mrb[8].mxu1 }
 0x122   : > { %v2381_v33 = vpop.f32.mrb[9].mxu1 }
 0x123   : > { %v2340_v23 = vpop.f32.mrb[8].mxu0  ;;  %v2382_v14 = vadd.f32 %v2381_v33, %v2380_v17  ;;  %v2383_v59 = vpop.f32.mrb[10].mxu1 }
 0x124   : > { %v2341_v48 = vpop.f32.mrb[9].mxu0  ;;  %v2384_v34 = vpop.f32.mrb[11].mxu1 }
 0x125   : > { %v2342_v61 = vadd.f32 %v2341_v48, %v2340_v23  ;;  %v2343_v52 = vpop.f32.mrb[10].mxu0  ;;  %v2385_v54 = vadd.f32 %v2384_v34, %v2383_v59 }
 0x126   : > { %v2344_v31 = vpop.f32.mrb[11].mxu0 }
 0x127   : > { %v1728_v45 = vadd.f32 %v2342_v61, %v2227_v5  ;;  %v2345_v1 = vadd.f32 %v2344_v31, %v2343_v52 }
 0x129   : > { %v1731_v44 = vadd.f32 %v2345_v1, %v2227_v5  ;;  %v1793_v55 = vadd.f32 %v2382_v14, %v1728_v45 }
 0x12a   : > { %v2386_v29 = vpop.f32.mrb[12].mxu1 }
 0x12b   : > { %v1796_v26 = vadd.f32 %v2385_v54, %v1731_v44  ;;  %v2387_v18 = vpop.f32.mrb[13].mxu1 }
 0x12c   : > { %v2346_v10 = vpop.f32.mrb[12].mxu0  ;;  %v2388_v16 = vadd.f32 %v2387_v18, %v2386_v29  ;;  %v2389_v27 = vpop.f32.mrb[14].mxu1 }
 0x12d   : > { %v2347_v43 = vpop.f32.mrb[13].mxu0  ;;  %v2390_v32 = vpop.f32.mrb[15].mxu1 }
 0x12e   : > { %v2348_v9 = vadd.f32 %v2347_v43, %v2346_v10  ;;  %v2349_v6 = vpop.f32.mrb[14].mxu0  ;;  %v2391_v42 = vadd.f32 %v2390_v32, %v2389_v27 }
 0x12f   : > { %v2350_v15 = vpop.f32.mrb[15].mxu0 }
 0x130   : > { %v1736_v19 = vadd.f32 %v2348_v9, %v2227_v5  ;;  %v2351_v21 = vadd.f32 %v2350_v15, %v2349_v6 }
 0x132   : > { %v1739_v56 = vadd.f32 %v2351_v21, %v2227_v5  ;;  %v1801_v41 = vadd.f32 %v2388_v16, %v1736_v19  ;;  %v2448_v39 = vpop.f32.mrb[16].mxu1 }
 0x133   : > { %v2449_v20 = vpop.f32.mrb[17].mxu1 }
 0x134   : > { %v1804_v3 = vadd.f32 %v2391_v42, %v1739_v56  ;;  %v2408_v49 = vpop.f32.mrb[16].mxu0  ;;  %v2450_v62 = vadd.f32 %v2449_v20, %v2448_v39  ;;  %v2451_v28 = vpop.f32.mrb[18].mxu1 }
 0x135   : > { %v2409_v2 = vpop.f32.mrb[17].mxu0  ;;  %v2452_v30 = vpop.f32.mrb[19].mxu1 }
 0x136   : > { %v2410_v24 = vadd.f32 %v2409_v2, %v2408_v49  ;;  %v2411_v4 = vpop.f32.mrb[18].mxu0  ;;  %v2453_v57 = vadd.f32 %v2452_v30, %v2451_v28 }
 0x137   : > { %v2412_v53 = vpop.f32.mrb[19].mxu0 }
 0x138   : > { %v1842_v58 = vadd.f32 %v2410_v24, %v1777_v8  ;;  %v2413_v22 = vadd.f32 %v2412_v53, %v2411_v4 }
 0x13a   : > { %v1845_v63 = vadd.f32 %v2413_v22, %v1780_v7  ;;  %v2454_v12 = vpop.f32.mrb[20].mxu1  ;;  %v1907_v0 = vadd.f32 %v2450_v62, %v1842_v58 }
 0x13b   : > { %v2455_v51 = vpop.f32.mrb[21].mxu1 }
 0x13c   : > { %v2414_v5 = vpop.f32.mrb[20].mxu0  ;;  %v2456_v47 = vadd.f32 %v2455_v51, %v2454_v12  ;;  %v2457_v13 = vpop.f32.mrb[22].mxu1  ;;  %v3618_v40 = vadd.f32 %v2453_v57, %v1845_v63 }
 0x13d   : > { %v2415_v36 = vpop.f32.mrb[21].mxu0  ;;  %v2458_v37 = vpop.f32.mrb[23].mxu1 }
 0x13e   : > { %v2416_v50 = vadd.f32 %v2415_v36, %v2414_v5  ;;  %v2417_v38 = vpop.f32.mrb[22].mxu0  ;;  %v2459_v46 = vadd.f32 %v2458_v37, %v2457_v13 }
 0x13f   : > { %v2418_v25 = vpop.f32.mrb[23].mxu0 }
 0x140   : > { %v1850_v11 = vadd.f32 %v2416_v50, %v1785_v35  ;;  %v2419_v17 = vadd.f32 %v2418_v25, %v2417_v38 }
 0x142   : > { %v1853_v33 = vadd.f32 %v2419_v17, %v1788_v60  ;;  %v1915_v8 = vadd.f32 %v2456_v47, %v1850_v11 }
 0x144   : > { %v2420_v23 = vpop.f32.mrb[24].mxu0  ;;  %v2460_v7 = vpop.f32.mrb[24].mxu1  ;;  %v1918_v14 = vadd.f32 %v2459_v46, %v1853_v33 }
 0x145   : > { %v2421_v59 = vpop.f32.mrb[25].mxu0  ;;  %v2461_v48 = vpop.f32.mrb[25].mxu1 }
 0x146   : > { %v2422_v34 = vadd.f32 %v2421_v59, %v2420_v23  ;;  %v2423_v61 = vpop.f32.mrb[26].mxu0  ;;  %v2462_v52 = vadd.f32 %v2461_v48, %v2460_v7  ;;  %v2463_v54 = vpop.f32.mrb[26].mxu1 }
 0x147   : > { %v2424_v31 = vpop.f32.mrb[27].mxu0  ;;  %v2464_v45 = vpop.f32.mrb[27].mxu1 }
 0x148   : > { %v1858_v1 = vadd.f32 %v2422_v34, %v1793_v55  ;;  %v2425_v44 = vadd.f32 %v2424_v31, %v2423_v61  ;;  %v2465_v29 = vadd.f32 %v2464_v45, %v2463_v54 }
 0x14a   : > { %v1861_v18 = vadd.f32 %v2425_v44, %v1796_v26  ;;  %v1923_v10 = vadd.f32 %v2462_v52, %v1858_v1 }
 0x14c   : > { %v2426_v35 = vpop.f32.mrb[28].mxu0  ;;  %v2466_v16 = vpop.f32.mrb[28].mxu1  ;;  %v1926_v60 = vadd.f32 %v2465_v29, %v1861_v18 }
 0x14d   : > { %v2427_v27 = vpop.f32.mrb[29].mxu0  ;;  %v2467_v43 = vpop.f32.mrb[29].mxu1 }
 0x14e   : > { %v2428_v32 = vadd.f32 %v2427_v27, %v2426_v35  ;;  %v2468_v9 = vadd.f32 %v2467_v43, %v2466_v16  ;;  %v2429_v6 = vpop.f32.mrb[30].mxu0  ;;  %v2469_v42 = vpop.f32.mrb[30].mxu1 }
 0x14f   : > { %v2430_v15 = vpop.f32.mrb[31].mxu0  ;;  %v2470_v19 = vpop.f32.mrb[31].mxu1 }
 0x150   : > { %v1866_v21 = vadd.f32 %v2428_v32, %v1801_v41  ;;  %v2431_v56 = vadd.f32 %v2430_v15, %v2429_v6  ;;  %v2471_v39 = vadd.f32 %v2470_v19, %v2469_v42 }
 0x152   : > { %v1869_v55 = vadd.f32 %v2431_v56, %v1804_v3  ;;  %v1931_v20 = vadd.f32 %v2468_v9, %v1866_v21 }
 0x154   : > { %v2506_v49 = vpop.f32.mrb[32].mxu1  ;;  %v1934_v26 = vadd.f32 %v2471_v39, %v1869_v55  ;;  %v2502_v62 = vpop.f32.mrb[32].mxu0 }
 0x155   : > { %v1996_v28 = vadd.f32 %v2506_v49, %v1931_v20  ;;  %v1987_v2 = vpop.f32.mrb[33].mxu1  ;;  %v1980_v30 = vadd.f32 %v2502_v62, %v1915_v8  ;;  %v1971_v24 = vpop.f32.mrb[33].mxu0 }
 0x156   : > { %v1988_v4 = vadd.f32 %v1987_v2, %v1923_v10  ;;  %v2507_v57 = vpop.f32.mrb[34].mxu1  ;;  %v1972_v41 = vadd.f32 %v1971_v24, %v1907_v0  ;;  %v2503_v53 = vpop.f32.mrb[34].mxu0 }
 0x157   : > { %2009 = vst.msk [vmem:[%s289_s17 + $0x30] sm:$0xff] %vm2002_vm6, %v1996_v28  ;;  %v1999_v3 = vadd.f32 %v2507_v57, %v1934_v26  ;;  %v1990_v58 = vpop.f32.mrb[35].mxu1  ;;  %2005 = vst.msk [vmem:[%s289_s17 + $0x10] sm:$0xff] %vm2002_vm6, %v1980_v30  ;;  %v1974_v22 = vpop.f32.mrb[35].mxu0  ;;  %v1983_v12 = vadd.f32 %v2503_v53, %v1918_v14  ;;  %v2036_v13 = vmul.f32 %v1980_v30, %v1980_v30  ;;  %v2014_v50 = vsel %vm2002_vm6, %v1980_v30, 0.0 }
 0x158   : > { %2007 = vst.msk [vmem:[%s289_s17 + $0x20] sm:$0xff] %vm2002_vm6, %v1988_v4  ;;  %v1991_v63 = vadd.f32 %v1990_v58, %v1926_v60  ;;  %2003 = vst.msk [vmem:[%s289_s17] sm:$0xff] %vm2002_vm6, %v1972_v41  ;;  %v1975_v0 = vadd.f32 %v1974_v22, %v3618_v40  ;;  %v2034_v51 = vmul.f32 %v1972_v41, %v1972_v41  ;;  %v2011_v5 = vsel %vm2002_vm6, %v1972_v41, 0.0 }
 0x159   : > { %2010 = vst.msk [vmem:[%s289_s17 + $0x38] sm:$0xff] %vm2002_vm6, %v1999_v3  ;;  %2006 = vst.msk [vmem:[%s289_s17 + $0x18] sm:$0xff] %vm2002_vm6, %v1983_v12  ;;  %v2037_v46 = vmul.f32 %v1983_v12, %v1983_v12  ;;  %v2016_v11 = vsel %vm2002_vm6, %v1983_v12, 0.0  ;;  %v2038_v33 = vmul.f32 %v1988_v4, %v1988_v4  ;;  %v2045_v8 = vsel %vm2002_vm6, %v2036_v13, 0.0 }
 0x15a   : > { %2008 = vst.msk [vmem:[%s289_s17 + $0x28] sm:$0xff] %vm2002_vm6, %v1991_v63  ;;  %2004 = vst.msk [vmem:[%s289_s17 + $0x8] sm:$0xff] %vm2002_vm6, %v1975_v0  ;;  %v2012_v47 = vsel %vm2002_vm6, %v1975_v0, 0.0  ;;  %v2035_v37 = vmul.f32 %v1975_v0, %v1975_v0  ;;  %v2042_v38 = vsel %vm2002_vm6, %v2034_v51, 0.0  ;;  %v2018_v7 = vsel %vm2002_vm6, %v1988_v4, 0.0 }
 0x15b   : > { %v2013_v36 = vadd.f32 %v2012_v47, %v2011_v5  ;;  %v2039_v59 = vmul.f32 %v1991_v63, %v1991_v63  ;;  %v2047_v48 = vsel %vm2002_vm6, %v2037_v46, 0.0  ;;  %v2020_v61 = vsel %vm2002_vm6, %v1991_v63, 0.0 }
 0x15c   : > { %v2043_v40 = vsel %vm2002_vm6, %v2035_v37, 0.0  ;;  %v2040_v54 = vmul.f32 %v1996_v28, %v1996_v28  ;;  %v2049_v31 = vsel %vm2002_vm6, %v2038_v33, 0.0  ;;  %v2022_v1 = vsel %vm2002_vm6, %v1996_v28, 0.0 }
 0x15d   : > { %v2015_v25 = vadd.f32 %v2014_v50, %v2013_v36  ;;  %v2044_v17 = vadd.f32 %v2043_v40, %v2042_v38  ;;  %v2041_v29 = vmul.f32 %v1999_v3, %v1999_v3  ;;  %v2051_v18 = vsel %vm2002_vm6, %v2039_v59, 0.0 }
 0x15e   : > { %v2024_v35 = vsel %vm2002_vm6, %v1999_v3, 0.0  ;;  %v2053_v60 = vsel %vm2002_vm6, %v2040_v54, 0.0 }
 0x15f   : > { %v2017_v23 = vadd.f32 %v2016_v11, %v2015_v25  ;;  %v2046_v14 = vadd.f32 %v2045_v8, %v2044_v17  ;;  %v2055_v32 = vsel %vm2002_vm6, %v2041_v29, 0.0 }
 0x161   : > { %v2019_v34 = vadd.f32 %v2018_v7, %v2017_v23  ;;  %v2048_v52 = vadd.f32 %v2047_v48, %v2046_v14 }
 0x163   : > { %v2021_v45 = vadd.f32 %v2020_v61, %v2019_v34  ;;  %v2050_v44 = vadd.f32 %v2049_v31, %v2048_v52 }
 0x165   : > { %v2023_v10 = vadd.f32 %v2022_v1, %v2021_v45  ;;  %v2052_v16 = vadd.f32 %v2051_v18, %v2050_v44 }
 0x167   : > { %v2025_v27 = vadd.f32 %v2024_v35, %v2023_v10  ;;  %v2054_v43 = vadd.f32 %v2053_v60, %v2052_v16 }
 0x169   : > { %v2026_v9 = vrot.slane %v2025_v27, 4  ;;  %v2056_v6 = vadd.f32 %v2055_v32, %v2054_v43 }
 0x16b   : > { %v2027_v42 = vadd.f32 %v2026_v9, %v2025_v27  ;;  %v2057_v15 = vrot.slane %v2056_v6, 4 }
 0x16d   : > { %v2028_v19 = vrot.slane %v2027_v42, 2  ;;  %v2058_v21 = vadd.f32 %v2057_v15, %v2056_v6 }
 0x16f   : > { %v2029_v56 = vadd.f32 %v2028_v19, %v2027_v42  ;;  %v2059_v39 = vrot.slane %v2058_v21, 2 }
 0x171   : > { %v2030_v55 = vrot.slane %v2029_v56, 1  ;;  %v2060_v20 = vadd.f32 %v2059_v39, %v2058_v21 }
 0x173   : > { %v2031_v49 = vadd.f32 %v2030_v55, %v2029_v56  ;;  %v2061_v26 = vrot.slane %v2060_v20, 1 }
 0x175   : > { %2033 = vst.msk [vmem:[%s292_s19] sm:$0x1] %vm478_vm3, %v2031_v49  ;;  %v2062_v62 = vadd.f32 %v2061_v26, %v2060_v20 }
 0x177   : > { %2063 = vst.msk [vmem:[%s295_s23] sm:$0x1] %vm478_vm3, %v2062_v62 }
 0x178 PF: > { %s18_s24 = sadd.s32 1, %s2616_s24  }
 0x179   : > { %p15_p4 = scmp.ge.s32.totalorder %s18_s24, 4  }
 0x17b   :  { %17 = sbr.rel (!%p15_p4) target bundleno = 1 (0x1), region = 94 }

</bundles_post_ra>
